<compile_context>
chip_gen: v5e
topology: v5e:2x2
jax: 0.10.0
libtpu: 0.0.40
codegen_flags: <defaults>
</compile_context>

<pallas_src>
import jax
import jax.numpy as jnp
from jax import lax
from jax.experimental import pallas as pl
from jax.experimental.pallas import tpu as pltpu

C = 32                 # channels per neuron
K_PAD = 32             # conv1 taps (25) padded to 32
EPS = 1e-5
H_IN = W_IN = 48


def _sigmoid(x):
    # exact form is 1/(1+exp(-x)); approx reciprocal runs on the EUP slot (err ~2^-12)
    return pl.reciprocal(1.0 + jnp.exp(-x), approx=True)


def _default_neuron_pack():
    """8 packed neurons (LANES=256) on 256-wide-MXU chips (v6e/v7x), else 4."""
    try:
        kind = jax.devices()[0].device_kind.lower()
    except Exception:
        return 4
    if ("v6" in kind) or ("v7" in kind) or ("7x" in kind):
        return 8
    return 4


def _pick_b_tile(B):
    # multiples of 16 keep all bf16 sublane slices tile-aligned
    for t in (64, 32, 16):
        if B >= t:
            return t
    return 16


# ---------------------------------------------------------------------------
# Kernel: one grid step = (one packed-neuron group) x (one batch tile).
# ---------------------------------------------------------------------------
def _rf_cnn_kernel(
    xcol_ref,                 # (1, 4*36*BT, 32) bf16   im2col'd patch, parity on M
    w1_ref,                   # (1, 32, L)       bf16   conv1 taps (packed neurons)
    w2_ref,                   # (1, 25, L, L)    bf16   conv2 taps, block-diagonal
    w3_ref, w4_ref,           # (1, L, L)        bf16   1x1 convs, block-diagonal
    wl_ref,                   # (1, L, P)        bf16   Linear, block structured
    sc_ref,                   # (1, 8, L)        f32    [s1,t1,s2,t2,s3,t3,s4,t4]
    bl_ref,                   # (1, 1, P)        f32    Linear bias
    o_ref,                    # (1, 1, BT, P)    f32
    p1_ref,                   # VMEM scratch (36*BT, L) bf16
):
    BT = o_ref.shape[2]
    L = p1_ref.shape[1]
    QB = 36 * BT

    s1 = sc_ref[0, 0:1, :]; t1 = sc_ref[0, 1:2, :]
    s2 = sc_ref[0, 2:3, :]; t2 = sc_ref[0, 3:4, :]
    s3 = sc_ref[0, 4:5, :]; t3 = sc_ref[0, 5:6, :]
    s4 = sc_ref[0, 6:7, :]; t4 = sc_ref[0, 7:8, :]

    # ----- conv1: single merged bf16 dot over all 4 pool parities (stacked on M);
    # the 2x2 max-pool is the max over the 4 M-slabs.  Rows ordered (q, batch).
    m = jnp.dot(xcol_ref[0], w1_ref[0], preferred_element_type=jnp.float32)
    m = jnp.maximum(jnp.maximum(m[0:QB], m[QB:2 * QB]),
                    jnp.maximum(m[2 * QB:3 * QB], m[3 * QB:4 * QB]))
    p1_ref[...] = _sigmoid(m * s1 + t1).astype(p1_ref.dtype)        # (36*BT, L) bf16

    # ----- conv2: per tap, ONLY the two needed 2*BT-row slabs of pool1 are streamed
    # (q rows {r0, r0+1} feed the top two conv2 outputs, {r0+6, r0+7} the bottom two).
    # Clean accumulating dot chain; BN/sigmoid applied after the tap loop.
    accA = jnp.zeros((2 * BT, L), jnp.float32)
    accB = jnp.zeros((2 * BT, L), jnp.float32)
    for di in range(5):
        for dj in range(5):
            r0 = di * 6 + dj
            wt = w2_ref[0, di * 5 + dj]                              # (L, L) bf16
            accA = accA + jnp.dot(p1_ref[r0 * BT:(r0 + 2) * BT, :], wt,
                                  preferred_element_type=jnp.float32)
            accB = accB + jnp.dot(p1_ref[(r0 + 6) * BT:(r0 + 8) * BT, :], wt,
                                  preferred_element_type=jnp.float32)
    # 2x2 max-pool over the four conv2 output positions
    z = jnp.maximum(jnp.maximum(accA[0:BT], accA[BT:2 * BT]),
                    jnp.maximum(accB[0:BT], accB[BT:2 * BT]))
    z = _sigmoid(z * s2 + t2).astype(jnp.bfloat16)                   # (BT, L)

    # ----- 1x1 convs + BN + sigmoid + Linear (block-diagonal packed weights) -----
    h3 = _sigmoid(jnp.dot(z, w3_ref[0], preferred_element_type=jnp.float32)
                  * s3 + t3).astype(jnp.bfloat16)
    h4 = _sigmoid(jnp.dot(h3, w4_ref[0], preferred_element_type=jnp.float32)
                  * s4 + t4).astype(jnp.bfloat16)
    out = jnp.dot(h4, wl_ref[0], preferred_element_type=jnp.float32) + bl_ref[0]
    o_ref[0, 0] = out                                                # (BT, P)


# ---------------------------------------------------------------------------
# Wrapper: receptive-field crop + static-slice im2col, pallas_call, un-pack output.
# ---------------------------------------------------------------------------
def rf_cnn_forward(x_nchw, packed, num_neurons, b_tile=None):
    """x_nchw: (B, 1, 48, 48) float32 -> (B, num_neurons) float32."""
    B = x_nchw.shape[0]
    NG, _, L = packed["w1"].shape
    P = packed["wl"].shape[-1]
    assert num_neurons <= NG * P

    if b_tile is None:
        b_tile = _pick_b_tile(B)
    assert b_tile % 16 == 0
    n_bt = -(-B // b_tile)
    B_pad = n_bt * b_tile

    # receptive field of the single used output pixel (4,4) = input rows/cols 16..31
    patch = x_nchw[:, 0, 16:32, 16:32].astype(jnp.float32)            # (B, 16, 16)

    # im2col via static strided slices (no gather): 25 conv1 tap windows, then split
    # by 2x2 pool parity g = rh*2 + rw.
    taps = jnp.stack([patch[:, di:di + 12, dj:dj + 12]
                      for di in range(5) for dj in range(5)], axis=-1)  # (B,12,12,25)
    xcol = jnp.stack([taps[:, g // 2::2, g % 2::2, :] for g in range(4)],
                     axis=1).reshape(B, 4, 36, 25)                     # (B,4,36,25)

    # pad batch to a multiple of b_tile and taps 25 -> 32 (zeros); cast to bf16
    xcol = jnp.pad(xcol, ((0, B_pad - B), (0, 0), (0, 0), (0, K_PAD - 25)))
    xcol = xcol.astype(jnp.bfloat16)
    # per batch tile, M rows ordered (parity g, pooled cell q, local batch b) so the
    # conv1 parity-max and the conv2 slabs are contiguous, tile-aligned slices
    xcol = xcol.reshape(n_bt, b_tile, 4, 36, K_PAD)
    xcol = jnp.transpose(xcol, (0, 2, 3, 1, 4)).reshape(n_bt, 4 * 36 * b_tile, K_PAD)

    grid_spec = pltpu.PrefetchScalarGridSpec(
        num_scalar_prefetch=0,
        grid=(NG, n_bt),   # batch innermost: weights stay VMEM-resident across tiles
        in_specs=[
            pl.BlockSpec((1, 4 * 36 * b_tile, K_PAD), lambda n, b: (b, 0, 0)),  # xcol
            pl.BlockSpec((1, K_PAD, L), lambda n, b: (n, 0, 0)),                # w1
            pl.BlockSpec((1, 25, L, L), lambda n, b: (n, 0, 0, 0)),             # w2
            pl.BlockSpec((1, L, L), lambda n, b: (n, 0, 0)),                    # w3
            pl.BlockSpec((1, L, L), lambda n, b: (n, 0, 0)),                    # w4
            pl.BlockSpec((1, L, P), lambda n, b: (n, 0, 0)),                    # wl
            pl.BlockSpec((1, 8, L), lambda n, b: (n, 0, 0)),                    # sc
            pl.BlockSpec((1, 1, P), lambda n, b: (n, 0, 0)),                    # bl
        ],
        out_specs=pl.BlockSpec((1, 1, b_tile, P), lambda n, b: (n, b, 0, 0)),
        scratch_shapes=[pltpu.VMEM((36 * b_tile, L), jnp.bfloat16)],
    )

    out = pl.pallas_call(
        _rf_cnn_kernel,
        out_shape=jax.ShapeDtypeStruct((NG, n_bt, b_tile, P), jnp.float32),
        grid_spec=grid_spec,
        compiler_params=pltpu.CompilerParams(
            dimension_semantics=("parallel", "parallel"),
            vmem_limit_bytes=48 * 1024 * 1024),   # sized so it also fits v7x's 64 MiB
    )(xcol, packed["w1"], packed["w2"], packed["w3"], packed["w4"],
      packed["wl"], packed["sc"], packed["bl"])

    # (NG, n_bt, BT, P) -> (B_pad, NG*P) -> crop padding
    out = jnp.transpose(out, (1, 2, 0, 3)).reshape(B_pad, NG * P)
    return out[:B, :num_neurons]


# ---------------------------------------------------------------------------
# Deterministic parameter construction (shapes from the PyTorch __init__).
# ---------------------------------------------------------------------------
def _bn_init(key, N):
    k1, k2, k3, k4 = jax.random.split(key, 4)
    return dict(
        g=jax.random.uniform(k1, (N, C), jnp.float32, 0.5, 1.5),
        b=jax.random.normal(k2, (N, C), jnp.float32) * 0.1,
        m=jax.random.normal(k3, (N, C), jnp.float32) * 0.1,
        v=jax.random.uniform(k4, (N, C), jnp.float32, 0.5, 1.5),
    )


def init_raw_params(key, N):
    ks = jax.random.split(key, 14)
    return dict(
        c1w=jax.random.normal(ks[0], (N, C, 1, 5, 5), jnp.float32) * 0.2,
        c1b=jax.random.normal(ks[1], (N, C), jnp.float32) * 0.1,
        bn1=_bn_init(ks[2], N),
        c2w=jax.random.normal(ks[3], (N, C, C, 5, 5), jnp.float32) * 0.05,
        c2b=jax.random.normal(ks[4], (N, C), jnp.float32) * 0.1,
        bn2=_bn_init(ks[5], N),
        c3w=jax.random.normal(ks[6], (N, C, C, 1, 1), jnp.float32) * 0.15,
        c3b=jax.random.normal(ks[7], (N, C), jnp.float32) * 0.1,
        bn3=_bn_init(ks[8], N),
        c4w=jax.random.normal(ks[9], (N, C, C, 1, 1), jnp.float32) * 0.15,
        c4b=jax.random.normal(ks[10], (N, C), jnp.float32) * 0.1,
        bn4=_bn_init(ks[11], N),
        lw=jax.random.normal(ks[12], (N, 1, C), jnp.float32) * 0.2,
        lb=jax.random.normal(ks[13], (N, 1), jnp.float32) * 0.1,
    )


def fold_and_pack_params(raw, neuron_pack=4):
    """Fold eval-mode BN + conv biases; pack `neuron_pack` neurons on lanes (bf16)."""
    N = raw["c1w"].shape[0]
    P = neuron_pack
    NG = -(-N // P)
    Np = NG * P
    L = P * C
    eye = jnp.eye(P, dtype=jnp.float32)

    def padN(a):
        return jnp.pad(a, ((0, Np - N),) + ((0, 0),) * (a.ndim - 1))

    def bn_fold(bn, conv_b):
        s = bn["g"] / jnp.sqrt(bn["v"] + EPS)                    # (N, 32)
        t = bn["b"] + s * (conv_b - bn["m"])
        return padN(s).reshape(NG, L), padN(t).reshape(NG, L)

    def blockdiag(w_ci_co):                                      # (N, 32, 32) in->out
        wp = padN(w_ci_co).reshape(NG, P, C, C)
        bd = jnp.einsum("gpio,pq->gpiqo", wp, eye)
        return bd.reshape(NG, L, L)

    p = {}
    # conv1: (N, co, 1, 5, 5) -> (N, 25 taps row-major, co); pad taps, pack neurons
    w1 = jnp.transpose(raw["c1w"][:, :, 0], (0, 2, 3, 1)).reshape(N, 25, C)
    w1 = jnp.pad(w1, ((0, Np - N), (0, K_PAD - 25), (0, 0)))
    p["w1"] = jnp.transpose(w1.reshape(NG, P, K_PAD, C),
                            (0, 2, 1, 3)).reshape(NG, K_PAD, L).astype(jnp.bfloat16)
    s1, t1 = bn_fold(raw["bn1"], raw["c1b"])

    # conv2: (N, co, ci, 5, 5) -> per-tap block-diagonal (L, L)
    w2 = jnp.transpose(raw["c2w"], (0, 3, 4, 2, 1)).reshape(N, 25, C, C)
    w2 = padN(w2).reshape(NG, P, 25, C, C)
    p["w2"] = jnp.einsum("gptio,pq->gtpiqo", w2,
                         eye).reshape(NG, 25, L, L).astype(jnp.bfloat16)
    s2, t2 = bn_fold(raw["bn2"], raw["c2b"])

    p["w3"] = blockdiag(jnp.transpose(raw["c3w"][:, :, :, 0, 0],
                                      (0, 2, 1))).astype(jnp.bfloat16)
    s3, t3 = bn_fold(raw["bn3"], raw["c3b"])
    p["w4"] = blockdiag(jnp.transpose(raw["c4w"][:, :, :, 0, 0],
                                      (0, 2, 1))).astype(jnp.bfloat16)
    s4, t4 = bn_fold(raw["bn4"], raw["c4b"])

    lw = padN(raw["lw"][:, 0, :]).reshape(NG, P, C)
    p["wl"] = jnp.einsum("gpc,pq->gpcq", lw, eye).reshape(NG, L, P).astype(jnp.bfloat16)
    p["bl"] = padN(raw["lb"]).reshape(NG, 1, P)

    # merged per-layer BN scale/shift: rows [s1,t1,s2,t2,s3,t3,s4,t4], kept f32
    p["sc"] = jnp.stack([s1, t1, s2, t2, s3, t3, s4, t4], axis=1)    # (NG, 8, L)
    return p


# ---------------------------------------------------------------------------
# Pure-JAX reference (inference semantics), used only to validate the kernel.
# ---------------------------------------------------------------------------
def ref_forward(x, raw):
    N = raw["c1w"].shape[0]
    B = x.shape[0]

    def conv(y, w, b):
        out = lax.conv_general_dilated(
            y, w, (1, 1), "VALID",
            dimension_numbers=("NCHW", "OIHW", "NCHW"),
            precision=lax.Precision.HIGHEST)
        return out + b[None, :, None, None]

    def maxpool2(y):
        return lax.reduce_window(y, -jnp.inf, lax.max, (1, 1, 2, 2), (1, 1, 2, 2),
                                 "VALID")

    def bn(y, p, n):
        def e(a):
            return a[n][None, :, None, None]
        return (y - e(p["m"])) / jnp.sqrt(e(p["v"]) + EPS) * e(p["g"]) + e(p["b"])

    def sig(y):
        return 1.0 / (1.0 + jnp.exp(-y))

    outs = []
    for n in range(N):
        y = sig(bn(maxpool2(conv(x, raw["c1w"][n], raw["c1b"][n])), raw["bn1"], n))
        y = sig(bn(maxpool2(conv(y, raw["c2w"][n], raw["c2b"][n])), raw["bn2"], n))
        y = sig(bn(conv(y, raw["c3w"][n], raw["c3b"][n]), raw["bn3"], n))
        y = sig(bn(conv(y, raw["c4w"][n], raw["c4b"][n]), raw["bn4"], n))
        feat = y.reshape(B, C, 81)[:, :, 40]                               # (B, 32)
        o = jnp.dot(feat, raw["lw"][n].T, precision=lax.Precision.HIGHEST) \
            + raw["lb"][n][None, :]                                        # (B, 1)
        outs.append(o)
    return jnp.stack(outs, axis=1).reshape(B, N)


if __name__ == "__main__":
    B, NUM_NEURONS = 3, 5   # exercises batch padding (3 -> 16) and neuron padding
    key = jax.random.PRNGKey(0)
    kx, kp = jax.random.split(key)
    x = jax.random.normal(kx, (B, 1, H_IN, W_IN), jnp.float32)

    raw = init_raw_params(kp, NUM_NEURONS)
    neuron_pack = _default_neuron_pack()          # 8 on v6e/v7x, 4 on v4/v5e
    packed = fold_and_pack_params(raw, neuron_pack)

    fwd = jax.jit(rf_cnn_forward, static_argnames=("num_neurons", "b_tile"))
    out = jax.block_until_ready(fwd(x, packed, num_neurons=NUM_NEURONS))
    ref = jax.block_until_ready(ref_forward(x, raw))

    assert out.shape == (B, NUM_NEURONS), out.shape
    # tolerance covers bf16 matmul-operand rounding (accumulation is f32)
    if not jnp.allclose(out, ref, atol=3e-2, rtol=3e-2):
        raise SystemExit(
            f"mismatch: max abs err = {float(jnp.max(jnp.abs(out - ref)))}")
    print("KERNEL_OK")
</pallas_src>

<mosaic_0001>
module attributes {stable_mosaic.version = 11 : i64} {
  func.func @_rf_cnn_kernel(%arg0: i32, %arg1: i32, %arg2: memref<1x2304x32xbf16, #tpu.memory_space<vmem>>, %arg3: memref<1x32x128xbf16, #tpu.memory_space<vmem>>, %arg4: memref<1x25x128x128xbf16, #tpu.memory_space<vmem>>, %arg5: memref<1x128x128xbf16, #tpu.memory_space<vmem>>, %arg6: memref<1x128x128xbf16, #tpu.memory_space<vmem>>, %arg7: memref<1x128x4xbf16, #tpu.memory_space<vmem>>, %arg8: memref<1x8x128xf32, #tpu.memory_space<vmem>>, %arg9: memref<1x1x4xf32, #tpu.memory_space<vmem>>, %arg10: memref<1x1x16x4xf32, #tpu.memory_space<vmem>>, %arg11: memref<576x128xbf16, #tpu.memory_space<vmem>>) attributes {dimension_semantics = [#tpu.dimension_semantics<parallel>, #tpu.dimension_semantics<parallel>], iteration_bounds = array<i64: 2, 1>, scalar_prefetch = 0 : i64, scratch_operands = 1 : i64, tpu.core_type = #tpu.core_type<tc>, window_params = [{transform_indices = @transform_0, window_bounds = array<i64: 1, 2304, 32>}, {transform_indices = @transform_1, window_bounds = array<i64: 1, 32, 128>}, {transform_indices = @transform_2, window_bounds = array<i64: 1, 25, 128, 128>}, {transform_indices = @transform_3, window_bounds = array<i64: 1, 128, 128>}, {transform_indices = @transform_4, window_bounds = array<i64: 1, 128, 128>}, {transform_indices = @transform_5, window_bounds = array<i64: 1, 128, 4>}, {transform_indices = @transform_6, window_bounds = array<i64: 1, 8, 128>}, {transform_indices = @transform_7, window_bounds = array<i64: 1, 1, 4>}, {transform_indices = @transform_8, window_bounds = array<i64: 1, 1, 16, 4>}]} {
    %c0 = arith.constant 0 : index
    %c0_0 = arith.constant 0 : index
    %c0_1 = arith.constant 0 : index
    %0 = vector.load %arg8[%c0, %c0_0, %c0_1] : memref<1x8x128xf32, #tpu.memory_space<vmem>>, vector<1x1x128xf32>
    %1 = vector.shape_cast %0 : vector<1x1x128xf32> to vector<1x128xf32>
    %c0_2 = arith.constant 0 : index
    %c1 = arith.constant 1 : index
    %c0_3 = arith.constant 0 : index
    %2 = vector.load %arg8[%c0_2, %c1, %c0_3] : memref<1x8x128xf32, #tpu.memory_space<vmem>>, vector<1x1x128xf32>
    %3 = vector.shape_cast %2 : vector<1x1x128xf32> to vector<1x128xf32>
    %c0_4 = arith.constant 0 : index
    %c2 = arith.constant 2 : index
    %c0_5 = arith.constant 0 : index
    %4 = vector.load %arg8[%c0_4, %c2, %c0_5] : memref<1x8x128xf32, #tpu.memory_space<vmem>>, vector<1x1x128xf32>
    %5 = vector.shape_cast %4 : vector<1x1x128xf32> to vector<1x128xf32>
    %c0_6 = arith.constant 0 : index
    %c3 = arith.constant 3 : index
    %c0_7 = arith.constant 0 : index
    %6 = vector.load %arg8[%c0_6, %c3, %c0_7] : memref<1x8x128xf32, #tpu.memory_space<vmem>>, vector<1x1x128xf32>
    %7 = vector.shape_cast %6 : vector<1x1x128xf32> to vector<1x128xf32>
    %c0_8 = arith.constant 0 : index
    %c4 = arith.constant 4 : index
    %c0_9 = arith.constant 0 : index
    %8 = vector.load %arg8[%c0_8, %c4, %c0_9] : memref<1x8x128xf32, #tpu.memory_space<vmem>>, vector<1x1x128xf32>
    %9 = vector.shape_cast %8 : vector<1x1x128xf32> to vector<1x128xf32>
    %c0_10 = arith.constant 0 : index
    %c5 = arith.constant 5 : index
    %c0_11 = arith.constant 0 : index
    %10 = vector.load %arg8[%c0_10, %c5, %c0_11] : memref<1x8x128xf32, #tpu.memory_space<vmem>>, vector<1x1x128xf32>
    %11 = vector.shape_cast %10 : vector<1x1x128xf32> to vector<1x128xf32>
    %c0_12 = arith.constant 0 : index
    %c6 = arith.constant 6 : index
    %c0_13 = arith.constant 0 : index
    %12 = vector.load %arg8[%c0_12, %c6, %c0_13] : memref<1x8x128xf32, #tpu.memory_space<vmem>>, vector<1x1x128xf32>
    %13 = vector.shape_cast %12 : vector<1x1x128xf32> to vector<1x128xf32>
    %c0_14 = arith.constant 0 : index
    %c7 = arith.constant 7 : index
    %c0_15 = arith.constant 0 : index
    %14 = vector.load %arg8[%c0_14, %c7, %c0_15] : memref<1x8x128xf32, #tpu.memory_space<vmem>>, vector<1x1x128xf32>
    %15 = vector.shape_cast %14 : vector<1x1x128xf32> to vector<1x128xf32>
    %c0_16 = arith.constant 0 : index
    %c0_17 = arith.constant 0 : index
    %c0_18 = arith.constant 0 : index
    %16 = vector.load %arg2[%c0_16, %c0_17, %c0_18] : memref<1x2304x32xbf16, #tpu.memory_space<vmem>>, vector<1x2304x32xbf16>
    %17 = vector.shape_cast %16 : vector<1x2304x32xbf16> to vector<2304x32xbf16>
    %c0_19 = arith.constant 0 : index
    %c0_20 = arith.constant 0 : index
    %c0_21 = arith.constant 0 : index
    %18 = vector.load %arg3[%c0_19, %c0_20, %c0_21] : memref<1x32x128xbf16, #tpu.memory_space<vmem>>, vector<1x32x128xbf16>
    %19 = vector.shape_cast %18 : vector<1x32x128xbf16> to vector<32x128xbf16>
    %cst = arith.constant dense<0.000000e+00> : vector<2304x128xf32>
    %20 = tpu.matmul %17, %19, %cst {dimension_numbers = #tpu.dot_dimension_numbers<[1], [0], [0], [1], [0, 0, 1, 1], [], []>} : vector<2304x32xbf16>, vector<32x128xbf16>, vector<2304x128xf32> -> vector<2304x128xf32>
    %21 = vector.extract_strided_slice %20 {offsets = [0, 0], sizes = [576, 128], strides = [1, 1]} : vector<2304x128xf32> to vector<576x128xf32>
    %22 = vector.extract_strided_slice %20 {offsets = [576, 0], sizes = [576, 128], strides = [1, 1]} : vector<2304x128xf32> to vector<576x128xf32>
    %23 = arith.maximumf %21, %22 : vector<576x128xf32>
    %24 = vector.extract_strided_slice %20 {offsets = [1152, 0], sizes = [576, 128], strides = [1, 1]} : vector<2304x128xf32> to vector<576x128xf32>
    %25 = vector.extract_strided_slice %20 {offsets = [1728, 0], sizes = [576, 128], strides = [1, 1]} : vector<2304x128xf32> to vector<576x128xf32>
    %26 = arith.maximumf %24, %25 : vector<576x128xf32>
    %27 = arith.maximumf %23, %26 : vector<576x128xf32>
    %28 = vector.broadcast %1 : vector<1x128xf32> to vector<576x128xf32>
    %29 = arith.mulf %27, %28 : vector<576x128xf32>
    %30 = vector.broadcast %3 : vector<1x128xf32> to vector<576x128xf32>
    %31 = arith.addf %29, %30 : vector<576x128xf32>
    %cst_22 = arith.constant 0.000000e+00 : f32
    %32 = vector.broadcast %cst_22 : f32 to vector<576x128xf32>
    %33 = arith.subf %32, %31 : vector<576x128xf32>
    %34 = math.exp %33 : vector<576x128xf32>
    %cst_23 = arith.constant 1.000000e+00 : f32
    %35 = vector.broadcast %cst_23 : f32 to vector<576x128xf32>
    %36 = arith.addf %35, %34 : vector<576x128xf32>
    %37 = tpu.reciprocal %36 {approx = true} : vector<576x128xf32> -> vector<576x128xf32>
    %38 = arith.truncf %37 : vector<576x128xf32> to vector<576x128xbf16>
    %c0_24 = arith.constant 0 : index
    %c0_25 = arith.constant 0 : index
    %39 = vector.load %arg11[%c0_24, %c0_25] : memref<576x128xbf16, #tpu.memory_space<vmem>>, vector<576x128xbf16>
    tpu.vector_store %arg11[%c0_24, %c0_25], %38 {strides = array<i32>} : memref<576x128xbf16, #tpu.memory_space<vmem>>, vector<576x128xbf16>,
    %cst_26 = arith.constant 0.000000e+00 : f32
    %40 = vector.broadcast %cst_26 : f32 to vector<32x128xf32>
    %cst_27 = arith.constant 0.000000e+00 : f32
    %41 = vector.broadcast %cst_27 : f32 to vector<32x128xf32>
    %c0_28 = arith.constant 0 : index
    %c0_29 = arith.constant 0 : index
    %c0_30 = arith.constant 0 : index
    %c0_31 = arith.constant 0 : index
    %42 = vector.load %arg4[%c0_28, %c0_29, %c0_30, %c0_31] : memref<1x25x128x128xbf16, #tpu.memory_space<vmem>>, vector<1x1x128x128xbf16>
    %43 = vector.shape_cast %42 : vector<1x1x128x128xbf16> to vector<128x128xbf16>
    %c0_32 = arith.constant 0 : index
    %c0_33 = arith.constant 0 : index
    %44 = vector.load %arg11[%c0_32, %c0_33] : memref<576x128xbf16, #tpu.memory_space<vmem>>, vector<32x128xbf16>
    %cst_34 = arith.constant dense<0.000000e+00> : vector<32x128xf32>
    %45 = tpu.matmul %44, %43, %cst_34 {dimension_numbers = #tpu.dot_dimension_numbers<[1], [0], [0], [1], [0, 0, 1, 1], [], []>} : vector<32x128xbf16>, vector<128x128xbf16>, vector<32x128xf32> -> vector<32x128xf32>
    %46 = arith.addf %40, %45 : vector<32x128xf32>
    %c96 = arith.constant 96 : index
    %c0_35 = arith.constant 0 : index
    %47 = vector.load %arg11[%c96, %c0_35] : memref<576x128xbf16, #tpu.memory_space<vmem>>, vector<32x128xbf16>
    %cst_36 = arith.constant dense<0.000000e+00> : vector<32x128xf32>
    %48 = tpu.matmul %47, %43, %cst_36 {dimension_numbers = #tpu.dot_dimension_numbers<[1], [0], [0], [1], [0, 0, 1, 1], [], []>} : vector<32x128xbf16>, vector<128x128xbf16>, vector<32x128xf32> -> vector<32x128xf32>
    %49 = arith.addf %41, %48 : vector<32x128xf32>
    %c0_37 = arith.constant 0 : index
    %c1_38 = arith.constant 1 : index
    %c0_39 = arith.constant 0 : index
    %c0_40 = arith.constant 0 : index
    %50 = vector.load %arg4[%c0_37, %c1_38, %c0_39, %c0_40] : memref<1x25x128x128xbf16, #tpu.memory_space<vmem>>, vector<1x1x128x128xbf16>
    %51 = vector.shape_cast %50 : vector<1x1x128x128xbf16> to vector<128x128xbf16>
    %c16 = arith.constant 16 : index
    %c0_41 = arith.constant 0 : index
    %52 = vector.load %arg11[%c16, %c0_41] : memref<576x128xbf16, #tpu.memory_space<vmem>>, vector<32x128xbf16>
    %cst_42 = arith.constant dense<0.000000e+00> : vector<32x128xf32>
    %53 = tpu.matmul %52, %51, %cst_42 {dimension_numbers = #tpu.dot_dimension_numbers<[1], [0], [0], [1], [0, 0, 1, 1], [], []>} : vector<32x128xbf16>, vector<128x128xbf16>, vector<32x128xf32> -> vector<32x128xf32>
    %54 = arith.addf %46, %53 : vector<32x128xf32>
    %c112 = arith.constant 112 : index
    %c0_43 = arith.constant 0 : index
    %55 = vector.load %arg11[%c112, %c0_43] : memref<576x128xbf16, #tpu.memory_space<vmem>>, vector<32x128xbf16>
    %cst_44 = arith.constant dense<0.000000e+00> : vector<32x128xf32>
    %56 = tpu.matmul %55, %51, %cst_44 {dimension_numbers = #tpu.dot_dimension_numbers<[1], [0], [0], [1], [0, 0, 1, 1], [], []>} : vector<32x128xbf16>, vector<128x128xbf16>, vector<32x128xf32> -> vector<32x128xf32>
    %57 = arith.addf %49, %56 : vector<32x128xf32>
    %c0_45 = arith.constant 0 : index
    %c2_46 = arith.constant 2 : index
    %c0_47 = arith.constant 0 : index
    %c0_48 = arith.constant 0 : index
    %58 = vector.load %arg4[%c0_45, %c2_46, %c0_47, %c0_48] : memref<1x25x128x128xbf16, #tpu.memory_space<vmem>>, vector<1x1x128x128xbf16>
    %59 = vector.shape_cast %58 : vector<1x1x128x128xbf16> to vector<128x128xbf16>
    %c32 = arith.constant 32 : index
    %c0_49 = arith.constant 0 : index
    %60 = vector.load %arg11[%c32, %c0_49] : memref<576x128xbf16, #tpu.memory_space<vmem>>, vector<32x128xbf16>
    %cst_50 = arith.constant dense<0.000000e+00> : vector<32x128xf32>
    %61 = tpu.matmul %60, %59, %cst_50 {dimension_numbers = #tpu.dot_dimension_numbers<[1], [0], [0], [1], [0, 0, 1, 1], [], []>} : vector<32x128xbf16>, vector<128x128xbf16>, vector<32x128xf32> -> vector<32x128xf32>
    %62 = arith.addf %54, %61 : vector<32x128xf32>
    %c128 = arith.constant 128 : index
    %c0_51 = arith.constant 0 : index
    %63 = vector.load %arg11[%c128, %c0_51] : memref<576x128xbf16, #tpu.memory_space<vmem>>, vector<32x128xbf16>
    %cst_52 = arith.constant dense<0.000000e+00> : vector<32x128xf32>
    %64 = tpu.matmul %63, %59, %cst_52 {dimension_numbers = #tpu.dot_dimension_numbers<[1], [0], [0], [1], [0, 0, 1, 1], [], []>} : vector<32x128xbf16>, vector<128x128xbf16>, vector<32x128xf32> -> vector<32x128xf32>
    %65 = arith.addf %57, %64 : vector<32x128xf32>
    %c0_53 = arith.constant 0 : index
    %c3_54 = arith.constant 3 : index
    %c0_55 = arith.constant 0 : index
    %c0_56 = arith.constant 0 : index
    %66 = vector.load %arg4[%c0_53, %c3_54, %c0_55, %c0_56] : memref<1x25x128x128xbf16, #tpu.memory_space<vmem>>, vector<1x1x128x128xbf16>
    %67 = vector.shape_cast %66 : vector<1x1x128x128xbf16> to vector<128x128xbf16>
    %c48 = arith.constant 48 : index
    %c0_57 = arith.constant 0 : index
    %68 = vector.load %arg11[%c48, %c0_57] : memref<576x128xbf16, #tpu.memory_space<vmem>>, vector<32x128xbf16>
    %cst_58 = arith.constant dense<0.000000e+00> : vector<32x128xf32>
    %69 = tpu.matmul %68, %67, %cst_58 {dimension_numbers = #tpu.dot_dimension_numbers<[1], [0], [0], [1], [0, 0, 1, 1], [], []>} : vector<32x128xbf16>, vector<128x128xbf16>, vector<32x128xf32> -> vector<32x128xf32>
    %70 = arith.addf %62, %69 : vector<32x128xf32>
    %c144 = arith.constant 144 : index
    %c0_59 = arith.constant 0 : index
    %71 = vector.load %arg11[%c144, %c0_59] : memref<576x128xbf16, #tpu.memory_space<vmem>>, vector<32x128xbf16>
    %cst_60 = arith.constant dense<0.000000e+00> : vector<32x128xf32>
    %72 = tpu.matmul %71, %67, %cst_60 {dimension_numbers = #tpu.dot_dimension_numbers<[1], [0], [0], [1], [0, 0, 1, 1], [], []>} : vector<32x128xbf16>, vector<128x128xbf16>, vector<32x128xf32> -> vector<32x128xf32>
    %73 = arith.addf %65, %72 : vector<32x128xf32>
    %c0_61 = arith.constant 0 : index
    %c4_62 = arith.constant 4 : index
    %c0_63 = arith.constant 0 : index
    %c0_64 = arith.constant 0 : index
    %74 = vector.load %arg4[%c0_61, %c4_62, %c0_63, %c0_64] : memref<1x25x128x128xbf16, #tpu.memory_space<vmem>>, vector<1x1x128x128xbf16>
    %75 = vector.shape_cast %74 : vector<1x1x128x128xbf16> to vector<128x128xbf16>
    %c64 = arith.constant 64 : index
    %c0_65 = arith.constant 0 : index
    %76 = vector.load %arg11[%c64, %c0_65] : memref<576x128xbf16, #tpu.memory_space<vmem>>, vector<32x128xbf16>
    %cst_66 = arith.constant dense<0.000000e+00> : vector<32x128xf32>
    %77 = tpu.matmul %76, %75, %cst_66 {dimension_numbers = #tpu.dot_dimension_numbers<[1], [0], [0], [1], [0, 0, 1, 1], [], []>} : vector<32x128xbf16>, vector<128x128xbf16>, vector<32x128xf32> -> vector<32x128xf32>
    %78 = arith.addf %70, %77 : vector<32x128xf32>
    %c160 = arith.constant 160 : index
    %c0_67 = arith.constant 0 : index
    %79 = vector.load %arg11[%c160, %c0_67] : memref<576x128xbf16, #tpu.memory_space<vmem>>, vector<32x128xbf16>
    %cst_68 = arith.constant dense<0.000000e+00> : vector<32x128xf32>
    %80 = tpu.matmul %79, %75, %cst_68 {dimension_numbers = #tpu.dot_dimension_numbers<[1], [0], [0], [1], [0, 0, 1, 1], [], []>} : vector<32x128xbf16>, vector<128x128xbf16>, vector<32x128xf32> -> vector<32x128xf32>
    %81 = arith.addf %73, %80 : vector<32x128xf32>
    %c0_69 = arith.constant 0 : index
    %c5_70 = arith.constant 5 : index
    %c0_71 = arith.constant 0 : index
    %c0_72 = arith.constant 0 : index
    %82 = vector.load %arg4[%c0_69, %c5_70, %c0_71, %c0_72] : memref<1x25x128x128xbf16, #tpu.memory_space<vmem>>, vector<1x1x128x128xbf16>
    %83 = vector.shape_cast %82 : vector<1x1x128x128xbf16> to vector<128x128xbf16>
    %c96_73 = arith.constant 96 : index
    %c0_74 = arith.constant 0 : index
    %84 = vector.load %arg11[%c96_73, %c0_74] : memref<576x128xbf16, #tpu.memory_space<vmem>>, vector<32x128xbf16>
    %cst_75 = arith.constant dense<0.000000e+00> : vector<32x128xf32>
    %85 = tpu.matmul %84, %83, %cst_75 {dimension_numbers = #tpu.dot_dimension_numbers<[1], [0], [0], [1], [0, 0, 1, 1], [], []>} : vector<32x128xbf16>, vector<128x128xbf16>, vector<32x128xf32> -> vector<32x128xf32>
    %86 = arith.addf %78, %85 : vector<32x128xf32>
    %c192 = arith.constant 192 : index
    %c0_76 = arith.constant 0 : index
    %87 = vector.load %arg11[%c192, %c0_76] : memref<576x128xbf16, #tpu.memory_space<vmem>>, vector<32x128xbf16>
    %cst_77 = arith.constant dense<0.000000e+00> : vector<32x128xf32>
    %88 = tpu.matmul %87, %83, %cst_77 {dimension_numbers = #tpu.dot_dimension_numbers<[1], [0], [0], [1], [0, 0, 1, 1], [], []>} : vector<32x128xbf16>, vector<128x128xbf16>, vector<32x128xf32> -> vector<32x128xf32>
    %89 = arith.addf %81, %88 : vector<32x128xf32>
    %c0_78 = arith.constant 0 : index
    %c6_79 = arith.constant 6 : index
    %c0_80 = arith.constant 0 : index
    %c0_81 = arith.constant 0 : index
    %90 = vector.load %arg4[%c0_78, %c6_79, %c0_80, %c0_81] : memref<1x25x128x128xbf16, #tpu.memory_space<vmem>>, vector<1x1x128x128xbf16>
    %91 = vector.shape_cast %90 : vector<1x1x128x128xbf16> to vector<128x128xbf16>
    %c112_82 = arith.constant 112 : index
    %c0_83 = arith.constant 0 : index
    %92 = vector.load %arg11[%c112_82, %c0_83] : memref<576x128xbf16, #tpu.memory_space<vmem>>, vector<32x128xbf16>
    %cst_84 = arith.constant dense<0.000000e+00> : vector<32x128xf32>
    %93 = tpu.matmul %92, %91, %cst_84 {dimension_numbers = #tpu.dot_dimension_numbers<[1], [0], [0], [1], [0, 0, 1, 1], [], []>} : vector<32x128xbf16>, vector<128x128xbf16>, vector<32x128xf32> -> vector<32x128xf32>
    %94 = arith.addf %86, %93 : vector<32x128xf32>
    %c208 = arith.constant 208 : index
    %c0_85 = arith.constant 0 : index
    %95 = vector.load %arg11[%c208, %c0_85] : memref<576x128xbf16, #tpu.memory_space<vmem>>, vector<32x128xbf16>
    %cst_86 = arith.constant dense<0.000000e+00> : vector<32x128xf32>
    %96 = tpu.matmul %95, %91, %cst_86 {dimension_numbers = #tpu.dot_dimension_numbers<[1], [0], [0], [1], [0, 0, 1, 1], [], []>} : vector<32x128xbf16>, vector<128x128xbf16>, vector<32x128xf32> -> vector<32x128xf32>
    %97 = arith.addf %89, %96 : vector<32x128xf32>
    %c0_87 = arith.constant 0 : index
    %c7_88 = arith.constant 7 : index
    %c0_89 = arith.constant 0 : index
    %c0_90 = arith.constant 0 : index
    %98 = vector.load %arg4[%c0_87, %c7_88, %c0_89, %c0_90] : memref<1x25x128x128xbf16, #tpu.memory_space<vmem>>, vector<1x1x128x128xbf16>
    %99 = vector.shape_cast %98 : vector<1x1x128x128xbf16> to vector<128x128xbf16>
    %c128_91 = arith.constant 128 : index
    %c0_92 = arith.constant 0 : index
    %100 = vector.load %arg11[%c128_91, %c0_92] : memref<576x128xbf16, #tpu.memory_space<vmem>>, vector<32x128xbf16>
    %cst_93 = arith.constant dense<0.000000e+00> : vector<32x128xf32>
    %101 = tpu.matmul %100, %99, %cst_93 {dimension_numbers = #tpu.dot_dimension_numbers<[1], [0], [0], [1], [0, 0, 1, 1], [], []>} : vector<32x128xbf16>, vector<128x128xbf16>, vector<32x128xf32> -> vector<32x128xf32>
    %102 = arith.addf %94, %101 : vector<32x128xf32>
    %c224 = arith.constant 224 : index
    %c0_94 = arith.constant 0 : index
    %103 = vector.load %arg11[%c224, %c0_94] : memref<576x128xbf16, #tpu.memory_space<vmem>>, vector<32x128xbf16>
    %cst_95 = arith.constant dense<0.000000e+00> : vector<32x128xf32>
    %104 = tpu.matmul %103, %99, %cst_95 {dimension_numbers = #tpu.dot_dimension_numbers<[1], [0], [0], [1], [0, 0, 1, 1], [], []>} : vector<32x128xbf16>, vector<128x128xbf16>, vector<32x128xf32> -> vector<32x128xf32>
    %105 = arith.addf %97, %104 : vector<32x128xf32>
    %c0_96 = arith.constant 0 : index
    %c8 = arith.constant 8 : index
    %c0_97 = arith.constant 0 : index
    %c0_98 = arith.constant 0 : index
    %106 = vector.load %arg4[%c0_96, %c8, %c0_97, %c0_98] : memref<1x25x128x128xbf16, #tpu.memory_space<vmem>>, vector<1x1x128x128xbf16>
    %107 = vector.shape_cast %106 : vector<1x1x128x128xbf16> to vector<128x128xbf16>
    %c144_99 = arith.constant 144 : index
    %c0_100 = arith.constant 0 : index
    %108 = vector.load %arg11[%c144_99, %c0_100] : memref<576x128xbf16, #tpu.memory_space<vmem>>, vector<32x128xbf16>
    %cst_101 = arith.constant dense<0.000000e+00> : vector<32x128xf32>
    %109 = tpu.matmul %108, %107, %cst_101 {dimension_numbers = #tpu.dot_dimension_numbers<[1], [0], [0], [1], [0, 0, 1, 1], [], []>} : vector<32x128xbf16>, vector<128x128xbf16>, vector<32x128xf32> -> vector<32x128xf32>
    %110 = arith.addf %102, %109 : vector<32x128xf32>
    %c240 = arith.constant 240 : index
    %c0_102 = arith.constant 0 : index
    %111 = vector.load %arg11[%c240, %c0_102] : memref<576x128xbf16, #tpu.memory_space<vmem>>, vector<32x128xbf16>
    %cst_103 = arith.constant dense<0.000000e+00> : vector<32x128xf32>
    %112 = tpu.matmul %111, %107, %cst_103 {dimension_numbers = #tpu.dot_dimension_numbers<[1], [0], [0], [1], [0, 0, 1, 1], [], []>} : vector<32x128xbf16>, vector<128x128xbf16>, vector<32x128xf32> -> vector<32x128xf32>
    %113 = arith.addf %105, %112 : vector<32x128xf32>
    %c0_104 = arith.constant 0 : index
    %c9 = arith.constant 9 : index
    %c0_105 = arith.constant 0 : index
    %c0_106 = arith.constant 0 : index
    %114 = vector.load %arg4[%c0_104, %c9, %c0_105, %c0_106] : memref<1x25x128x128xbf16, #tpu.memory_space<vmem>>, vector<1x1x128x128xbf16>
    %115 = vector.shape_cast %114 : vector<1x1x128x128xbf16> to vector<128x128xbf16>
    %c160_107 = arith.constant 160 : index
    %c0_108 = arith.constant 0 : index
    %116 = vector.load %arg11[%c160_107, %c0_108] : memref<576x128xbf16, #tpu.memory_space<vmem>>, vector<32x128xbf16>
    %cst_109 = arith.constant dense<0.000000e+00> : vector<32x128xf32>
    %117 = tpu.matmul %116, %115, %cst_109 {dimension_numbers = #tpu.dot_dimension_numbers<[1], [0], [0], [1], [0, 0, 1, 1], [], []>} : vector<32x128xbf16>, vector<128x128xbf16>, vector<32x128xf32> -> vector<32x128xf32>
    %118 = arith.addf %110, %117 : vector<32x128xf32>
    %c256 = arith.constant 256 : index
    %c0_110 = arith.constant 0 : index
    %119 = vector.load %arg11[%c256, %c0_110] : memref<576x128xbf16, #tpu.memory_space<vmem>>, vector<32x128xbf16>
    %cst_111 = arith.constant dense<0.000000e+00> : vector<32x128xf32>
    %120 = tpu.matmul %119, %115, %cst_111 {dimension_numbers = #tpu.dot_dimension_numbers<[1], [0], [0], [1], [0, 0, 1, 1], [], []>} : vector<32x128xbf16>, vector<128x128xbf16>, vector<32x128xf32> -> vector<32x128xf32>
    %121 = arith.addf %113, %120 : vector<32x128xf32>
    %c0_112 = arith.constant 0 : index
    %c10 = arith.constant 10 : index
    %c0_113 = arith.constant 0 : index
    %c0_114 = arith.constant 0 : index
    %122 = vector.load %arg4[%c0_112, %c10, %c0_113, %c0_114] : memref<1x25x128x128xbf16, #tpu.memory_space<vmem>>, vector<1x1x128x128xbf16>
    %123 = vector.shape_cast %122 : vector<1x1x128x128xbf16> to vector<128x128xbf16>
    %c192_115 = arith.constant 192 : index
    %c0_116 = arith.constant 0 : index
    %124 = vector.load %arg11[%c192_115, %c0_116] : memref<576x128xbf16, #tpu.memory_space<vmem>>, vector<32x128xbf16>
    %cst_117 = arith.constant dense<0.000000e+00> : vector<32x128xf32>
    %125 = tpu.matmul %124, %123, %cst_117 {dimension_numbers = #tpu.dot_dimension_numbers<[1], [0], [0], [1], [0, 0, 1, 1], [], []>} : vector<32x128xbf16>, vector<128x128xbf16>, vector<32x128xf32> -> vector<32x128xf32>
    %126 = arith.addf %118, %125 : vector<32x128xf32>
    %c288 = arith.constant 288 : index
    %c0_118 = arith.constant 0 : index
    %127 = vector.load %arg11[%c288, %c0_118] : memref<576x128xbf16, #tpu.memory_space<vmem>>, vector<32x128xbf16>
    %cst_119 = arith.constant dense<0.000000e+00> : vector<32x128xf32>
    %128 = tpu.matmul %127, %123, %cst_119 {dimension_numbers = #tpu.dot_dimension_numbers<[1], [0], [0], [1], [0, 0, 1, 1], [], []>} : vector<32x128xbf16>, vector<128x128xbf16>, vector<32x128xf32> -> vector<32x128xf32>
    %129 = arith.addf %121, %128 : vector<32x128xf32>
    %c0_120 = arith.constant 0 : index
    %c11 = arith.constant 11 : index
    %c0_121 = arith.constant 0 : index
    %c0_122 = arith.constant 0 : index
    %130 = vector.load %arg4[%c0_120, %c11, %c0_121, %c0_122] : memref<1x25x128x128xbf16, #tpu.memory_space<vmem>>, vector<1x1x128x128xbf16>
    %131 = vector.shape_cast %130 : vector<1x1x128x128xbf16> to vector<128x128xbf16>
    %c208_123 = arith.constant 208 : index
    %c0_124 = arith.constant 0 : index
    %132 = vector.load %arg11[%c208_123, %c0_124] : memref<576x128xbf16, #tpu.memory_space<vmem>>, vector<32x128xbf16>
    %cst_125 = arith.constant dense<0.000000e+00> : vector<32x128xf32>
    %133 = tpu.matmul %132, %131, %cst_125 {dimension_numbers = #tpu.dot_dimension_numbers<[1], [0], [0], [1], [0, 0, 1, 1], [], []>} : vector<32x128xbf16>, vector<128x128xbf16>, vector<32x128xf32> -> vector<32x128xf32>
    %134 = arith.addf %126, %133 : vector<32x128xf32>
    %c304 = arith.constant 304 : index
    %c0_126 = arith.constant 0 : index
    %135 = vector.load %arg11[%c304, %c0_126] : memref<576x128xbf16, #tpu.memory_space<vmem>>, vector<32x128xbf16>
    %cst_127 = arith.constant dense<0.000000e+00> : vector<32x128xf32>
    %136 = tpu.matmul %135, %131, %cst_127 {dimension_numbers = #tpu.dot_dimension_numbers<[1], [0], [0], [1], [0, 0, 1, 1], [], []>} : vector<32x128xbf16>, vector<128x128xbf16>, vector<32x128xf32> -> vector<32x128xf32>
    %137 = arith.addf %129, %136 : vector<32x128xf32>
    %c0_128 = arith.constant 0 : index
    %c12 = arith.constant 12 : index
    %c0_129 = arith.constant 0 : index
    %c0_130 = arith.constant 0 : index
    %138 = vector.load %arg4[%c0_128, %c12, %c0_129, %c0_130] : memref<1x25x128x128xbf16, #tpu.memory_space<vmem>>, vector<1x1x128x128xbf16>
    %139 = vector.shape_cast %138 : vector<1x1x128x128xbf16> to vector<128x128xbf16>
    %c224_131 = arith.constant 224 : index
    %c0_132 = arith.constant 0 : index
    %140 = vector.load %arg11[%c224_131, %c0_132] : memref<576x128xbf16, #tpu.memory_space<vmem>>, vector<32x128xbf16>
    %cst_133 = arith.constant dense<0.000000e+00> : vector<32x128xf32>
    %141 = tpu.matmul %140, %139, %cst_133 {dimension_numbers = #tpu.dot_dimension_numbers<[1], [0], [0], [1], [0, 0, 1, 1], [], []>} : vector<32x128xbf16>, vector<128x128xbf16>, vector<32x128xf32> -> vector<32x128xf32>
    %142 = arith.addf %134, %141 : vector<32x128xf32>
    %c320 = arith.constant 320 : index
    %c0_134 = arith.constant 0 : index
    %143 = vector.load %arg11[%c320, %c0_134] : memref<576x128xbf16, #tpu.memory_space<vmem>>, vector<32x128xbf16>
    %cst_135 = arith.constant dense<0.000000e+00> : vector<32x128xf32>
    %144 = tpu.matmul %143, %139, %cst_135 {dimension_numbers = #tpu.dot_dimension_numbers<[1], [0], [0], [1], [0, 0, 1, 1], [], []>} : vector<32x128xbf16>, vector<128x128xbf16>, vector<32x128xf32> -> vector<32x128xf32>
    %145 = arith.addf %137, %144 : vector<32x128xf32>
    %c0_136 = arith.constant 0 : index
    %c13 = arith.constant 13 : index
    %c0_137 = arith.constant 0 : index
    %c0_138 = arith.constant 0 : index
    %146 = vector.load %arg4[%c0_136, %c13, %c0_137, %c0_138] : memref<1x25x128x128xbf16, #tpu.memory_space<vmem>>, vector<1x1x128x128xbf16>
    %147 = vector.shape_cast %146 : vector<1x1x128x128xbf16> to vector<128x128xbf16>
    %c240_139 = arith.constant 240 : index
    %c0_140 = arith.constant 0 : index
    %148 = vector.load %arg11[%c240_139, %c0_140] : memref<576x128xbf16, #tpu.memory_space<vmem>>, vector<32x128xbf16>
    %cst_141 = arith.constant dense<0.000000e+00> : vector<32x128xf32>
    %149 = tpu.matmul %148, %147, %cst_141 {dimension_numbers = #tpu.dot_dimension_numbers<[1], [0], [0], [1], [0, 0, 1, 1], [], []>} : vector<32x128xbf16>, vector<128x128xbf16>, vector<32x128xf32> -> vector<32x128xf32>
    %150 = arith.addf %142, %149 : vector<32x128xf32>
    %c336 = arith.constant 336 : index
    %c0_142 = arith.constant 0 : index
    %151 = vector.load %arg11[%c336, %c0_142] : memref<576x128xbf16, #tpu.memory_space<vmem>>, vector<32x128xbf16>
    %cst_143 = arith.constant dense<0.000000e+00> : vector<32x128xf32>
    %152 = tpu.matmul %151, %147, %cst_143 {dimension_numbers = #tpu.dot_dimension_numbers<[1], [0], [0], [1], [0, 0, 1, 1], [], []>} : vector<32x128xbf16>, vector<128x128xbf16>, vector<32x128xf32> -> vector<32x128xf32>
    %153 = arith.addf %145, %152 : vector<32x128xf32>
    %c0_144 = arith.constant 0 : index
    %c14 = arith.constant 14 : index
    %c0_145 = arith.constant 0 : index
    %c0_146 = arith.constant 0 : index
    %154 = vector.load %arg4[%c0_144, %c14, %c0_145, %c0_146] : memref<1x25x128x128xbf16, #tpu.memory_space<vmem>>, vector<1x1x128x128xbf16>
    %155 = vector.shape_cast %154 : vector<1x1x128x128xbf16> to vector<128x128xbf16>
    %c256_147 = arith.constant 256 : index
    %c0_148 = arith.constant 0 : index
    %156 = vector.load %arg11[%c256_147, %c0_148] : memref<576x128xbf16, #tpu.memory_space<vmem>>, vector<32x128xbf16>
    %cst_149 = arith.constant dense<0.000000e+00> : vector<32x128xf32>
    %157 = tpu.matmul %156, %155, %cst_149 {dimension_numbers = #tpu.dot_dimension_numbers<[1], [0], [0], [1], [0, 0, 1, 1], [], []>} : vector<32x128xbf16>, vector<128x128xbf16>, vector<32x128xf32> -> vector<32x128xf32>
    %158 = arith.addf %150, %157 : vector<32x128xf32>
    %c352 = arith.constant 352 : index
    %c0_150 = arith.constant 0 : index
    %159 = vector.load %arg11[%c352, %c0_150] : memref<576x128xbf16, #tpu.memory_space<vmem>>, vector<32x128xbf16>
    %cst_151 = arith.constant dense<0.000000e+00> : vector<32x128xf32>
    %160 = tpu.matmul %159, %155, %cst_151 {dimension_numbers = #tpu.dot_dimension_numbers<[1], [0], [0], [1], [0, 0, 1, 1], [], []>} : vector<32x128xbf16>, vector<128x128xbf16>, vector<32x128xf32> -> vector<32x128xf32>
    %161 = arith.addf %153, %160 : vector<32x128xf32>
    %c0_152 = arith.constant 0 : index
    %c15 = arith.constant 15 : index
    %c0_153 = arith.constant 0 : index
    %c0_154 = arith.constant 0 : index
    %162 = vector.load %arg4[%c0_152, %c15, %c0_153, %c0_154] : memref<1x25x128x128xbf16, #tpu.memory_space<vmem>>, vector<1x1x128x128xbf16>
    %163 = vector.shape_cast %162 : vector<1x1x128x128xbf16> to vector<128x128xbf16>
    %c288_155 = arith.constant 288 : index
    %c0_156 = arith.constant 0 : index
    %164 = vector.load %arg11[%c288_155, %c0_156] : memref<576x128xbf16, #tpu.memory_space<vmem>>, vector<32x128xbf16>
    %cst_157 = arith.constant dense<0.000000e+00> : vector<32x128xf32>
    %165 = tpu.matmul %164, %163, %cst_157 {dimension_numbers = #tpu.dot_dimension_numbers<[1], [0], [0], [1], [0, 0, 1, 1], [], []>} : vector<32x128xbf16>, vector<128x128xbf16>, vector<32x128xf32> -> vector<32x128xf32>
    %166 = arith.addf %158, %165 : vector<32x128xf32>
    %c384 = arith.constant 384 : index
    %c0_158 = arith.constant 0 : index
    %167 = vector.load %arg11[%c384, %c0_158] : memref<576x128xbf16, #tpu.memory_space<vmem>>, vector<32x128xbf16>
    %cst_159 = arith.constant dense<0.000000e+00> : vector<32x128xf32>
    %168 = tpu.matmul %167, %163, %cst_159 {dimension_numbers = #tpu.dot_dimension_numbers<[1], [0], [0], [1], [0, 0, 1, 1], [], []>} : vector<32x128xbf16>, vector<128x128xbf16>, vector<32x128xf32> -> vector<32x128xf32>
    %169 = arith.addf %161, %168 : vector<32x128xf32>
    %c0_160 = arith.constant 0 : index
    %c16_161 = arith.constant 16 : index
    %c0_162 = arith.constant 0 : index
    %c0_163 = arith.constant 0 : index
    %170 = vector.load %arg4[%c0_160, %c16_161, %c0_162, %c0_163] : memref<1x25x128x128xbf16, #tpu.memory_space<vmem>>, vector<1x1x128x128xbf16>
    %171 = vector.shape_cast %170 : vector<1x1x128x128xbf16> to vector<128x128xbf16>
    %c304_164 = arith.constant 304 : index
    %c0_165 = arith.constant 0 : index
    %172 = vector.load %arg11[%c304_164, %c0_165] : memref<576x128xbf16, #tpu.memory_space<vmem>>, vector<32x128xbf16>
    %cst_166 = arith.constant dense<0.000000e+00> : vector<32x128xf32>
    %173 = tpu.matmul %172, %171, %cst_166 {dimension_numbers = #tpu.dot_dimension_numbers<[1], [0], [0], [1], [0, 0, 1, 1], [], []>} : vector<32x128xbf16>, vector<128x128xbf16>, vector<32x128xf32> -> vector<32x128xf32>
    %174 = arith.addf %166, %173 : vector<32x128xf32>
    %c400 = arith.constant 400 : index
    %c0_167 = arith.constant 0 : index
    %175 = vector.load %arg11[%c400, %c0_167] : memref<576x128xbf16, #tpu.memory_space<vmem>>, vector<32x128xbf16>
    %cst_168 = arith.constant dense<0.000000e+00> : vector<32x128xf32>
    %176 = tpu.matmul %175, %171, %cst_168 {dimension_numbers = #tpu.dot_dimension_numbers<[1], [0], [0], [1], [0, 0, 1, 1], [], []>} : vector<32x128xbf16>, vector<128x128xbf16>, vector<32x128xf32> -> vector<32x128xf32>
    %177 = arith.addf %169, %176 : vector<32x128xf32>
    %c0_169 = arith.constant 0 : index
    %c17 = arith.constant 17 : index
    %c0_170 = arith.constant 0 : index
    %c0_171 = arith.constant 0 : index
    %178 = vector.load %arg4[%c0_169, %c17, %c0_170, %c0_171] : memref<1x25x128x128xbf16, #tpu.memory_space<vmem>>, vector<1x1x128x128xbf16>
    %179 = vector.shape_cast %178 : vector<1x1x128x128xbf16> to vector<128x128xbf16>
    %c320_172 = arith.constant 320 : index
    %c0_173 = arith.constant 0 : index
    %180 = vector.load %arg11[%c320_172, %c0_173] : memref<576x128xbf16, #tpu.memory_space<vmem>>, vector<32x128xbf16>
    %cst_174 = arith.constant dense<0.000000e+00> : vector<32x128xf32>
    %181 = tpu.matmul %180, %179, %cst_174 {dimension_numbers = #tpu.dot_dimension_numbers<[1], [0], [0], [1], [0, 0, 1, 1], [], []>} : vector<32x128xbf16>, vector<128x128xbf16>, vector<32x128xf32> -> vector<32x128xf32>
    %182 = arith.addf %174, %181 : vector<32x128xf32>
    %c416 = arith.constant 416 : index
    %c0_175 = arith.constant 0 : index
    %183 = vector.load %arg11[%c416, %c0_175] : memref<576x128xbf16, #tpu.memory_space<vmem>>, vector<32x128xbf16>
    %cst_176 = arith.constant dense<0.000000e+00> : vector<32x128xf32>
    %184 = tpu.matmul %183, %179, %cst_176 {dimension_numbers = #tpu.dot_dimension_numbers<[1], [0], [0], [1], [0, 0, 1, 1], [], []>} : vector<32x128xbf16>, vector<128x128xbf16>, vector<32x128xf32> -> vector<32x128xf32>
    %185 = arith.addf %177, %184 : vector<32x128xf32>
    %c0_177 = arith.constant 0 : index
    %c18 = arith.constant 18 : index
    %c0_178 = arith.constant 0 : index
    %c0_179 = arith.constant 0 : index
    %186 = vector.load %arg4[%c0_177, %c18, %c0_178, %c0_179] : memref<1x25x128x128xbf16, #tpu.memory_space<vmem>>, vector<1x1x128x128xbf16>
    %187 = vector.shape_cast %186 : vector<1x1x128x128xbf16> to vector<128x128xbf16>
    %c336_180 = arith.constant 336 : index
    %c0_181 = arith.constant 0 : index
    %188 = vector.load %arg11[%c336_180, %c0_181] : memref<576x128xbf16, #tpu.memory_space<vmem>>, vector<32x128xbf16>
    %cst_182 = arith.constant dense<0.000000e+00> : vector<32x128xf32>
    %189 = tpu.matmul %188, %187, %cst_182 {dimension_numbers = #tpu.dot_dimension_numbers<[1], [0], [0], [1], [0, 0, 1, 1], [], []>} : vector<32x128xbf16>, vector<128x128xbf16>, vector<32x128xf32> -> vector<32x128xf32>
    %190 = arith.addf %182, %189 : vector<32x128xf32>
    %c432 = arith.constant 432 : index
    %c0_183 = arith.constant 0 : index
    %191 = vector.load %arg11[%c432, %c0_183] : memref<576x128xbf16, #tpu.memory_space<vmem>>, vector<32x128xbf16>
    %cst_184 = arith.constant dense<0.000000e+00> : vector<32x128xf32>
    %192 = tpu.matmul %191, %187, %cst_184 {dimension_numbers = #tpu.dot_dimension_numbers<[1], [0], [0], [1], [0, 0, 1, 1], [], []>} : vector<32x128xbf16>, vector<128x128xbf16>, vector<32x128xf32> -> vector<32x128xf32>
    %193 = arith.addf %185, %192 : vector<32x128xf32>
    %c0_185 = arith.constant 0 : index
    %c19 = arith.constant 19 : index
    %c0_186 = arith.constant 0 : index
    %c0_187 = arith.constant 0 : index
    %194 = vector.load %arg4[%c0_185, %c19, %c0_186, %c0_187] : memref<1x25x128x128xbf16, #tpu.memory_space<vmem>>, vector<1x1x128x128xbf16>
    %195 = vector.shape_cast %194 : vector<1x1x128x128xbf16> to vector<128x128xbf16>
    %c352_188 = arith.constant 352 : index
    %c0_189 = arith.constant 0 : index
    %196 = vector.load %arg11[%c352_188, %c0_189] : memref<576x128xbf16, #tpu.memory_space<vmem>>, vector<32x128xbf16>
    %cst_190 = arith.constant dense<0.000000e+00> : vector<32x128xf32>
    %197 = tpu.matmul %196, %195, %cst_190 {dimension_numbers = #tpu.dot_dimension_numbers<[1], [0], [0], [1], [0, 0, 1, 1], [], []>} : vector<32x128xbf16>, vector<128x128xbf16>, vector<32x128xf32> -> vector<32x128xf32>
    %198 = arith.addf %190, %197 : vector<32x128xf32>
    %c448 = arith.constant 448 : index
    %c0_191 = arith.constant 0 : index
    %199 = vector.load %arg11[%c448, %c0_191] : memref<576x128xbf16, #tpu.memory_space<vmem>>, vector<32x128xbf16>
    %cst_192 = arith.constant dense<0.000000e+00> : vector<32x128xf32>
    %200 = tpu.matmul %199, %195, %cst_192 {dimension_numbers = #tpu.dot_dimension_numbers<[1], [0], [0], [1], [0, 0, 1, 1], [], []>} : vector<32x128xbf16>, vector<128x128xbf16>, vector<32x128xf32> -> vector<32x128xf32>
    %201 = arith.addf %193, %200 : vector<32x128xf32>
    %c0_193 = arith.constant 0 : index
    %c20 = arith.constant 20 : index
    %c0_194 = arith.constant 0 : index
    %c0_195 = arith.constant 0 : index
    %202 = vector.load %arg4[%c0_193, %c20, %c0_194, %c0_195] : memref<1x25x128x128xbf16, #tpu.memory_space<vmem>>, vector<1x1x128x128xbf16>
    %203 = vector.shape_cast %202 : vector<1x1x128x128xbf16> to vector<128x128xbf16>
    %c384_196 = arith.constant 384 : index
    %c0_197 = arith.constant 0 : index
    %204 = vector.load %arg11[%c384_196, %c0_197] : memref<576x128xbf16, #tpu.memory_space<vmem>>, vector<32x128xbf16>
    %cst_198 = arith.constant dense<0.000000e+00> : vector<32x128xf32>
    %205 = tpu.matmul %204, %203, %cst_198 {dimension_numbers = #tpu.dot_dimension_numbers<[1], [0], [0], [1], [0, 0, 1, 1], [], []>} : vector<32x128xbf16>, vector<128x128xbf16>, vector<32x128xf32> -> vector<32x128xf32>
    %206 = arith.addf %198, %205 : vector<32x128xf32>
    %c480 = arith.constant 480 : index
    %c0_199 = arith.constant 0 : index
    %207 = vector.load %arg11[%c480, %c0_199] : memref<576x128xbf16, #tpu.memory_space<vmem>>, vector<32x128xbf16>
    %cst_200 = arith.constant dense<0.000000e+00> : vector<32x128xf32>
    %208 = tpu.matmul %207, %203, %cst_200 {dimension_numbers = #tpu.dot_dimension_numbers<[1], [0], [0], [1], [0, 0, 1, 1], [], []>} : vector<32x128xbf16>, vector<128x128xbf16>, vector<32x128xf32> -> vector<32x128xf32>
    %209 = arith.addf %201, %208 : vector<32x128xf32>
    %c0_201 = arith.constant 0 : index
    %c21 = arith.constant 21 : index
    %c0_202 = arith.constant 0 : index
    %c0_203 = arith.constant 0 : index
    %210 = vector.load %arg4[%c0_201, %c21, %c0_202, %c0_203] : memref<1x25x128x128xbf16, #tpu.memory_space<vmem>>, vector<1x1x128x128xbf16>
    %211 = vector.shape_cast %210 : vector<1x1x128x128xbf16> to vector<128x128xbf16>
    %c400_204 = arith.constant 400 : index
    %c0_205 = arith.constant 0 : index
    %212 = vector.load %arg11[%c400_204, %c0_205] : memref<576x128xbf16, #tpu.memory_space<vmem>>, vector<32x128xbf16>
    %cst_206 = arith.constant dense<0.000000e+00> : vector<32x128xf32>
    %213 = tpu.matmul %212, %211, %cst_206 {dimension_numbers = #tpu.dot_dimension_numbers<[1], [0], [0], [1], [0, 0, 1, 1], [], []>} : vector<32x128xbf16>, vector<128x128xbf16>, vector<32x128xf32> -> vector<32x128xf32>
    %214 = arith.addf %206, %213 : vector<32x128xf32>
    %c496 = arith.constant 496 : index
    %c0_207 = arith.constant 0 : index
    %215 = vector.load %arg11[%c496, %c0_207] : memref<576x128xbf16, #tpu.memory_space<vmem>>, vector<32x128xbf16>
    %cst_208 = arith.constant dense<0.000000e+00> : vector<32x128xf32>
    %216 = tpu.matmul %215, %211, %cst_208 {dimension_numbers = #tpu.dot_dimension_numbers<[1], [0], [0], [1], [0, 0, 1, 1], [], []>} : vector<32x128xbf16>, vector<128x128xbf16>, vector<32x128xf32> -> vector<32x128xf32>
    %217 = arith.addf %209, %216 : vector<32x128xf32>
    %c0_209 = arith.constant 0 : index
    %c22 = arith.constant 22 : index
    %c0_210 = arith.constant 0 : index
    %c0_211 = arith.constant 0 : index
    %218 = vector.load %arg4[%c0_209, %c22, %c0_210, %c0_211] : memref<1x25x128x128xbf16, #tpu.memory_space<vmem>>, vector<1x1x128x128xbf16>
    %219 = vector.shape_cast %218 : vector<1x1x128x128xbf16> to vector<128x128xbf16>
    %c416_212 = arith.constant 416 : index
    %c0_213 = arith.constant 0 : index
    %220 = vector.load %arg11[%c416_212, %c0_213] : memref<576x128xbf16, #tpu.memory_space<vmem>>, vector<32x128xbf16>
    %cst_214 = arith.constant dense<0.000000e+00> : vector<32x128xf32>
    %221 = tpu.matmul %220, %219, %cst_214 {dimension_numbers = #tpu.dot_dimension_numbers<[1], [0], [0], [1], [0, 0, 1, 1], [], []>} : vector<32x128xbf16>, vector<128x128xbf16>, vector<32x128xf32> -> vector<32x128xf32>
    %222 = arith.addf %214, %221 : vector<32x128xf32>
    %c512 = arith.constant 512 : index
    %c0_215 = arith.constant 0 : index
    %223 = vector.load %arg11[%c512, %c0_215] : memref<576x128xbf16, #tpu.memory_space<vmem>>, vector<32x128xbf16>
    %cst_216 = arith.constant dense<0.000000e+00> : vector<32x128xf32>
    %224 = tpu.matmul %223, %219, %cst_216 {dimension_numbers = #tpu.dot_dimension_numbers<[1], [0], [0], [1], [0, 0, 1, 1], [], []>} : vector<32x128xbf16>, vector<128x128xbf16>, vector<32x128xf32> -> vector<32x128xf32>
    %225 = arith.addf %217, %224 : vector<32x128xf32>
    %c0_217 = arith.constant 0 : index
    %c23 = arith.constant 23 : index
    %c0_218 = arith.constant 0 : index
    %c0_219 = arith.constant 0 : index
    %226 = vector.load %arg4[%c0_217, %c23, %c0_218, %c0_219] : memref<1x25x128x128xbf16, #tpu.memory_space<vmem>>, vector<1x1x128x128xbf16>
    %227 = vector.shape_cast %226 : vector<1x1x128x128xbf16> to vector<128x128xbf16>
    %c432_220 = arith.constant 432 : index
    %c0_221 = arith.constant 0 : index
    %228 = vector.load %arg11[%c432_220, %c0_221] : memref<576x128xbf16, #tpu.memory_space<vmem>>, vector<32x128xbf16>
    %cst_222 = arith.constant dense<0.000000e+00> : vector<32x128xf32>
    %229 = tpu.matmul %228, %227, %cst_222 {dimension_numbers = #tpu.dot_dimension_numbers<[1], [0], [0], [1], [0, 0, 1, 1], [], []>} : vector<32x128xbf16>, vector<128x128xbf16>, vector<32x128xf32> -> vector<32x128xf32>
    %230 = arith.addf %222, %229 : vector<32x128xf32>
    %c528 = arith.constant 528 : index
    %c0_223 = arith.constant 0 : index
    %231 = vector.load %arg11[%c528, %c0_223] : memref<576x128xbf16, #tpu.memory_space<vmem>>, vector<32x128xbf16>
    %cst_224 = arith.constant dense<0.000000e+00> : vector<32x128xf32>
    %232 = tpu.matmul %231, %227, %cst_224 {dimension_numbers = #tpu.dot_dimension_numbers<[1], [0], [0], [1], [0, 0, 1, 1], [], []>} : vector<32x128xbf16>, vector<128x128xbf16>, vector<32x128xf32> -> vector<32x128xf32>
    %233 = arith.addf %225, %232 : vector<32x128xf32>
    %c0_225 = arith.constant 0 : index
    %c24 = arith.constant 24 : index
    %c0_226 = arith.constant 0 : index
    %c0_227 = arith.constant 0 : index
    %234 = vector.load %arg4[%c0_225, %c24, %c0_226, %c0_227] : memref<1x25x128x128xbf16, #tpu.memory_space<vmem>>, vector<1x1x128x128xbf16>
    %235 = vector.shape_cast %234 : vector<1x1x128x128xbf16> to vector<128x128xbf16>
    %c448_228 = arith.constant 448 : index
    %c0_229 = arith.constant 0 : index
    %236 = vector.load %arg11[%c448_228, %c0_229] : memref<576x128xbf16, #tpu.memory_space<vmem>>, vector<32x128xbf16>
    %cst_230 = arith.constant dense<0.000000e+00> : vector<32x128xf32>
    %237 = tpu.matmul %236, %235, %cst_230 {dimension_numbers = #tpu.dot_dimension_numbers<[1], [0], [0], [1], [0, 0, 1, 1], [], []>} : vector<32x128xbf16>, vector<128x128xbf16>, vector<32x128xf32> -> vector<32x128xf32>
    %238 = arith.addf %230, %237 : vector<32x128xf32>
    %c544 = arith.constant 544 : index
    %c0_231 = arith.constant 0 : index
    %239 = vector.load %arg11[%c544, %c0_231] : memref<576x128xbf16, #tpu.memory_space<vmem>>, vector<32x128xbf16>
    %cst_232 = arith.constant dense<0.000000e+00> : vector<32x128xf32>
    %240 = tpu.matmul %239, %235, %cst_232 {dimension_numbers = #tpu.dot_dimension_numbers<[1], [0], [0], [1], [0, 0, 1, 1], [], []>} : vector<32x128xbf16>, vector<128x128xbf16>, vector<32x128xf32> -> vector<32x128xf32>
    %241 = arith.addf %233, %240 : vector<32x128xf32>
    %242 = vector.extract_strided_slice %238 {offsets = [0, 0], sizes = [16, 128], strides = [1, 1]} : vector<32x128xf32> to vector<16x128xf32>
    %243 = vector.extract_strided_slice %238 {offsets = [16, 0], sizes = [16, 128], strides = [1, 1]} : vector<32x128xf32> to vector<16x128xf32>
    %244 = arith.maximumf %242, %243 : vector<16x128xf32>
    %245 = vector.extract_strided_slice %241 {offsets = [0, 0], sizes = [16, 128], strides = [1, 1]} : vector<32x128xf32> to vector<16x128xf32>
    %246 = vector.extract_strided_slice %241 {offsets = [16, 0], sizes = [16, 128], strides = [1, 1]} : vector<32x128xf32> to vector<16x128xf32>
    %247 = arith.maximumf %245, %246 : vector<16x128xf32>
    %248 = arith.maximumf %244, %247 : vector<16x128xf32>
    %249 = vector.broadcast %5 : vector<1x128xf32> to vector<16x128xf32>
    %250 = arith.mulf %248, %249 : vector<16x128xf32>
    %251 = vector.broadcast %7 : vector<1x128xf32> to vector<16x128xf32>
    %252 = arith.addf %250, %251 : vector<16x128xf32>
    %cst_233 = arith.constant 0.000000e+00 : f32
    %253 = vector.broadcast %cst_233 : f32 to vector<16x128xf32>
    %254 = arith.subf %253, %252 : vector<16x128xf32>
    %255 = math.exp %254 : vector<16x128xf32>
    %cst_234 = arith.constant 1.000000e+00 : f32
    %256 = vector.broadcast %cst_234 : f32 to vector<16x128xf32>
    %257 = arith.addf %256, %255 : vector<16x128xf32>
    %258 = tpu.reciprocal %257 {approx = true} : vector<16x128xf32> -> vector<16x128xf32>
    %259 = arith.truncf %258 : vector<16x128xf32> to vector<16x128xbf16>
    %c0_235 = arith.constant 0 : index
    %c0_236 = arith.constant 0 : index
    %c0_237 = arith.constant 0 : index
    %260 = vector.load %arg5[%c0_235, %c0_236, %c0_237] : memref<1x128x128xbf16, #tpu.memory_space<vmem>>, vector<1x128x128xbf16>
    %261 = vector.shape_cast %260 : vector<1x128x128xbf16> to vector<128x128xbf16>
    %cst_238 = arith.constant dense<0.000000e+00> : vector<16x128xf32>
    %262 = tpu.matmul %259, %261, %cst_238 {dimension_numbers = #tpu.dot_dimension_numbers<[1], [0], [0], [1], [0, 0, 1, 1], [], []>} : vector<16x128xbf16>, vector<128x128xbf16>, vector<16x128xf32> -> vector<16x128xf32>
    %263 = vector.broadcast %9 : vector<1x128xf32> to vector<16x128xf32>
    %264 = arith.mulf %262, %263 : vector<16x128xf32>
    %265 = vector.broadcast %11 : vector<1x128xf32> to vector<16x128xf32>
    %266 = arith.addf %264, %265 : vector<16x128xf32>
    %cst_239 = arith.constant 0.000000e+00 : f32
    %267 = vector.broadcast %cst_239 : f32 to vector<16x128xf32>
    %268 = arith.subf %267, %266 : vector<16x128xf32>
    %269 = math.exp %268 : vector<16x128xf32>
    %cst_240 = arith.constant 1.000000e+00 : f32
    %270 = vector.broadcast %cst_240 : f32 to vector<16x128xf32>
    %271 = arith.addf %270, %269 : vector<16x128xf32>
    %272 = tpu.reciprocal %271 {approx = true} : vector<16x128xf32> -> vector<16x128xf32>
    %273 = arith.truncf %272 : vector<16x128xf32> to vector<16x128xbf16>
    %c0_241 = arith.constant 0 : index
    %c0_242 = arith.constant 0 : index
    %c0_243 = arith.constant 0 : index
    %274 = vector.load %arg6[%c0_241, %c0_242, %c0_243] : memref<1x128x128xbf16, #tpu.memory_space<vmem>>, vector<1x128x128xbf16>
    %275 = vector.shape_cast %274 : vector<1x128x128xbf16> to vector<128x128xbf16>
    %cst_244 = arith.constant dense<0.000000e+00> : vector<16x128xf32>
    %276 = tpu.matmul %273, %275, %cst_244 {dimension_numbers = #tpu.dot_dimension_numbers<[1], [0], [0], [1], [0, 0, 1, 1], [], []>} : vector<16x128xbf16>, vector<128x128xbf16>, vector<16x128xf32> -> vector<16x128xf32>
    %277 = vector.broadcast %13 : vector<1x128xf32> to vector<16x128xf32>
    %278 = arith.mulf %276, %277 : vector<16x128xf32>
    %279 = vector.broadcast %15 : vector<1x128xf32> to vector<16x128xf32>
    %280 = arith.addf %278, %279 : vector<16x128xf32>
    %cst_245 = arith.constant 0.000000e+00 : f32
    %281 = vector.broadcast %cst_245 : f32 to vector<16x128xf32>
    %282 = arith.subf %281, %280 : vector<16x128xf32>
    %283 = math.exp %282 : vector<16x128xf32>
    %cst_246 = arith.constant 1.000000e+00 : f32
    %284 = vector.broadcast %cst_246 : f32 to vector<16x128xf32>
    %285 = arith.addf %284, %283 : vector<16x128xf32>
    %286 = tpu.reciprocal %285 {approx = true} : vector<16x128xf32> -> vector<16x128xf32>
    %287 = arith.truncf %286 : vector<16x128xf32> to vector<16x128xbf16>
    %c0_247 = arith.constant 0 : index
    %c0_248 = arith.constant 0 : index
    %c0_249 = arith.constant 0 : index
    %288 = vector.load %arg7[%c0_247, %c0_248, %c0_249] : memref<1x128x4xbf16, #tpu.memory_space<vmem>>, vector<1x128x4xbf16>
    %289 = vector.shape_cast %288 : vector<1x128x4xbf16> to vector<128x4xbf16>
    %cst_250 = arith.constant dense<0.000000e+00> : vector<16x4xf32>
    %290 = tpu.matmul %287, %289, %cst_250 {dimension_numbers = #tpu.dot_dimension_numbers<[1], [0], [0], [1], [0, 0, 1, 1], [], []>} : vector<16x128xbf16>, vector<128x4xbf16>, vector<16x4xf32> -> vector<16x4xf32>
    %c0_251 = arith.constant 0 : index
    %c0_252 = arith.constant 0 : index
    %c0_253 = arith.constant 0 : index
    %291 = vector.load %arg9[%c0_251, %c0_252, %c0_253] : memref<1x1x4xf32, #tpu.memory_space<vmem>>, vector<1x1x4xf32>
    %292 = vector.shape_cast %291 : vector<1x1x4xf32> to vector<1x4xf32>
    %293 = vector.broadcast %292 : vector<1x4xf32> to vector<16x4xf32>
    %294 = arith.addf %290, %293 : vector<16x4xf32>
    %c0_254 = arith.constant 0 : index
    %c0_255 = arith.constant 0 : index
    %c0_256 = arith.constant 0 : index
    %c0_257 = arith.constant 0 : index
    %295 = vector.load %arg10[%c0_254, %c0_255, %c0_256, %c0_257] : memref<1x1x16x4xf32, #tpu.memory_space<vmem>>, vector<1x1x16x4xf32>
    %296 = vector.shape_cast %295 : vector<1x1x16x4xf32> to vector<16x4xf32>
    %297 = vector.shape_cast %294 : vector<16x4xf32> to vector<1x1x16x4xf32>
    tpu.vector_store %arg10[%c0_254, %c0_255, %c0_256, %c0_257], %297 {strides = array<i32>} : memref<1x1x16x4xf32, #tpu.memory_space<vmem>>, vector<1x1x16x4xf32>,
    return
  }
  func.func @transform_0(%arg0: i32, %arg1: i32) -> (i32, i32, i32) {
    %c0_i32 = arith.constant 0 : i32
    %c0_i32_0 = arith.constant 0 : i32
    %c0_i32_1 = arith.constant 0 : i32
    return %arg1, %c0_i32, %c0_i32_0 : i32, i32, i32
  }
  func.func @transform_1(%arg0: i32, %arg1: i32) -> (i32, i32, i32) {
    %c0_i32 = arith.constant 0 : i32
    %c0_i32_0 = arith.constant 0 : i32
    %c0_i32_1 = arith.constant 0 : i32
    return %arg0, %c0_i32, %c0_i32_0 : i32, i32, i32
  }
  func.func @transform_2(%arg0: i32, %arg1: i32) -> (i32, i32, i32, i32) {
    %c0_i32 = arith.constant 0 : i32
    %c0_i32_0 = arith.constant 0 : i32
    %c0_i32_1 = arith.constant 0 : i32
    %c0_i32_2 = arith.constant 0 : i32
    return %arg0, %c0_i32, %c0_i32_0, %c0_i32_1 : i32, i32, i32, i32
  }
  func.func @transform_3(%arg0: i32, %arg1: i32) -> (i32, i32, i32) {
    %c0_i32 = arith.constant 0 : i32
    %c0_i32_0 = arith.constant 0 : i32
    %c0_i32_1 = arith.constant 0 : i32
    return %arg0, %c0_i32, %c0_i32_0 : i32, i32, i32
  }
  func.func @transform_4(%arg0: i32, %arg1: i32) -> (i32, i32, i32) {
    %c0_i32 = arith.constant 0 : i32
    %c0_i32_0 = arith.constant 0 : i32
    %c0_i32_1 = arith.constant 0 : i32
    return %arg0, %c0_i32, %c0_i32_0 : i32, i32, i32
  }
  func.func @transform_5(%arg0: i32, %arg1: i32) -> (i32, i32, i32) {
    %c0_i32 = arith.constant 0 : i32
    %c0_i32_0 = arith.constant 0 : i32
    %c0_i32_1 = arith.constant 0 : i32
    return %arg0, %c0_i32, %c0_i32_0 : i32, i32, i32
  }
  func.func @transform_6(%arg0: i32, %arg1: i32) -> (i32, i32, i32) {
    %c0_i32 = arith.constant 0 : i32
    %c0_i32_0 = arith.constant 0 : i32
    %c0_i32_1 = arith.constant 0 : i32
    return %arg0, %c0_i32, %c0_i32_0 : i32, i32, i32
  }
  func.func @transform_7(%arg0: i32, %arg1: i32) -> (i32, i32, i32) {
    %c0_i32 = arith.constant 0 : i32
    %c0_i32_0 = arith.constant 0 : i32
    %c0_i32_1 = arith.constant 0 : i32
    return %arg0, %c0_i32, %c0_i32_0 : i32, i32, i32
  }
  func.func @transform_8(%arg0: i32, %arg1: i32) -> (i32, i32, i32, i32) {
    %c0_i32 = arith.constant 0 : i32
    %c0_i32_0 = arith.constant 0 : i32
    %c0_i32_1 = arith.constant 0 : i32
    return %arg0, %arg1, %c0_i32, %c0_i32_0 : i32, i32, i32, i32
  }
}

</mosaic_0001>

<bundles_post_ra>
// kernel: rf_cnn_forward.1
= control target key start
LH: loop header
LB: loop body
LE: loop exit
PB: predicated region body
PF: predicated region fallthrough
CT: control target
= control target key end

     0   :  { %s10557_s27 = smov 0   ;;  %s10559_s28 = smov 0   ;;  %s12927_s0 = inlined_call_operand.vmem [shape: bf16[1,2304,32], index: 0, kind: input, shape index: {}]   ;;  %s12928_s1 = inlined_call_operand.vmem [shape: bf16[2,32,128], index: 1, kind: input, shape index: {}]   ;;  %s12929_s2 = inlined_call_operand.vmem [shape: bf16[2,25,128,128], index: 2, kind: input, shape index: {}]   ;;  %s12930_s3 = inlined_call_operand.vmem [shape: bf16[2,128,128], index: 3, kind: input, shape index: {}]   ;;  %s12931_s4 = inlined_call_operand.vmem [shape: bf16[2,128,128], index: 4, kind: input, shape index: {}]   ;;  %s12932_s5 = inlined_call_operand.vmem [shape: bf16[2,128,4], index: 5, kind: input, shape index: {}]   ;;  %s12933_s6 = inlined_call_operand.vmem [shape: f32[2,8,128], index: 6, kind: input, shape index: {}]   ;;  %s12934_s7 = inlined_call_operand.vmem [shape: f32[2,1,4], index: 7, kind: input, shape index: {}]   ;;  %s12935_s8 = inlined_call_operand.vmem [shape: f32[2,1,16,4], index: 8, kind: output, shape index: {}]  }
   0x1   :  { %s10561_s29 = smov 0  }
   0x2 LB: > { %s30_s30 = sadd.s32 1, %s10506_s28  ;;  %p7221_p0 = scmp.ge.s32.totalorder %s10510_s29, 1  ;;  %s10510_s29 = sphi %s10561_s29, %s18_s29   ;;  %s10506_s28 = sphi %s10559_s28, %s13194_s28   ;;  %s10502_s27 = sphi %s10557_s27, %s13193_s27  }
   0x3   : > { %p32_p1 = scmp.ge.s32.totalorder %s30_s30, 2  ;;  %p343_p2 = scmp.lt.s32.totalorder %s10510_s29, 3 }
   0x5   : > { %s13196_s30 = smov (%p32_p1, %s30_s30), 0  ;;  %p344_p3 = pnand %p7221_p0, %p343_p2 }
   0x7   : > { %347 = sbr.rel (%p344_p3) target bundleno = 2024 (0x7e8), region = 52 }
   0xc   : > { %p418_p4 = scmp.lt.s32.totalorder %s10502_s27, 1  ;;  %v9485_v2 = vld [vmem:[%s12927_s0] sm:$0xff]  ;;  %vm1492_vm0 = vcmask 261120   ;;  %v9486_v3 = vld [vmem:[%s12927_s0 + $0x8] sm:$0xff]  ;;  %v9487_v4 = vld [vmem:[%s12927_s0 + $0x10] sm:$0xff]  ;;  %vm7045_vm1 = vcmask 31744  }
   0xd   : > { %v9488_v5 = vld [vmem:[%s12927_s0 + $0x18] sm:$0xff]  ;;  %v9599_v6 = vld [vmem:[%s12927_s0 + $0x390] sm:$0xff]  ;;  %v9489_v7 = vld [vmem:[%s12927_s0 + $0x20] sm:$0xff] }
   0xe   : > { %s13198_s27 = smov (!%p418_p4, %s10502_s27), 1  ;;  %v9600_v8 = vld [vmem:[%s12927_s0 + $0x398] sm:$0xff]  ;;  %v9490_v9 = vld [vmem:[%s12927_s0 + $0x28] sm:$0xff]  ;;  %v9601_v10 = vld [vmem:[%s12927_s0 + $0x3a0] sm:$0xff] }
   0xf   : > { %s9480_s9 = sshll.u32 %s13198_s27, 4  ;;  %s7231_s13 = sshll.u32 %s13198_s27, 3  ;;  %v9491_v11 = vld [vmem:[%s12927_s0 + $0x30] sm:$0xff]  ;;  %v9602_v12 = vld [vmem:[%s12927_s0 + $0x3a8] sm:$0xff]  ;;  %v9548_v13 = vld [vmem:[%s12927_s0 + $0x1f8] sm:$0xff] }
  0x10   : > { %s422_s12 = scalar_lea.vmem %s12928_s1, %s9480_s9  ;;  %s10587_s16 = scalar_lea.vmem %s12933_s6, %s7231_s13  ;;  %v9492_v14 = vld [vmem:[%s12927_s0 + $0x38] sm:$0xff]  ;;  %v9603_v15 = vld [vmem:[%s12927_s0 + $0x3b0] sm:$0xff]  ;;  %v9549_v16 = vld [vmem:[%s12927_s0 + $0x200] sm:$0xff] }
  0x11   : > { %v9630_v0 = vld [vmem:[%s422_s12 + $0x8] sm:$0xff]  ;;  %v9629_v1 = vld [vmem:[%s422_s12] sm:$0xff]  ;;  %v9604_v20 = vld [vmem:[%s12927_s0 + $0x3b8] sm:$0xff]  ;;  %s10135_s21 = smul.u32 1600, %s13198_s27  ;;  %s449_s23 = scalar_lea.vmem %s12934_s7, %s13198_s27 }
  0x12   : > { %1931 = vmatpush.bf16.msra.mxu0 %v9630_v0  ;;  %10131 = vmatpush.bf16.msra.mxu3 %v9630_v0  ;;  %v9493_v17 = vld [vmem:[%s12927_s0 + $0x40] sm:$0xff]  ;;  %v9550_v21 = vld [vmem:[%s12927_s0 + $0x208] sm:$0xff]  ;;  %v9551_v26 = vld [vmem:[%s12927_s0 + $0x210] sm:$0xff] }
  0x13   : > { %10129 = vmatpush.bf16.msra.mxu1 %v9630_v0  ;;  %10130 = vmatpush.bf16.msra.mxu2 %v9630_v0  ;;  %v9494_v22 = vld [vmem:[%s12927_s0 + $0x48] sm:$0xff]  ;;  %v9605_v25 = vld [vmem:[%s12927_s0 + $0x3c0] sm:$0xff]  ;;  %v9495_v27 = vld [vmem:[%s12927_s0 + $0x50] sm:$0xff]  ;;  %s10979_s24 = scalar_lea.vmem %s12929_s2, %s10135_s21 }
  0x14   : > { %v9606_v30 = vld [vmem:[%s12927_s0 + $0x3c8] sm:$0xff]  ;;  %v9552_v31 = vld [vmem:[%s12927_s0 + $0x218] sm:$0xff]  ;;  %v9607_v35 = vld [vmem:[%s12927_s0 + $0x3d0] sm:$0xff] }
  0x15   : > { %v9496_v32 = vld [vmem:[%s12927_s0 + $0x58] sm:$0xff]  ;;  %v9553_v36 = vld [vmem:[%s12927_s0 + $0x220] sm:$0xff]  ;;  %v9554_v43 = vld [vmem:[%s12927_s0 + $0x228] sm:$0xff] }
  0x16   : > { %1932 = vmatpush.bf16.msra.mxu0 %v9629_v1  ;;  %10134 = vmatpush.bf16.msra.mxu3 %v9629_v1  ;;  %v9497_v37 = vld [vmem:[%s12927_s0 + $0x60] sm:$0xff]  ;;  %v9608_v42 = vld [vmem:[%s12927_s0 + $0x3d8] sm:$0xff]  ;;  %v9498_v44 = vld [vmem:[%s12927_s0 + $0x68] sm:$0xff] }
  0x17   : > { %10132 = vmatpush.bf16.msra.mxu1 %v9629_v1  ;;  %10133 = vmatpush.bf16.msra.mxu2 %v9629_v1  ;;  %v9575_v49 = vld [vmem:[%s12927_s0 + $0x2d0] sm:$0xff]  ;;  %v9609_v50 = vld [vmem:[%s12927_s0 + $0x3e0] sm:$0xff]  ;;  %v9576_v57 = vld [vmem:[%s12927_s0 + $0x2d8] sm:$0xff] }
  0x18   : > { %v9555_v51 = vld [vmem:[%s12927_s0 + $0x230] sm:$0xff]  ;;  %v9610_v58 = vld [vmem:[%s12927_s0 + $0x3e8] sm:$0xff]  ;;  %v9556_v59 = vld [vmem:[%s12927_s0 + $0x238] sm:$0xff] }
  0x19   : > { %7818 = vmatmul.msk.bf16.vlgmr.msra.gmra.mxu0 %vm1492_vm0, %v9485_v2  ;;  %7932 = vmatmul.msk.bf16.vlgmr.msra.gmra.mxu3 %vm1492_vm0, %v9599_v6  ;;  %v9499_v52 = vld [vmem:[%s12927_s0 + $0x70] sm:$0xff]  ;;  %v9500_v61 = vld [vmem:[%s12927_s0 + $0x78] sm:$0xff] }
  0x1a   : > { %7881 = vmatmul.msk.bf16.vlgmr.msra.gmra.mxu1 %vm1492_vm0, %v9548_v13  ;;  %7908 = vmatmul.msk.bf16.vlgmr.msra.gmra.mxu2 %vm1492_vm0, %v9575_v49  ;;  %v9578_v13 = vld [vmem:[%s12927_s0 + $0x2e8] sm:$0xff] }
  0x1b   : > { %v9614_v49 = vld [vmem:[%s12927_s0 + $0x408] sm:$0xff] }
  0x29   : > { %7819 = vmatmul.msk.bf16.gmra.mxu0 %vm1492_vm0, %v9486_v3  ;;  %7933 = vmatmul.msk.bf16.gmra.mxu3 %vm1492_vm0, %v9600_v8  ;;  %v9577_v3 = vld [vmem:[%s12927_s0 + $0x2e0] sm:$0xff] }
  0x2a   : > { %7882 = vmatmul.msk.bf16.gmra.mxu1 %vm1492_vm0, %v9549_v16  ;;  %7909 = vmatmul.msk.bf16.gmra.mxu2 %vm1492_vm0, %v9576_v57  ;;  %v9502_v16 = vld [vmem:[%s12927_s0 + $0x88] sm:$0xff] }
  0x39   : > { %7820 = vmatmul.msk.bf16.gmra.mxu0 %vm1492_vm0, %v9487_v4  ;;  %7934 = vmatmul.msk.bf16.gmra.mxu3 %vm1492_vm0, %v9601_v10  ;;  %v9611_v4 = vld [vmem:[%s12927_s0 + $0x3f0] sm:$0xff] }
  0x3a   : > { %7883 = vmatmul.msk.bf16.gmra.mxu1 %vm1492_vm0, %v9550_v21  ;;  %7910 = vmatmul.msk.bf16.gmra.mxu2 %vm1492_vm0, %v9577_v3  ;;  %v9581_v3 = vld [vmem:[%s12927_s0 + $0x300] sm:$0xff] }
  0x49   : > { %7821 = vmatmul.msk.bf16.gmra.mxu0 %vm1492_vm0, %v9488_v5  ;;  %7935 = vmatmul.msk.bf16.gmra.mxu3 %vm1492_vm0, %v9602_v12  ;;  %v9557_v5 = vld [vmem:[%s12927_s0 + $0x240] sm:$0xff] }
  0x4a   : > { %7884 = vmatmul.msk.bf16.gmra.mxu1 %vm1492_vm0, %v9551_v26  ;;  %7911 = vmatmul.msk.bf16.gmra.mxu2 %vm1492_vm0, %v9578_v13  ;;  %v9579_v26 = vld [vmem:[%s12927_s0 + $0x2f0] sm:$0xff]  ;;  %v9505_v13 = vld [vmem:[%s12927_s0 + $0xa0] sm:$0xff] }
  0x59   : > { %7822 = vmatmul.msk.bf16.gmra.mxu0 %vm1492_vm0, %v9489_v7  ;;  %7936 = vmatmul.msk.bf16.gmra.mxu3 %vm1492_vm0, %v9603_v15  ;;  %v9501_v7 = vld [vmem:[%s12927_s0 + $0x80] sm:$0xff]  ;;  %v9558_v15 = vld [vmem:[%s12927_s0 + $0x248] sm:$0xff] }
  0x5a   : > { %7885 = vmatmul.msk.bf16.gmra.mxu1 %vm1492_vm0, %v9552_v31  ;;  %7912 = vmatmul.msk.bf16.gmra.mxu2 %vm1492_vm0, %v9579_v26 }
  0x69   : > { %7823 = vmatmul.msk.bf16.gmra.mxu0 %vm1492_vm0, %v9490_v9  ;;  %7937 = vmatmul.msk.bf16.gmra.mxu3 %vm1492_vm0, %v9604_v20 }
  0x6a   : > { %7886 = vmatmul.msk.bf16.gmra.mxu1 %vm1492_vm0, %v9553_v36 }
  0x79   : > { %7824 = vmatmul.msk.bf16.gmra.mxu0 %vm1492_vm0, %v9491_v11  ;;  %7938 = vmatmul.msk.bf16.gmra.mxu3 %vm1492_vm0, %v9605_v25 }
  0x7a   : > { %7887 = vmatmul.msk.bf16.gmra.mxu1 %vm1492_vm0, %v9554_v43 }
  0x89   : > { %7825 = vmatmul.msk.bf16.gmra.mxu0 %vm1492_vm0, %v9492_v14  ;;  %7939 = vmatmul.msk.bf16.gmra.mxu3 %vm1492_vm0, %v9606_v30  ;;  %v9612_v14 = vld [vmem:[%s12927_s0 + $0x3f8] sm:$0xff]  ;;  %v9559_v30 = vld [vmem:[%s12927_s0 + $0x250] sm:$0xff] }
  0x8a   : > { %7888 = vmatmul.msk.bf16.gmra.mxu1 %vm1492_vm0, %v9555_v51  ;;  %v9504_v51 = vld [vmem:[%s12927_s0 + $0x98] sm:$0xff] }
  0x96   : > { %v10652_v18 = vpop.f32.mrf.mxu0 }
  0x97   : > { %v10778_v60 = vpop.f32.mrf.mxu1 }
  0x99   : > { %7826 = vmatmul.msk.bf16.gmra.mxu0 %vm1492_vm0, %v9493_v17  ;;  %7940 = vmatmul.msk.bf16.gmra.mxu3 %vm1492_vm0, %v9607_v35 }
  0x9a   : > { %7889 = vmatmul.msk.bf16.gmra.mxu1 %vm1492_vm0, %v9556_v59 }
  0x9c   : > { %v10718_v39 = vpop.f32.mrf.mxu3 }
  0x9d   : > { %12966 = vst [vmem:[#allocation3_spill] sm:$0xff] %v10718_v39 }
  0x9e   : > { %v10655_v19 = vpop.f32.mrf.mxu0 }
  0x9f   : > { %v10791_v0 = vpop.f32.mrf.mxu1 }
  0xa4   : > { %v10723_v41 = vpop.f32.mrf.mxu3 }
  0xa5   : > { %12967 = vst [vmem:[#allocation4_spill] sm:$0xff] %v10723_v41  ;;  %v11396_v41 = vld [vmem:[%s10587_s16] ss:$0 sm:$0xff] }
  0xa6   : > { %v10668_v23 = vpop.f32.mrf.mxu0 }
  0xa7   : > { %v10809_v6 = vpop.f32.mrf.mxu1 }
  0xa9   : > { %7827 = vmatmul.msk.bf16.gmra.mxu0 %vm1492_vm0, %v9494_v22  ;;  %7941 = vmatmul.msk.bf16.gmra.mxu3 %vm1492_vm0, %v9608_v42 }
  0xaa   : > { %7890 = vmatmul.msk.bf16.gmra.mxu1 %vm1492_vm0, %v9557_v5  ;;  %v9561_v5 = vld [vmem:[%s12927_s0 + $0x260] sm:$0xff] }
  0xac   : > { %v10738_v46 = vpop.f32.mrf.mxu3 }
  0xad   : > { %12969 = vst [vmem:[#allocation6_spill] sm:$0xff] %v10738_v46 }
  0xae   : > { %v10671_v24 = vpop.f32.mrf.mxu0 }
  0xaf   : > { %v10819_v10 = vpop.f32.mrf.mxu1 }
  0xb4   : > { %v10743_v48 = vpop.f32.mrf.mxu3 }
  0xb5   : > { %12971 = vst [vmem:[#allocation8_spill] sm:$0xff] %v10743_v48 }
  0xb6   : > { %v10684_v28 = vpop.f32.mrf.mxu0 }
  0xb7   : > { %v10844_v21 = vpop.f32.mrf.mxu1 }
  0xb9   : > { %7828 = vmatmul.msk.bf16.gmra.mxu0 %vm1492_vm0, %v9495_v27  ;;  %7942 = vmatmul.msk.bf16.gmra.mxu3 %vm1492_vm0, %v9609_v50  ;;  %v9613_v27 = vld [vmem:[%s12927_s0 + $0x400] sm:$0xff]  ;;  %v9560_v50 = vld [vmem:[%s12927_s0 + $0x258] sm:$0xff] }
  0xba   : > { %7891 = vmatmul.msk.bf16.gmra.mxu1 %vm1492_vm0, %v9558_v15 }
  0xbc   : > { %v10762_v54 = vpop.f32.mrf.mxu3 }
  0xbd   : > { %12973 = vst [vmem:[#allocation10_spill] sm:$0xff] %v10762_v54 }
  0xbe   : > { %v10687_v29 = vpop.f32.mrf.mxu0 }
  0xbf   : > { %v10862_v31 = vpop.f32.mrf.mxu1 }
  0xc4   : > { %v10767_v56 = vpop.f32.mrf.mxu3 }
  0xc5   : > { %12975 = vst [vmem:[#allocation12_spill] sm:$0xff] %v10767_v56 }
  0xc6   : > { %v10700_v33 = vpop.f32.mrf.mxu0 }
  0xc9   : > { %7829 = vmatmul.msk.bf16.gmra.mxu0 %vm1492_vm0, %v9496_v32  ;;  %7943 = vmatmul.msk.bf16.gmra.mxu3 %vm1492_vm0, %v9610_v58  ;;  %v9503_v32 = vld [vmem:[%s12927_s0 + $0x90] sm:$0xff] }
  0xca   : > { %7892 = vmatmul.msk.bf16.gmra.mxu1 %vm1492_vm0, %v9559_v30  ;;  %v9582_v30 = vld [vmem:[%s12927_s0 + $0x308] sm:$0xff] }
  0xcc   : > { %v10788_v63 = vpop.f32.mrf.mxu3 }
  0xcd   : > { %12977 = vst [vmem:[#allocation14_spill] sm:$0xff] %v10788_v63  ;;  %v9628_v63 = vld [vmem:[%s12927_s0 + $0x478] sm:$0xff] }
  0xce   : > { %v10703_v34 = vpop.f32.mrf.mxu0 }
  0xd4   : > { %v10795_v2 = vpop.f32.mrf.mxu3 }
  0xd5   : > { %12979 = vst [vmem:[#allocation16_spill] sm:$0xff] %v10795_v2 }
  0xd6   : > { %v10716_v38 = vpop.f32.mrf.mxu0 }
  0xd9   : > { %7830 = vmatmul.msk.bf16.gmra.mxu0 %vm1492_vm0, %v9497_v37  ;;  %7944 = vmatmul.msk.bf16.gmra.mxu3 %vm1492_vm0, %v9611_v4  ;;  %v10873_v37 = vpop.f32.mrf.mxu1  ;;  %v9615_v4 = vld [vmem:[%s12927_s0 + $0x410] sm:$0xff] }
  0xda   : > { %7893 = vmatmul.msk.bf16.gmra.mxu1 %vm1492_vm0, %v9560_v50  ;;  %v9506_v50 = vld [vmem:[%s12927_s0 + $0xa8] sm:$0xff] }
  0xdc   : > { %v10816_v9 = vpop.f32.mrf.mxu3 }
  0xdd   : > { %12981 = vst [vmem:[#allocation18_spill] sm:$0xff] %v10816_v9 }
  0xde   : > { %v10721_v40 = vpop.f32.mrf.mxu0 }
  0xe4   : > { %v10823_v12 = vpop.f32.mrf.mxu3 }
  0xe5   : > { %12983 = vst [vmem:[#allocation20_spill] sm:$0xff] %v10823_v12 }
  0xe6   : > { %v10736_v45 = vpop.f32.mrf.mxu0 }
  0xe7   : > { %12968 = vst [vmem:[#allocation5_spill] sm:$0xff] %v10736_v45 }
  0xe9   : > { %7831 = vmatmul.msk.bf16.gmra.mxu0 %vm1492_vm0, %v9498_v44  ;;  %7945 = vmatmul.msk.bf16.gmra.mxu3 %vm1492_vm0, %v9612_v14  ;;  %v9580_v44 = vld [vmem:[%s12927_s0 + $0x2f8] sm:$0xff] }
  0xea   : > { %7913 = vmatmul.msk.bf16.gmra.mxu2 %vm1492_vm0, %v9580_v44  ;;  %7894 = vmatmul.msk.bf16.gmra.mxu1 %vm1492_vm0, %v9561_v5  ;;  %v9562_v44 = vld [vmem:[%s12927_s0 + $0x268] sm:$0xff] }
  0xec   : > { %v10842_v20 = vpop.f32.mrf.mxu3 }
  0xed   : > { %12985 = vst [vmem:[#allocation22_spill] sm:$0xff] %v10842_v20 }
  0xee   : > { %v10741_v47 = vpop.f32.mrf.mxu0 }
  0xef   : > { %12970 = vst [vmem:[#allocation7_spill] sm:$0xff] %v10741_v47 }
  0xf4   : > { %v10849_v25 = vpop.f32.mrf.mxu3 }
  0xf5   : > { %12987 = vst [vmem:[#allocation24_spill] sm:$0xff] %v10849_v25 }
  0xf6   : > { %v10760_v53 = vpop.f32.mrf.mxu0 }
  0xf7   : > { %12972 = vst [vmem:[#allocation9_spill] sm:$0xff] %v10760_v53  ;;  %v11400_v53 = vld [vmem:[%s10587_s16 + $0x1] ss:$0 sm:$0xff] }
  0xf9   : > { %7832 = vmatmul.msk.bf16.gmra.mxu0 %vm1492_vm0, %v9499_v52  ;;  %7946 = vmatmul.msk.bf16.gmra.mxu3 %vm1492_vm0, %v9613_v27  ;;  %v10894_v52 = vpop.f32.mrf.mxu1 }
  0xfa   : > { %7914 = vmatmul.msk.bf16.gmra.mxu2 %vm1492_vm0, %v9581_v3  ;;  %7895 = vmatmul.msk.bf16.gmra.mxu1 %vm1492_vm0, %v9562_v44  ;;  %v9563_v44 = vld [vmem:[%s12927_s0 + $0x270] sm:$0xff] }
  0xfc   : > { %v10870_v36 = vpop.f32.mrf.mxu3 }
  0xfd   : > { %12989 = vst [vmem:[#allocation26_spill] sm:$0xff] %v10870_v36  ;;  %v9566_v36 = vld [vmem:[%s12927_s0 + $0x288] sm:$0xff] }
  0xfe   : > { %v10765_v55 = vpop.f32.mrf.mxu0 }
  0xff   : > { %12974 = vst [vmem:[#allocation11_spill] sm:$0xff] %v10765_v55 }
 0x104   : > { %v10877_v43 = vpop.f32.mrf.mxu3 }
 0x105   : > { %12991 = vst [vmem:[#allocation28_spill] sm:$0xff] %v10877_v43 }
 0x106   : > { %v10786_v62 = vpop.f32.mrf.mxu0 }
 0x107   : > { %12976 = vst [vmem:[#allocation13_spill] sm:$0xff] %v10786_v62  ;;  %v9596_v62 = vld [vmem:[%s12927_s0 + $0x378] sm:$0xff] }
 0x109   : > { %7833 = vmatmul.msk.bf16.gmra.mxu0 %vm1492_vm0, %v9500_v61  ;;  %7947 = vmatmul.msk.bf16.gmra.mxu3 %vm1492_vm0, %v9614_v49 }
 0x10a   : > { %7915 = vmatmul.msk.bf16.gmra.mxu2 %vm1492_vm0, %v9582_v30  ;;  %v9583_v30 = vld [vmem:[%s12927_s0 + $0x310] sm:$0xff]  ;;  %7896 = vmatmul.msk.bf16.gmra.mxu1 %vm1492_vm0, %v9563_v44 }
 0x10c   : > { %v10898_v58 = vpop.f32.mrf.mxu3 }
 0x10d   : > { %12993 = vst [vmem:[#allocation30_spill] sm:$0xff] %v10898_v58 }
 0x10e   : > { %v10793_v1 = vpop.f32.mrf.mxu0 }
 0x10f   : > { %12978 = vst [vmem:[#allocation15_spill] sm:$0xff] %v10793_v1 }
 0x114   : > { %v10903_v61 = vpop.f32.mrf.mxu3 }
 0x115   : > { %12995 = vst [vmem:[#allocation32_spill] sm:$0xff] %v10903_v61  ;;  %v9584_v61 = vld [vmem:[%s12927_s0 + $0x318] sm:$0xff] }
 0x116   : > { %v10814_v8 = vpop.f32.mrf.mxu0 }
 0x117   : > { %12980 = vst [vmem:[#allocation17_spill] sm:$0xff] %v10814_v8 }
 0x119   : > { %7834 = vmatmul.msk.bf16.gmra.mxu0 %vm1492_vm0, %v9501_v7  ;;  %v10914_v7 = vpop.f32.mrf.mxu1  ;;  %7948 = vmatmul.msk.bf16.gmra.mxu3 %vm1492_vm0, %v9615_v4 }
 0x11a   : > { %7916 = vmatmul.msk.bf16.gmra.mxu2 %vm1492_vm0, %v9583_v30 }
 0x11c   : > { %v10924_v15 = vpop.f32.mrf.mxu3 }
 0x11d   : > { %12997 = vst [vmem:[#allocation34_spill] sm:$0xff] %v10924_v15 }
 0x11e   : > { %v10821_v11 = vpop.f32.mrf.mxu0 }
 0x11f   : > { %12982 = vst [vmem:[#allocation19_spill] sm:$0xff] %v10821_v11 }
 0x124   : > { %v10931_v27 = vpop.f32.mrf.mxu3 }
 0x125   : > { %12999 = vst [vmem:[#allocation36_spill] sm:$0xff] %v10931_v27 }
 0x126   : > { %v10840_v17 = vpop.f32.mrf.mxu0 }
 0x127   : > { %12984 = vst [vmem:[#allocation21_spill] sm:$0xff] %v10840_v17  ;;  %v9593_v17 = vld [vmem:[%s12927_s0 + $0x360] sm:$0xff] }
 0x129   : > { %7835 = vmatmul.msk.bf16.gmra.mxu0 %vm1492_vm0, %v9502_v16  ;;  %v10927_v16 = vpop.f32.mrf.mxu1 }
 0x12a   : > { %7917 = vmatmul.msk.bf16.gmra.mxu2 %vm1492_vm0, %v9584_v61 }
 0x12c   : > { %v10952_v3 = vpop.f32.mrf.mxu3 }
 0x12d   : > { %13001 = vst [vmem:[#allocation38_spill] sm:$0xff] %v10952_v3 }
 0x12e   : > { %v10847_v22 = vpop.f32.mrf.mxu0 }
 0x12f   : > { %12986 = vst [vmem:[#allocation23_spill] sm:$0xff] %v10847_v22 }
 0x131   : > { %v10945_v49 = vpop.f32.mrf.mxu1 }
 0x136   : > { %v10868_v35 = vpop.f32.mrf.mxu0 }
 0x137   : > { %12988 = vst [vmem:[#allocation25_spill] sm:$0xff] %v10868_v35 }
 0x139   : > { %7836 = vmatmul.msk.bf16.gmra.mxu0 %vm1492_vm0, %v9503_v32  ;;  %v9616_v32 = vld [vmem:[%s12927_s0 + $0x418] sm:$0xff]  ;;  %v10955_v4 = vpop.f32.mrf.mxu1 }
 0x13a   : > { %7949 = vmatmul.msk.bf16.gmra.mxu3 %vm1492_vm0, %v9616_v32  ;;  %v9617_v32 = vld [vmem:[%s12927_s0 + $0x420] sm:$0xff] }
 0x13e   : > { %v10875_v42 = vpop.f32.mrf.mxu0 }
 0x13f   : > { %12990 = vst [vmem:[#allocation27_spill] sm:$0xff] %v10875_v42 }
 0x141   : > { %v10989_v27 = vpop.f32.mrf.mxu1 }
 0x146   : > { %v10896_v57 = vpop.f32.mrf.mxu0 }
 0x147   : > { %12992 = vst [vmem:[#allocation29_spill] sm:$0xff] %v10896_v57 }
 0x149   : > { %7837 = vmatmul.msk.bf16.gmra.mxu0 %vm1492_vm0, %v9504_v51 }
 0x14a   : > { %7950 = vmatmul.msk.bf16.gmra.mxu3 %vm1492_vm0, %v9617_v32  ;;  %v9650_v32 = vld [vmem:[%s10979_s24 + $0x78] sm:$0xff] }
 0x14b   : > { %3731 = vmatpush.bf16.msrb.mxu3 %v9650_v32  ;;  %3623 = vmatpush.bf16.msrb.mxu1 %v9650_v32  ;;  %v9564_v32 = vld [vmem:[%s12927_s0 + $0x278] sm:$0xff] }
 0x14c   : > { %7897 = vmatmul.msk.bf16.gmra.mxu1 %vm1492_vm0, %v9564_v32  ;;  %v9585_v32 = vld [vmem:[%s12927_s0 + $0x320] sm:$0xff] }
 0x14d   : > { %7918 = vmatmul.msk.bf16.gmra.mxu2 %vm1492_vm0, %v9585_v32 }
 0x14e   : > { %v10901_v59 = vpop.f32.mrf.mxu0 }
 0x14f   : > { %12994 = vst [vmem:[#allocation31_spill] sm:$0xff] %v10901_v59  ;;  %v9586_v59 = vld [vmem:[%s12927_s0 + $0x328] sm:$0xff] }
 0x156   : > { %v10922_v14 = vpop.f32.mrf.mxu0 }
 0x157   : > { %12996 = vst [vmem:[#allocation33_spill] sm:$0xff] %v10922_v14 }
 0x159   : > { %7838 = vmatmul.msk.bf16.gmra.mxu0 %vm1492_vm0, %v9505_v13  ;;  %v10959_v13 = vpop.f32.mrf.mxu3 }
 0x15a   : > { %13003 = vst [vmem:[#allocation40_spill] sm:$0xff] %v10959_v13  ;;  %v9507_v13 = vld [vmem:[%s12927_s0 + $0xb0] sm:$0xff] }
 0x15d   : > { %7919 = vmatmul.msk.bf16.gmra.mxu2 %vm1492_vm0, %v9586_v59 }
 0x15e   : > { %v10929_v26 = vpop.f32.mrf.mxu0 }
 0x15f   : > { %12998 = vst [vmem:[#allocation35_spill] sm:$0xff] %v10929_v26 }
 0x161   : > { %v10986_v30 = vpop.f32.mrf.mxu3 }
 0x162   : > { %13006 = vst [vmem:[#allocation43_spill] sm:$0xff] %v10986_v30  ;;  %v9618_v30 = vld [vmem:[%s12927_s0 + $0x428] sm:$0xff] }
 0x163   : > { %7951 = vmatmul.msk.bf16.gmra.mxu3 %vm1492_vm0, %v9618_v30 }
 0x166   : > { %v10950_v51 = vpop.f32.mrf.mxu0 }
 0x167   : > { %13000 = vst [vmem:[#allocation37_spill] sm:$0xff] %v10950_v51 }
 0x169   : > { %7839 = vmatmul.msk.bf16.gmra.mxu0 %vm1492_vm0, %v9506_v50  ;;  %v10974_v50 = vpop.f32.mrf.mxu2 }
 0x16a   : > { %13004 = vst [vmem:[#allocation41_spill] sm:$0xff] %v10974_v50 }
 0x16e   : > { %v10957_v5 = vpop.f32.mrf.mxu0 }
 0x16f   : > { %13002 = vst [vmem:[#allocation39_spill] sm:$0xff] %v10957_v5  ;;  %v10996_v5 = vpop.f32.mrf.mxu3 }
 0x170   : > { %13009 = vst [vmem:[#allocation46_spill] sm:$0xff] %v10996_v5 }
 0x171   : > { %v10992_v44 = vpop.f32.mrf.mxu2 }
 0x172   : > { %13007 = vst [vmem:[#allocation44_spill] sm:$0xff] %v10992_v44  ;;  %v9587_v44 = vld [vmem:[%s12927_s0 + $0x330] sm:$0xff] }
 0x173   : > { %7920 = vmatmul.msk.bf16.gmra.mxu2 %vm1492_vm0, %v9587_v44  ;;  %v9622_v44 = vld [vmem:[%s12927_s0 + $0x448] sm:$0xff] }
 0x176   : > { %v10984_v3 = vpop.f32.mrf.mxu0 }
 0x177   : > { %13005 = vst [vmem:[#allocation42_spill] sm:$0xff] %v10984_v3  ;;  %v11019_v51 = vpop.f32.mrf.mxu3 }
 0x178   : > { %13012 = vst [vmem:[#allocation49_spill] sm:$0xff] %v11019_v51 }
 0x179   : > { %7840 = vmatmul.msk.bf16.gmra.mxu0 %vm1492_vm0, %v9507_v13  ;;  %v11009_v13 = vpop.f32.mrf.mxu1  ;;  %v11012_v5 = vpop.f32.mrf.mxu2 }
 0x17a   : > { %13010 = vst [vmem:[#allocation47_spill] sm:$0xff] %v11012_v5 }
 0x17e   : > { %v10994_v15 = vpop.f32.mrf.mxu0 }
 0x17f   : > { %13008 = vst [vmem:[#allocation45_spill] sm:$0xff] %v10994_v15  ;;  %v9508_v15 = vld [vmem:[%s12927_s0 + $0xb8] sm:$0xff]  ;;  %v11028_v26 = vpop.f32.mrf.mxu3 }
 0x180   : > { %13015 = vst [vmem:[#allocation52_spill] sm:$0xff] %v11028_v26  ;;  %v9509_v26 = vld [vmem:[%s12927_s0 + $0xc0] sm:$0xff] }
 0x181   : > { %v11022_v58 = vpop.f32.mrf.mxu1  ;;  %v11024_v61 = vpop.f32.mrf.mxu2 }
 0x182   : > { %13013 = vst [vmem:[#allocation50_spill] sm:$0xff] %v11024_v61 }
 0x186   : > { %v11017_v3 = vpop.f32.mrf.mxu0 }
 0x187   : > { %13011 = vst [vmem:[#allocation48_spill] sm:$0xff] %v11017_v3  ;;  %v9619_v3 = vld [vmem:[%s12927_s0 + $0x430] sm:$0xff]  ;;  %v11051_v14 = vpop.f32.mrf.mxu3 }
 0x188   : > { %7952 = vmatmul.msk.bf16.gmra.mxu3 %vm1492_vm0, %v9619_v3  ;;  %13018 = vst [vmem:[#allocation55_spill] sm:$0xff] %v11051_v14 }
 0x189   : > { %7841 = vmatmul.msk.bf16.gmra.mxu0 %vm1492_vm0, %v9508_v15  ;;  %v9565_v15 = vld [vmem:[%s12927_s0 + $0x280] sm:$0xff]  ;;  %v11042_v51 = vpop.f32.mrf.mxu2 }
 0x18a   : > { %7898 = vmatmul.msk.bf16.gmra.mxu1 %vm1492_vm0, %v9565_v15  ;;  %13016 = vst [vmem:[#allocation53_spill] sm:$0xff] %v11042_v51  ;;  %v9512_v51 = vld [vmem:[%s12927_s0 + $0xd8] sm:$0xff] }
 0x18e   : > { %v11026_v30 = vpop.f32.mrf.mxu0 }
 0x18f   : > { %13014 = vst [vmem:[#allocation51_spill] sm:$0xff] %v11026_v30  ;;  %v11047_v30 = vpop.f32.mrf.mxu1  ;;  %v11060_v15 = vpop.f32.mrf.mxu3 }
 0x190   : > { %13021 = vst [vmem:[#allocation58_spill] sm:$0xff] %v11060_v15 }
 0x191   : > { %v11056_v3 = vpop.f32.mrf.mxu2 }
 0x192   : > { %13019 = vst [vmem:[#allocation56_spill] sm:$0xff] %v11056_v3  ;;  %v9623_v3 = vld [vmem:[%s12927_s0 + $0x450] sm:$0xff] }
 0x196   : > { %v11049_v43 = vpop.f32.mrf.mxu0 }
 0x197   : > { %13017 = vst [vmem:[#allocation54_spill] sm:$0xff] %v11049_v43  ;;  %v9620_v43 = vld [vmem:[%s12927_s0 + $0x438] sm:$0xff]  ;;  %v11071_v14 = vpop.f32.mrf.mxu1  ;;  %v11085_v57 = vpop.f32.mrf.mxu3 }
 0x198   : > { %7953 = vmatmul.msk.bf16.gmra.mxu3 %vm1492_vm0, %v9620_v43  ;;  %13024 = vst [vmem:[#allocation61_spill] sm:$0xff] %v11085_v57  ;;  %v9567_v57 = vld [vmem:[%s12927_s0 + $0x290] sm:$0xff] }
 0x199   : > { %7842 = vmatmul.msk.bf16.gmra.mxu0 %vm1492_vm0, %v9509_v26  ;;  %v11078_v50 = vpop.f32.mrf.mxu2  ;;  %v9649_v26 = vld [vmem:[%s10979_s24 + $0x70] sm:$0xff] }
 0x19a   : > { %7899 = vmatmul.msk.bf16.gmra.mxu1 %vm1492_vm0, %v9566_v36  ;;  %13022 = vst [vmem:[#allocation59_spill] sm:$0xff] %v11078_v50  ;;  %3732 = vmatpush.bf16.msrb.mxu3 %v9649_v26 }
 0x19b   : > { %3624 = vmatpush.bf16.msrb.mxu1 %v9649_v26 }
 0x19e   : > { %v11058_v32 = vpop.f32.mrf.mxu0 }
 0x19f   : > { %13020 = vst [vmem:[#allocation57_spill] sm:$0xff] %v11058_v32  ;;  %v9510_v32 = vld [vmem:[%s12927_s0 + $0xc8] sm:$0xff]  ;;  %v11090_v59 = vpop.f32.mrf.mxu1  ;;  %v11096_v15 = vpop.f32.mrf.mxu3 }
 0x1a0   : > { %13027 = vst [vmem:[#allocation64_spill] sm:$0xff] %v11096_v15 }
 0x1a1   : > { %v11092_v43 = vpop.f32.mrf.mxu2 }
 0x1a2   : > { %13025 = vst [vmem:[#allocation62_spill] sm:$0xff] %v11092_v43  ;;  %v9590_v43 = vld [vmem:[%s12927_s0 + $0x348] sm:$0xff] }
 0x1a6   : > { %v11083_v25 = vpop.f32.mrf.mxu0 }
 0x1a7   : > { %13023 = vst [vmem:[#allocation60_spill] sm:$0xff] %v11083_v25  ;;  %v9621_v25 = vld [vmem:[%s12927_s0 + $0x440] sm:$0xff]  ;;  %v11113_v5 = vpop.f32.mrf.mxu1  ;;  %v11122_v61 = vpop.f32.mrf.mxu3 }
 0x1a8   : > { %7954 = vmatmul.msk.bf16.gmra.mxu3 %vm1492_vm0, %v9621_v25  ;;  %13030 = vst [vmem:[#allocation67_spill] sm:$0xff] %v11122_v61  ;;  %v9638_v25 = vld [vmem:[%s10979_s24 + $0x38] sm:$0xff] }
 0x1a9   : > { %7843 = vmatmul.msk.bf16.gmra.mxu0 %vm1492_vm0, %v9510_v32  ;;  %v9511_v32 = vld [vmem:[%s12927_s0 + $0xd0] sm:$0xff]  ;;  %3696 = vmatpush.bf16.msrb.mxu2 %v9638_v25  ;;  %v9569_v25 = vld [vmem:[%s12927_s0 + $0x2a0] sm:$0xff] }
 0x1aa   : > { %7900 = vmatmul.msk.bf16.gmra.mxu1 %vm1492_vm0, %v9567_v57 }
 0x1ae   : > { %v11094_v36 = vpop.f32.mrf.mxu0 }
 0x1af   : > { %13026 = vst [vmem:[#allocation63_spill] sm:$0xff] %v11094_v36  ;;  %v11115_v36 = vpop.f32.mrf.mxu2  ;;  %v11130_v26 = vpop.f32.mrf.mxu1 }
 0x1b0   : > { %13028 = vst [vmem:[#allocation65_spill] sm:$0xff] %v11115_v36  ;;  %v11134_v42 = vpop.f32.mrf.mxu3  ;;  %v9514_v36 = vld [vmem:[%s12927_s0 + $0xe8] sm:$0xff] }
 0x1b1   : > { %13033 = vst [vmem:[#allocation70_spill] sm:$0xff] %v11134_v42  ;;  %v9589_v42 = vld [vmem:[%s12927_s0 + $0x340] sm:$0xff] }
 0x1b6   : > { %v11120_v15 = vpop.f32.mrf.mxu0 }
 0x1b7   : > { %13029 = vst [vmem:[#allocation66_spill] sm:$0xff] %v11120_v15  ;;  %v11128_v57 = vpop.f32.mrf.mxu2  ;;  %v9588_v15 = vld [vmem:[%s12927_s0 + $0x338] sm:$0xff]  ;;  %v11159_v35 = vpop.f32.mrf.mxu1 }
 0x1b8   : > { %13031 = vst [vmem:[#allocation68_spill] sm:$0xff] %v11128_v57  ;;  %7921 = vmatmul.msk.bf16.gmra.mxu2 %vm1492_vm0, %v9588_v15  ;;  %7955 = vmatmul.msk.bf16.gmra.mxu3 %vm1492_vm0, %v9622_v44  ;;  %v11157_v12 = vpop.f32.mrf.mxu3  ;;  %v9648_v57 = vld [vmem:[%s10979_s24 + $0x68] sm:$0xff] }
 0x1b9   : > { %7844 = vmatmul.msk.bf16.gmra.mxu0 %vm1492_vm0, %v9511_v32  ;;  %v9568_v32 = vld [vmem:[%s12927_s0 + $0x298] sm:$0xff]  ;;  %13036 = vst [vmem:[#allocation73_spill] sm:$0xff] %v11157_v12  ;;  %3733 = vmatpush.bf16.msrb.mxu3 %v9648_v57 }
 0x1ba   : > { %7901 = vmatmul.msk.bf16.gmra.mxu1 %vm1492_vm0, %v9568_v32 }
 0x1bb   : > { %3625 = vmatpush.bf16.msrb.mxu1 %v9648_v57 }
 0x1be   : > { %v11132_v20 = vpop.f32.mrf.mxu0 }
 0x1bf   : > { %13032 = vst [vmem:[#allocation69_spill] sm:$0xff] %v11132_v20  ;;  %v11150_v61 = vpop.f32.mrf.mxu2  ;;  %v11183_v12 = vpop.f32.mrf.mxu1 }
 0x1c0   : > { %13034 = vst [vmem:[#allocation71_spill] sm:$0xff] %v11150_v61  ;;  %v11168_v32 = vpop.f32.mrf.mxu3  ;;  %v9515_v61 = vld [vmem:[%s12927_s0 + $0xf0] sm:$0xff] }
 0x1c1   : > { %13039 = vst [vmem:[#allocation76_spill] sm:$0xff] %v11168_v32 }
 0x1c6   : > { %v11155_v20 = vpop.f32.mrf.mxu0 }
 0x1c7   : > { %13035 = vst [vmem:[#allocation72_spill] sm:$0xff] %v11155_v20  ;;  %v11164_v15 = vpop.f32.mrf.mxu2 }
 0x1c8   : > { %13037 = vst [vmem:[#allocation74_spill] sm:$0xff] %v11164_v15  ;;  %7922 = vmatmul.msk.bf16.gmra.mxu2 %vm1492_vm0, %v9589_v42  ;;  %7956 = vmatmul.msk.bf16.gmra.mxu3 %vm1492_vm0, %v9623_v3  ;;  %v11193_v9 = vpop.f32.mrf.mxu3  ;;  %v11198_v42 = vpop.f32.mrf.mxu1 }
 0x1c9   : > { %7845 = vmatmul.msk.bf16.gmra.mxu0 %vm1492_vm0, %v9512_v51  ;;  %13042 = vst [vmem:[#allocation79_spill] sm:$0xff] %v11193_v9  ;;  %v9625_v51 = vld [vmem:[%s12927_s0 + $0x460] sm:$0xff] }
 0x1ca   : > { %7902 = vmatmul.msk.bf16.gmra.mxu1 %vm1492_vm0, %v9569_v25 }
 0x1ce   : > { %v11166_v44 = vpop.f32.mrf.mxu0 }
 0x1cf   : > { %13038 = vst [vmem:[#allocation75_spill] sm:$0xff] %v11166_v44  ;;  %v11186_v50 = vpop.f32.mrf.mxu2  ;;  %v9513_v44 = vld [vmem:[%s12927_s0 + $0xe0] sm:$0xff] }
 0x1d0   : > { %13040 = vst [vmem:[#allocation77_spill] sm:$0xff] %v11186_v50  ;;  %v11204_v32 = vpop.f32.mrf.mxu3  ;;  %v11222_v9 = vpop.f32.mrf.mxu1 }
 0x1d1   : > { %13045 = vst [vmem:[#allocation82_spill] sm:$0xff] %v11204_v32 }
 0x1d6   : > { %v11191_v20 = vpop.f32.mrf.mxu0 }
 0x1d7   : > { %13041 = vst [vmem:[#allocation78_spill] sm:$0xff] %v11191_v20  ;;  %v11200_v3 = vpop.f32.mrf.mxu2  ;;  %v9624_v20 = vld [vmem:[%s12927_s0 + $0x458] sm:$0xff] }
 0x1d8   : > { %13043 = vst [vmem:[#allocation80_spill] sm:$0xff] %v11200_v3  ;;  %7923 = vmatmul.msk.bf16.gmra.mxu2 %vm1492_vm0, %v9590_v43  ;;  %7957 = vmatmul.msk.bf16.gmra.mxu3 %vm1492_vm0, %v9624_v20  ;;  %v11229_v22 = vpop.f32.mrf.mxu3  ;;  %v11235_v20 = vld [vmem:[%s10979_s24 + $0x30] sm:$0xff] }
 0x1d9   : > { %7846 = vmatmul.msk.bf16.gmra.mxu0 %vm1492_vm0, %v9513_v44  ;;  %v9570_v44 = vld [vmem:[%s12927_s0 + $0x2a8] sm:$0xff]  ;;  %13048 = vst [vmem:[#allocation85_spill] sm:$0xff] %v11229_v22  ;;  %3697 = vmatpush.bf16.msrb.mxu2 %v11235_v20 }
 0x1da   : > { %7903 = vmatmul.msk.bf16.gmra.mxu1 %vm1492_vm0, %v9570_v44 }
 0x1de   : > { %v11202_v25 = vpop.f32.mrf.mxu0 }
 0x1df   : > { %13044 = vst [vmem:[#allocation81_spill] sm:$0xff] %v11202_v25  ;;  %v11220_v3 = vpop.f32.mrf.mxu2 }
 0x1e0   : > { %13046 = vst [vmem:[#allocation83_spill] sm:$0xff] %v11220_v3  ;;  %v11242_v32 = vpop.f32.mrf.mxu3 }
 0x1e1   : > { %13051 = vst [vmem:[#allocation88_spill] sm:$0xff] %v11242_v32  ;;  %v9572_v32 = vld [vmem:[%s12927_s0 + $0x2b8] sm:$0xff] }
 0x1e6   : > { %v11227_v25 = vpop.f32.mrf.mxu0 }
 0x1e7   : > { %13047 = vst [vmem:[#allocation84_spill] sm:$0xff] %v11227_v25  ;;  %v11238_v43 = vpop.f32.mrf.mxu2  ;;  %v9591_v25 = vld [vmem:[%s12927_s0 + $0x350] sm:$0xff] }
 0x1e8   : > { %13049 = vst [vmem:[#allocation86_spill] sm:$0xff] %v11238_v43  ;;  %v9571_v43 = vld [vmem:[%s12927_s0 + $0x2b0] sm:$0xff]  ;;  %7924 = vmatmul.msk.bf16.gmra.mxu2 %vm1492_vm0, %v9591_v25  ;;  %7958 = vmatmul.msk.bf16.gmra.mxu3 %vm1492_vm0, %v9625_v51  ;;  %v11268_v22 = vpop.f32.mrf.mxu3  ;;  %v9592_v25 = vld [vmem:[%s12927_s0 + $0x358] sm:$0xff] }
 0x1e9   : > { %7847 = vmatmul.msk.bf16.gmra.mxu0 %vm1492_vm0, %v9514_v36  ;;  %v11251_v36 = vpop.f32.mrf.mxu1  ;;  %13054 = vst [vmem:[#allocation91_spill] sm:$0xff] %v11268_v22 }
 0x1ea   : > { %7904 = vmatmul.msk.bf16.gmra.mxu1 %vm1492_vm0, %v9571_v43  ;;  %v9626_v43 = vld [vmem:[%s12927_s0 + $0x468] sm:$0xff] }
 0x1ee   : > { %v11240_v44 = vpop.f32.mrf.mxu0 }
 0x1ef   : > { %13050 = vst [vmem:[#allocation87_spill] sm:$0xff] %v11240_v44  ;;  %v11264_v44 = vpop.f32.mrf.mxu2 }
 0x1f0   : > { %13052 = vst [vmem:[#allocation89_spill] sm:$0xff] %v11264_v44  ;;  %v11277_v57 = vpop.f32.mrf.mxu3 }
 0x1f1   : > { %v11272_v15 = vpop.f32.mrf.mxu1  ;;  %13056 = vst [vmem:[#allocation93_spill] sm:$0xff] %v11277_v57  ;;  %v9516_v57 = vld [vmem:[%s12927_s0 + $0xf8] sm:$0xff] }
 0x1f6   : > { %v11266_v2 = vpop.f32.mrf.mxu0 }
 0x1f7   : > { %13053 = vst [vmem:[#allocation90_spill] sm:$0xff] %v11266_v2  ;;  %v11288_v22 = vpop.f32.mrf.mxu2 }
 0x1f8   : > { %13057 = vst [vmem:[#allocation94_spill] sm:$0xff] %v11288_v22  ;;  %7925 = vmatmul.msk.bf16.gmra.mxu2 %vm1492_vm0, %v9592_v25  ;;  %7959 = vmatmul.msk.bf16.gmra.mxu3 %vm1492_vm0, %v9626_v43 }
 0x1f9   : > { %7848 = vmatmul.msk.bf16.gmra.mxu0 %vm1492_vm0, %v9515_v61  ;;  %v11293_v61 = vpop.f32.mrf.mxu1 }
 0x1fa   : > { %7905 = vmatmul.msk.bf16.gmra.mxu1 %vm1492_vm0, %v9572_v32 }
 0x1fe   : > { %v11275_v51 = vpop.f32.mrf.mxu0 }
 0x1ff   : > { %13055 = vst [vmem:[#allocation92_spill] sm:$0xff] %v11275_v51  ;;  %v11300_v51 = vpop.f32.mrf.mxu3  ;;  %v2429_v25 = vpop.f32.mrf.mxu2 }
 0x200   : > { %13059 = vst [vmem:[#allocation96_spill] sm:$0xff] %v11300_v51 }
 0x201   : > { %v11305_v22 = vpop.f32.mrf.mxu1 }
 0x206   : > { %v11298_v50 = vpop.f32.mrf.mxu0 }
 0x207   : > { %13058 = vst [vmem:[#allocation95_spill] sm:$0xff] %v11298_v50  ;;  %v11309_v43 = vpop.f32.mrf.mxu3  ;;  %v9627_v50 = vld [vmem:[%s12927_s0 + $0x470] sm:$0xff]  ;;  %v2431_v2 = vpop.f32.mrf.mxu2 }
 0x208   : > { %13061 = vst [vmem:[#allocation98_spill] sm:$0xff] %v11309_v43  ;;  %7926 = vmatmul.msk.bf16.gmra.mxu2 %vm1492_vm0, %v9593_v17  ;;  %7960 = vmatmul.msk.bf16.gmra.mxu3 %vm1492_vm0, %v9627_v50  ;;  %v9517_v43 = vld [vmem:[%s12927_s0 + $0x100] sm:$0xff]  ;;  %v11336_v17 = vld [vmem:[%s10979_s24 + $0x28] sm:$0xff] }
 0x209   : > { %7849 = vmatmul.msk.bf16.gmra.mxu0 %vm1492_vm0, %v9516_v57  ;;  %v9573_v57 = vld [vmem:[%s12927_s0 + $0x2c0] sm:$0xff]  ;;  %3698 = vmatpush.bf16.msrb.mxu2 %v11336_v17 }
 0x20a   : > { %7906 = vmatmul.msk.bf16.gmra.mxu1 %vm1492_vm0, %v9573_v57 }
 0x20e   : > { %v11307_v32 = vpop.f32.mrf.mxu0 }
 0x20f   : > { %13060 = vst [vmem:[#allocation97_spill] sm:$0xff] %v11307_v32  ;;  %v11328_v3 = vpop.f32.mrf.mxu3  ;;  %v11330_v32 = vpop.f32.mrf.mxu1 }
 0x210   : > { %13063 = vst [vmem:[#allocation100_spill] sm:$0xff] %v11328_v3  ;;  %v11339_v50 = vpop.f32.mrf.mxu2 }
 0x211   : > { %13064 = vst [vmem:[#allocation101_spill] sm:$0xff] %v11330_v32 }
 0x216   : > { %v11326_v51 = vpop.f32.mrf.mxu0 }
 0x217   : > { %13062 = vst [vmem:[#allocation99_spill] sm:$0xff] %v11326_v51  ;;  %v11343_v11 = vpop.f32.mrf.mxu3  ;;  %v9594_v51 = vld [vmem:[%s12927_s0 + $0x368] sm:$0xff]  ;;  %v11355_v3 = vpop.f32.mrf.mxu1 }
 0x218   : > { %13066 = vst [vmem:[#allocation103_spill] sm:$0xff] %v11343_v11  ;;  %7927 = vmatmul.msk.bf16.gmra.mxu2 %vm1492_vm0, %v9594_v51  ;;  %7961 = vmatmul.msk.bf16.gmra.mxu3 %vm1492_vm0, %v9628_v63  ;;  %v9518_v11 = vld [vmem:[%s12927_s0 + $0x108] sm:$0xff]  ;;  %v11364_v56 = vpop.f32.mrf.mxu2  ;;  %v9595_v63 = vld [vmem:[%s12927_s0 + $0x370] sm:$0xff] }
 0x219   : > { %7850 = vmatmul.msk.bf16.gmra.mxu0 %vm1492_vm0, %v9517_v43  ;;  %v9574_v43 = vld [vmem:[%s12927_s0 + $0x2c8] sm:$0xff]  ;;  %13067 = vst [vmem:[#allocation104_spill] sm:$0xff] %v11355_v3  ;;  %v9597_v3 = vld [vmem:[%s12927_s0 + $0x380] sm:$0xff] }
 0x21a   : > { %7907 = vmatmul.msk.bf16.gmra.mxu1 %vm1492_vm0, %v9574_v43 }
 0x21e   : > { %v11341_v57 = vpop.f32.mrf.mxu0 }
 0x21f   : > { %13065 = vst [vmem:[#allocation102_spill] sm:$0xff] %v11341_v57  ;;  %v2609_v57 = vpop.f32.mrf.mxu3 }
 0x220   : > { %v11373_v43 = vpop.f32.mrf.mxu2  ;;  %v2780_v46 = vmax.f32 %v2429_v25, %v2609_v57 }
 0x226   : > { %v11362_v44 = vpop.f32.mrf.mxu0 }
 0x227   : > { %13068 = vst [vmem:[#allocation105_spill] sm:$0xff] %v11362_v44  ;;  %v2611_v51 = vpop.f32.mrf.mxu3  ;;  %v9519_v44 = vld [vmem:[%s12927_s0 + $0x110] sm:$0xff] }
 0x228   : > { %7928 = vmatmul.msk.bf16.gmra.mxu2 %vm1492_vm0, %v9595_v63  ;;  %v2781_v57 = vmax.f32 %v2431_v2, %v2611_v51 }
 0x229   : > { %7851 = vmatmul.msk.bf16.gmra.mxu0 %vm1492_vm0, %v9518_v11  ;;  %v9647_v11 = vld [vmem:[%s10979_s24 + $0x60] sm:$0xff] }
 0x22a   : > { %3734 = vmatpush.bf16.msrb.mxu3 %v9647_v11  ;;  %3626 = vmatpush.bf16.msrb.mxu1 %v9647_v11 }
 0x22e   : > { %v11367_v8 = vpop.f32.mrf.mxu0 }
 0x22f   : > { %13069 = vst [vmem:[#allocation106_spill] sm:$0xff] %v11367_v8  ;;  %v2614_v1 = vpop.f32.mrf.mxu3  ;;  %v11382_v8 = vpop.f32.mrf.mxu2 }
 0x230   : > { %v2782_v51 = vmax.f32 %v11339_v50, %v2614_v1 }
 0x236   : > { %v11378_v54 = vpop.f32.mrf.mxu0 }
 0x237   : > { %13070 = vst [vmem:[#allocation107_spill] sm:$0xff] %v11378_v54  ;;  %v2616_v63 = vpop.f32.mrf.mxu3  ;;  %v11393_v55 = vpop.f32.mrf.mxu2 }
 0x238   : > { %7929 = vmatmul.msk.bf16.gmra.mxu2 %vm1492_vm0, %v9596_v62 }
 0x239   : > { %7852 = vmatmul.msk.bf16.gmra.mxu0 %vm1492_vm0, %v9519_v44  ;;  %v9520_v44 = vld [vmem:[%s12927_s0 + $0x118] sm:$0xff] }
 0x23e   : > { %v11384_v48 = vpop.f32.mrf.mxu0 }
 0x23f   : > { %13071 = vst [vmem:[#allocation108_spill] sm:$0xff] %v11384_v48  ;;  %v2619_v11 = vpop.f32.mrf.mxu3 }
 0x246   : > { %v2069_v54 = vpop.f32.mrf.mxu0 }
 0x247   : > { %v2708_v48 = vmax.f32 %v2069_v54, %v10778_v60  ;;  %v11409_v54 = vpop.f32.mrf.mxu2  ;;  %v11412_v60 = vpop.f32.mrf.mxu3 }
 0x248   : > { %7930 = vmatmul.msk.bf16.gmra.mxu2 %vm1492_vm0, %v9597_v3 }
 0x249   : > { %v2852_v39 = vmax.f32 %v2708_v48, %v2780_v46  ;;  %7853 = vmatmul.msk.bf16.gmra.mxu0 %vm1492_vm0, %v9520_v44  ;;  %v9521_v44 = vld [vmem:[%s12927_s0 + $0x120] sm:$0xff] }
 0x24b   : > { %v2925_v62 = vmul.f32 %v11396_v41, %v2852_v39 }
 0x24d   : > { %v2998_v25 = vadd.f32 %v11400_v53, %v2925_v62 }
 0x24e   : > { %v2071_v47 = vpop.f32.mrf.mxu0 }
 0x24f   : > { %v3070_v45 = vsub.f32 0.0, %v2998_v25  ;;  %v2709_v32 = vmax.f32 %v2071_v47, %v10791_v0  ;;  %v11422_v62 = vpop.f32.mrf.mxu2  ;;  %v11425_v50 = vpop.f32.mrf.mxu3 }
 0x251   : > { %v2853_v46 = vmax.f32 %v2709_v32, %v2781_v57  ;;  %v3196_v48 = vmul.f32 1.442695, %v3070_v45 }
 0x253   : > { %v2926_v39 = vmul.f32 %v11396_v41, %v2853_v46  ;;  %10169 = vpow2.f32 %v3196_v48  ;;  %v2783_v46 = vmax.f32 %v11364_v56, %v2616_v63  ;;  %v11430_v48 = vld [vmem:[%s10979_s24 + $0x20] sm:$0xff] }
 0x254   : > { %3699 = vmatpush.bf16.msrb.mxu2 %v11430_v48 }
 0x255   : > { %v2999_v2 = vadd.f32 %v11400_v53, %v2926_v39 }
 0x256   : > { %v2074_v47 = vpop.f32.mrf.mxu0 }
 0x257   : > { %v3071_v0 = vsub.f32 0.0, %v2999_v2  ;;  %v2710_v3 = vmax.f32 %v2074_v47, %v10809_v6  ;;  %v9598_v6 = vld [vmem:[%s12927_s0 + $0x388] sm:$0xff]  ;;  %v11439_v63 = vpop.f32.mrf.mxu2 }
 0x258   : > { %7931 = vmatmul.msk.bf16.gmra.mxu2 %vm1492_vm0, %v9598_v6 }
 0x259   : > { %v3198_v32 = vmul.f32 1.442695, %v3071_v0  ;;  %v2854_v45 = vmax.f32 %v2710_v3, %v2782_v51  ;;  %7854 = vmatmul.msk.bf16.gmra.mxu0 %vm1492_vm0, %v9521_v44  ;;  %v10170_v1 = vpop.eup %10169 }
 0x25a   : > { %v3286_v2 = vadd.f32 1.0, %v10170_v1 }
 0x25b   : > { %10171 = vpow2.f32 %v3198_v32  ;;  %v2927_v25 = vmul.f32 %v11396_v41, %v2854_v45 }
 0x25c   : > { %10173 = vrcp.f32 %v3286_v2 }
 0x25d   : > { %v3000_v57 = vadd.f32 %v11400_v53, %v2927_v25  ;;  %v2784_v25 = vmax.f32 %v11373_v43, %v2619_v11 }
 0x25e   : > { %v2076_v39 = vpop.f32.mrf.mxu0 }
 0x25f   : > { %v3072_v51 = vsub.f32 0.0, %v3000_v57  ;;  %v2711_v44 = vmax.f32 %v2076_v39, %v10819_v10  ;;  %v9522_v10 = vld [vmem:[%s12927_s0 + $0x128] sm:$0xff]  ;;  %v2626_v57 = vpop.f32.mrf.mxu3 }
 0x261   : > { %v10172_v47 = vpop.eup %10171  ;;  %v2855_v0 = vmax.f32 %v2711_v44, %v2783_v46  ;;  %v3200_v32 = vmul.f32 1.442695, %v3072_v51 }
 0x262   : > { %v3287_v3 = vadd.f32 1.0, %v10172_v47  ;;  %v10174_v6 = vpop.eup %10173 }
 0x263   : > { %v2928_v56 = vmul.f32 %v11396_v41, %v2855_v0 }
 0x264   : > { %10175 = vrcp.f32 %v3287_v3  ;;  %v2785_v3 = vmax.f32 %v11382_v8, %v11412_v60  ;;  %v2786_v8 = vmax.f32 %v11393_v55, %v11425_v50  ;;  %v9523_v60 = vld [vmem:[%s12927_s0 + $0x130] sm:$0xff] }
 0x265   : > { %v3001_v45 = vadd.f32 %v11400_v53, %v2928_v56  ;;  %10177 = vpow2.f32 %v3200_v32  ;;  %v11452_v56 = vpop.f32.mrf.mxu2 }
 0x266   : > { %v2079_v1 = vpop.f32.mrf.mxu0 }
 0x267   : > { %v3073_v46 = vsub.f32 0.0, %v3001_v45  ;;  %v2712_v39 = vmax.f32 %v2079_v1, %v10844_v21 }
 0x269   : > { %v3202_v2 = vmul.f32 1.442695, %v3073_v46  ;;  %v2856_v51 = vmax.f32 %v2712_v39, %v2784_v25  ;;  %7855 = vmatmul.msk.bf16.gmra.mxu0 %vm1492_vm0, %v9522_v10  ;;  %v2629_v10 = vpop.f32.mrf.mxu3 }
 0x26a   : > { %v10176_v44 = vpop.eup %10175 }
 0x26b   : > { %v10052_v47 = vpack.c.bf16 %v10176_v44, %v10174_v6  ;;  %10179 = vpow2.f32 %v3202_v2  ;;  %v2929_v43 = vmul.f32 %v11396_v41, %v2856_v51  ;;  %v10178_v11 = vpop.eup %10177 }
 0x26c   : > { %v3288_v21 = vadd.f32 1.0, %v10178_v11 }
 0x26d   : > { %10120 = vst [vmem:[#allocation2 + $0xc0] sm:$0xff] %v10052_v47   ;;  %v3002_v0 = vadd.f32 %v11400_v53, %v2929_v43  ;;  %v11463_v43 = vpop.f32.mrf.mxu2 }
 0x26e   : > { %v2081_v32 = vpop.f32.mrf.mxu0  ;;  %10181 = vrcp.f32 %v3288_v21 }
 0x26f   : > { %v3074_v45 = vsub.f32 0.0, %v3002_v0  ;;  %v2713_v25 = vmax.f32 %v2081_v32, %v10862_v31 }
 0x271   : > { %v10180_v1 = vpop.eup %10179  ;;  %v2857_v46 = vmax.f32 %v2713_v25, %v2785_v3  ;;  %v3204_v6 = vmul.f32 1.442695, %v3074_v45  ;;  %v2631_v21 = vpop.f32.mrf.mxu3 }
 0x272   : > { %v3289_v39 = vadd.f32 1.0, %v10180_v1  ;;  %v2787_v1 = vmax.f32 %v11409_v54, %v2626_v57  ;;  %v2788_v57 = vmax.f32 %v11422_v62, %v2629_v10 }
 0x273   : > { %v2930_v2 = vmul.f32 %v11396_v41, %v2857_v46 }
 0x274   : > { %10183 = vrcp.f32 %v3289_v39  ;;  %v10182_v11 = vpop.eup %10181 }
 0x275   : > { %v3003_v51 = vadd.f32 %v11400_v53, %v2930_v2  ;;  %10185 = vpow2.f32 %v3204_v6 }
 0x276   : > { %v2084_v31 = vpop.f32.mrf.mxu0 }
 0x277   : > { %v3075_v44 = vsub.f32 0.0, %v3003_v51  ;;  %v2714_v47 = vmax.f32 %v2084_v31, %v10873_v37  ;;  %v9646_v37 = vld [vmem:[%s10979_s24 + $0x58] sm:$0xff] }
 0x278   : > { %3627 = vmatpush.bf16.msrb.mxu1 %v9646_v37  ;;  %3735 = vmatpush.bf16.msrb.mxu3 %v9646_v37 }
 0x279   : > { %v3206_v0 = vmul.f32 1.442695, %v3075_v44  ;;  %v2858_v3 = vmax.f32 %v2714_v47, %v2786_v8  ;;  %7856 = vmatmul.msk.bf16.gmra.mxu0 %vm1492_vm0, %v9523_v60  ;;  %v11471_v44 = vpop.f32.mrf.mxu2 }
 0x27a   : > { %v10184_v32 = vpop.eup %10183 }
 0x27b   : > { %v10057_v55 = vpack.c.bf16 %v10184_v32, %v10182_v11  ;;  %10187 = vpow2.f32 %v3206_v0  ;;  %v2931_v50 = vmul.f32 %v11396_v41, %v2858_v3  ;;  %v10186_v45 = vpop.eup %10185  ;;  %v2634_v11 = vpop.f32.mrf.mxu3 }
 0x27c   : > { %v3290_v39 = vadd.f32 1.0, %v10186_v45 }
 0x27d   : > { %10121 = vst [vmem:[#allocation2 + $0x50] sm:$0xff] %v10057_v55   ;;  %v3004_v25 = vadd.f32 %v11400_v53, %v2931_v50 }
 0x27e   : > { %v2086_v46 = vpop.f32.mrf.mxu0  ;;  %10189 = vrcp.f32 %v3290_v39  ;;  %v2789_v39 = vmax.f32 %v11439_v63, %v2631_v21  ;;  %v2790_v21 = vmax.f32 %v11452_v56, %v2634_v11 }
 0x27f   : > { %v3076_v6 = vsub.f32 0.0, %v3004_v25  ;;  %v2715_v2 = vmax.f32 %v2086_v46, %v10894_v52  ;;  %v9524_v52 = vld [vmem:[%s12927_s0 + $0x138] sm:$0xff] }
 0x281   : > { %v10188_v51 = vpop.eup %10187  ;;  %v2859_v8 = vmax.f32 %v2715_v2, %v2787_v1  ;;  %v3208_v31 = vmul.f32 1.442695, %v3076_v6  ;;  %v11482_v37 = vpop.f32.mrf.mxu2  ;;  %v11487_v6 = vld [vmem:[%s10979_s24 + $0x18] sm:$0xff] }
 0x282   : > { %v3291_v60 = vadd.f32 1.0, %v10188_v51  ;;  %3700 = vmatpush.bf16.msrb.mxu2 %v11487_v6 }
 0x283   : > { %v2932_v47 = vmul.f32 %v11396_v41, %v2859_v8  ;;  %v2636_v2 = vpop.f32.mrf.mxu3 }
 0x284   : > { %10191 = vrcp.f32 %v3291_v60  ;;  %v10190_v55 = vpop.eup %10189 }
 0x285   : > { %v3005_v54 = vadd.f32 %v11400_v53, %v2932_v47  ;;  %10193 = vpow2.f32 %v3208_v31 }
 0x286   : > { %v2089_v0 = vpop.f32.mrf.mxu0 }
 0x287   : > { %v3077_v3 = vsub.f32 0.0, %v3005_v54  ;;  %v2716_v32 = vmax.f32 %v2089_v0, %v10914_v7  ;;  %v9525_v0 = vld [vmem:[%s12927_s0 + $0x140] sm:$0xff] }
 0x289   : > { %v3210_v50 = vmul.f32 1.442695, %v3077_v3  ;;  %v2860_v45 = vmax.f32 %v2716_v32, %v2788_v57  ;;  %7857 = vmatmul.msk.bf16.gmra.mxu0 %vm1492_vm0, %v9524_v52 }
 0x28a   : > { %v10192_v25 = vpop.eup %10191 }
 0x28b   : > { %v10062_v1 = vpack.c.bf16 %v10192_v25, %v10190_v55  ;;  %10195 = vpow2.f32 %v3210_v50  ;;  %v2933_v62 = vmul.f32 %v11396_v41, %v2860_v45  ;;  %v10194_v10 = vpop.eup %10193  ;;  %v2639_v50 = vpop.f32.mrf.mxu3 }
 0x28c   : > { %v3292_v51 = vadd.f32 1.0, %v10194_v10 }
 0x28d   : > { %10122 = vst [vmem:[#allocation2 + $0xf0] sm:$0xff] %v10062_v1   ;;  %v3006_v46 = vadd.f32 %v11400_v53, %v2933_v62 }
 0x28e   : > { %v2091_v7 = vpop.f32.mrf.mxu0  ;;  %10197 = vrcp.f32 %v3292_v51 }
 0x28f   : > { %v3078_v8 = vsub.f32 0.0, %v3006_v46  ;;  %v2717_v60 = vmax.f32 %v2091_v7, %v10927_v16  ;;  %v11497_v16 = vpop.f32.mrf.mxu2 }
 0x291   : > { %v10196_v31 = vpop.eup %10195  ;;  %v2861_v47 = vmax.f32 %v2717_v60, %v2789_v39  ;;  %v3212_v57 = vmul.f32 1.442695, %v3078_v8  ;;  %v2791_v39 = vmax.f32 %v11463_v43, %v2636_v2  ;;  %v2792_v2 = vmax.f32 %v11471_v44, %v2639_v50 }
 0x292   : > { %v3293_v54 = vadd.f32 1.0, %v10196_v31 }
 0x293   : > { %v2934_v52 = vmul.f32 %v11396_v41, %v2861_v47 }
 0x294   : > { %10199 = vrcp.f32 %v3293_v54  ;;  %v10198_v45 = vpop.eup %10197 }
 0x295   : > { %v3007_v63 = vadd.f32 %v11400_v53, %v2934_v52  ;;  %10201 = vpow2.f32 %v3212_v57  ;;  %v2641_v52 = vpop.f32.mrf.mxu3 }
 0x296   : > { %v2094_v3 = vpop.f32.mrf.mxu0 }
 0x297   : > { %v3079_v32 = vsub.f32 0.0, %v3007_v63  ;;  %v2718_v55 = vmax.f32 %v2094_v3, %v10945_v49  ;;  %v11505_v60 = vpop.f32.mrf.mxu2 }
 0x299   : > { %v3214_v25 = vmul.f32 1.442695, %v3079_v32  ;;  %v2862_v1 = vmax.f32 %v2718_v55, %v2790_v21  ;;  %7858 = vmatmul.msk.bf16.gmra.mxu0 %vm1492_vm0, %v9525_v0  ;;  %v11508_v21 = vpop.f32.mrf.mxu1 }
 0x29a   : > { %v10200_v62 = vpop.eup %10199 }
 0x29b   : > { %v10067_v10 = vpack.c.bf16 %v10200_v62, %v10198_v45  ;;  %10203 = vpow2.f32 %v3214_v25  ;;  %v2935_v56 = vmul.f32 %v11396_v41, %v2862_v1  ;;  %v10202_v11 = vpop.eup %10201 }
 0x29c   : > { %v3294_v51 = vadd.f32 1.0, %v10202_v11 }
 0x29d   : > { %10123 = vst [vmem:[#allocation2 + $0xb8] sm:$0xff] %v10067_v10   ;;  %v3008_v46 = vadd.f32 %v11400_v53, %v2935_v56  ;;  %v2644_v56 = vpop.f32.mrf.mxu3 }
 0x29e   : > { %v2096_v7 = vpop.f32.mrf.mxu0  ;;  %10205 = vrcp.f32 %v3294_v51 }
 0x29f   : > { %v3080_v49 = vsub.f32 0.0, %v3008_v46  ;;  %v2719_v8 = vmax.f32 %v2096_v7, %v10955_v4  ;;  %v9526_v4 = vld [vmem:[%s12927_s0 + $0x148] sm:$0xff]  ;;  %v11517_v62 = vpop.f32.mrf.mxu2  ;;  %v2793_v46 = vmax.f32 %v11482_v37, %v2641_v52  ;;  %v2794_v52 = vmax.f32 %v11497_v16, %v2644_v56 }
 0x2a1   : > { %v10204_v31 = vpop.eup %10203  ;;  %v2863_v47 = vmax.f32 %v2719_v8, %v2791_v39  ;;  %v3216_v57 = vmul.f32 1.442695, %v3080_v49  ;;  %v11523_v7 = vpop.f32.mrf.mxu1 }
 0x2a2   : > { %v3295_v54 = vadd.f32 1.0, %v10204_v31 }
 0x2a3   : > { %v2936_v63 = vmul.f32 %v11396_v41, %v2863_v47 }
 0x2a4   : > { %10207 = vrcp.f32 %v3295_v54  ;;  %v10206_v55 = vpop.eup %10205 }
 0x2a5   : > { %v3009_v43 = vadd.f32 %v11400_v53, %v2936_v63  ;;  %10209 = vpow2.f32 %v3216_v57 }
 0x2a6   : > { %v2099_v0 = vpop.f32.mrf.mxu0 }
 0x2a7   : > { %v3081_v3 = vsub.f32 0.0, %v3009_v43  ;;  %v2720_v32 = vmax.f32 %v2099_v0, %v10989_v27  ;;  %v9645_v27 = vld [vmem:[%s10979_s24 + $0x50] sm:$0xff]  ;;  %v11527_v43 = vpop.f32.mrf.mxu2 }
 0x2a8   : > { %3628 = vmatpush.bf16.msrb.mxu1 %v9645_v27  ;;  %3736 = vmatpush.bf16.msrb.mxu3 %v9645_v27 }
 0x2a9   : > { %v3218_v45 = vmul.f32 1.442695, %v3081_v3  ;;  %v2864_v25 = vmax.f32 %v2720_v32, %v2792_v2  ;;  %7859 = vmatmul.msk.bf16.gmra.mxu0 %vm1492_vm0, %v9526_v4  ;;  %v2646_v4 = vpop.f32.mrf.mxu3 }
 0x2aa   : > { %v10208_v1 = vpop.eup %10207  ;;  %v2795_v56 = vmax.f32 %v11505_v60, %v2646_v4 }
 0x2ab   : > { %v10072_v10 = vpack.c.bf16 %v10208_v1, %v10206_v55  ;;  %10211 = vpow2.f32 %v3218_v45  ;;  %v2937_v44 = vmul.f32 %v11396_v41, %v2864_v25  ;;  %v10210_v50 = vpop.eup %10209  ;;  %v11535_v55 = vpop.f32.mrf.mxu1 }
 0x2ac   : > { %v3296_v51 = vadd.f32 1.0, %v10210_v50 }
 0x2ad   : > { %10124 = vst [vmem:[#allocation2 + $0x28] sm:$0xff] %v10072_v10   ;;  %v3010_v11 = vadd.f32 %v11400_v53, %v2937_v44 }
 0x2ae   : > { %v2101_v39 = vpop.f32.mrf.mxu0  ;;  %10213 = vrcp.f32 %v3296_v51 }
 0x2af   : > { %v3082_v49 = vsub.f32 0.0, %v3010_v11  ;;  %v2721_v8 = vmax.f32 %v2101_v39, %v11009_v13  ;;  %v9527_v13 = vld [vmem:[%s12927_s0 + $0x150] sm:$0xff] }
 0x2b0   : > { %v11542_v11 = vld [vmem:[%s10979_s24 + $0x10] sm:$0xff] }
 0x2b1   : > { %v10212_v31 = vpop.eup %10211  ;;  %v2865_v47 = vmax.f32 %v2721_v8, %v2793_v46  ;;  %v3220_v57 = vmul.f32 1.442695, %v3082_v49  ;;  %3701 = vmatpush.bf16.msrb.mxu2 %v11542_v11  ;;  %v2649_v49 = vpop.f32.mrf.mxu3 }
 0x2b2   : > { %v3297_v54 = vadd.f32 1.0, %v10212_v31 }
 0x2b3   : > { %v2938_v63 = vmul.f32 %v11396_v41, %v2865_v47 }
 0x2b4   : > { %10215 = vrcp.f32 %v3297_v54  ;;  %v10214_v32 = vpop.eup %10213 }
 0x2b5   : > { %v3011_v37 = vadd.f32 %v11400_v53, %v2938_v63  ;;  %10217 = vpow2.f32 %v3220_v57  ;;  %v11546_v57 = vpop.f32.mrf.mxu1 }
 0x2b6   : > { %v2104_v2 = vpop.f32.mrf.mxu0 }
 0x2b7   : > { %v3083_v0 = vsub.f32 0.0, %v3011_v37  ;;  %v2722_v3 = vmax.f32 %v2104_v2, %v11022_v58  ;;  %v2474_v58 = vpop.f32.mrf.mxu2  ;;  %v2796_v37 = vmax.f32 %v11517_v62, %v2649_v49 }
 0x2b9   : > { %v3222_v45 = vmul.f32 1.442695, %v3083_v0  ;;  %v2866_v25 = vmax.f32 %v2722_v3, %v2794_v52  ;;  %7860 = vmatmul.msk.bf16.gmra.mxu0 %vm1492_vm0, %v9527_v13 }
 0x2ba   : > { %v10216_v1 = vpop.eup %10215 }
 0x2bb   : > { %v10077_v16 = vpack.c.bf16 %v10216_v1, %v10214_v32  ;;  %10219 = vpow2.f32 %v3222_v45  ;;  %v2939_v10 = vmul.f32 %v11396_v41, %v2866_v25  ;;  %v10218_v44 = vpop.eup %10217  ;;  %v2651_v25 = vpop.f32.mrf.mxu3 }
 0x2bc   : > { %v3298_v27 = vadd.f32 1.0, %v10218_v44 }
 0x2bd   : > { %10125 = vst [vmem:[#allocation2 + $0x100] sm:$0xff] %v10077_v16   ;;  %v3012_v50 = vadd.f32 %v11400_v53, %v2939_v10  ;;  %v11557_v10 = vpop.f32.mrf.mxu1 }
 0x2be   : > { %v2106_v46 = vpop.f32.mrf.mxu0  ;;  %10221 = vrcp.f32 %v3298_v27 }
 0x2bf   : > { %v3084_v39 = vsub.f32 0.0, %v3012_v50  ;;  %v2723_v51 = vmax.f32 %v2106_v46, %v11047_v30  ;;  %v9528_v30 = vld [vmem:[%s12927_s0 + $0x158] sm:$0xff]  ;;  %v2476_v4 = vpop.f32.mrf.mxu2 }
 0x2c1   : > { %v10220_v8 = vpop.eup %10219  ;;  %v2867_v31 = vmax.f32 %v2723_v51, %v2795_v56  ;;  %v3224_v54 = vmul.f32 1.442695, %v3084_v39 }
 0x2c2   : > { %v3299_v47 = vadd.f32 1.0, %v10220_v8 }
 0x2c3   : > { %v2940_v60 = vmul.f32 %v11396_v41, %v2867_v31 }
 0x2c4   : > { %10223 = vrcp.f32 %v3299_v47  ;;  %v10222_v0 = vpop.eup %10221 }
 0x2c5   : > { %v3013_v63 = vadd.f32 %v11400_v53, %v2940_v60  ;;  %10225 = vpow2.f32 %v3224_v54 }
 0x2c6   : > { %v2109_v52 = vpop.f32.mrf.mxu0 }
 0x2c7   : > { %v3085_v13 = vsub.f32 0.0, %v3013_v63  ;;  %v2724_v2 = vmax.f32 %v2109_v52, %v11071_v14  ;;  %v2797_v14 = vmax.f32 %v11527_v43, %v2651_v25  ;;  %v2479_v8 = vpop.f32.mrf.mxu2  ;;  %v9529_v43 = vld [vmem:[%s12927_s0 + $0x160] sm:$0xff]  ;;  %v11567_v63 = vpop.f32.mrf.mxu1 }
 0x2c9   : > { %v3226_v3 = vmul.f32 1.442695, %v3085_v13  ;;  %v2868_v32 = vmax.f32 %v2724_v2, %v2796_v37  ;;  %7861 = vmatmul.msk.bf16.gmra.mxu0 %vm1492_vm0, %v9528_v30 }
 0x2ca   : > { %v10224_v45 = vpop.eup %10223 }
 0x2cb   : > { %v10082_v1 = vpack.c.bf16 %v10224_v45, %v10222_v0  ;;  %10227 = vpow2.f32 %v3226_v3  ;;  %v2941_v62 = vmul.f32 %v11396_v41, %v2868_v32  ;;  %v10226_v16 = vpop.eup %10225 }
 0x2cc   : > { %v3300_v56 = vadd.f32 1.0, %v10226_v16 }
 0x2cd   : > { %10126 = vst [vmem:[#allocation2] sm:$0xff] %v10082_v1   ;;  %v3014_v44 = vadd.f32 %v11400_v53, %v2941_v62 }
 0x2ce   : > { %v2111_v50 = vpop.f32.mrf.mxu0  ;;  %10229 = vrcp.f32 %v3300_v56 }
 0x2cf   : > { %v3086_v46 = vsub.f32 0.0, %v3014_v44  ;;  %v2725_v27 = vmax.f32 %v2111_v50, %v11090_v59  ;;  %v2726_v59 = vmax.f32 %v11113_v5, %v2474_v58  ;;  %v2481_v25 = vpop.f32.mrf.mxu2  ;;  %v11575_v5 = vld [vmem:[%s10979_s24 + $0x8] sm:$0xff]  ;;  %v11580_v50 = vpop.f32.mrf.mxu1 }
 0x2d0   : > { %3702 = vmatpush.bf16.msrb.mxu2 %v11575_v5 }
 0x2d1   : > { %v10228_v39 = vpop.eup %10227  ;;  %v2869_v51 = vmax.f32 %v2725_v27, %v2797_v14  ;;  %v3228_v31 = vmul.f32 1.442695, %v3086_v46  ;;  %v11583_v46 = vld [vmem:[%s10979_s24] sm:$0xff] }
 0x2d2   : > { %v3301_v49 = vadd.f32 1.0, %v10228_v39 }
 0x2d3   : > { %v2942_v47 = vmul.f32 %v11396_v41, %v2869_v51 }
 0x2d4   : > { %10231 = vrcp.f32 %v3301_v49  ;;  %v10230_v52 = vpop.eup %10229  ;;  %3703 = vmatpush.bf16.msrb.mxu2 %v11583_v46 }
 0x2d5   : > { %v3015_v54 = vadd.f32 %v11400_v53, %v2942_v47  ;;  %10233 = vpow2.f32 %v3228_v31  ;;  %v2728_v47 = vmax.f32 %v11159_v35, %v2479_v8  ;;  %v9644_v8 = vld [vmem:[%s10979_s24 + $0x48] sm:$0xff] }
 0x2d6   : > { %v2114_v60 = vpop.f32.mrf.mxu0  ;;  %3629 = vmatpush.bf16.msrb.mxu1 %v9644_v8  ;;  %3737 = vmatpush.bf16.msrb.mxu3 %v9644_v8 }
 0x2d7   : > { %v3087_v37 = vsub.f32 0.0, %v3015_v54  ;;  %v2654_v30 = vmax.f32 %v10652_v18, %v2114_v60  ;;  %v2727_v18 = vmax.f32 %v11130_v26, %v2476_v4  ;;  %v9661_v4 = vld [vmem:[%s10979_s24 + $0xb8] sm:$0xff]  ;;  %v2484_v49 = vpop.f32.mrf.mxu2 }
 0x2d8   : > { %3862 = vmatpush.bf16.msra.mxu2 %v9661_v4 }
 0x2d9   : > { %v3230_v13 = vmul.f32 1.442695, %v3087_v37  ;;  %v2798_v2 = vmax.f32 %v2654_v30, %v2726_v59  ;;  %7862 = vmatmul.msk.bf16.gmra.mxu0 %vm1492_vm0, %v9529_v43  ;;  %v9660_v30 = vld [vmem:[%s10979_s24 + $0xb0] sm:$0xff] }
 0x2da   : > { %v10232_v0 = vpop.eup %10231 }
 0x2db   : > { %v10087_v3 = vpack.c.bf16 %v10232_v0, %v10230_v52  ;;  %10235 = vpow2.f32 %v3230_v13  ;;  %v2871_v32 = vmul.f32 %v11396_v41, %v2798_v2  ;;  %v10234_v45 = vpop.eup %10233  ;;  %v11596_v13 = vpop.f32.mrf.mxu1 }
 0x2dc   : > { %v3302_v62 = vadd.f32 1.0, %v10234_v45  ;;  %3863 = vmatpush.bf16.msra.mxu2 %v9660_v30  ;;  %v2729_v45 = vmax.f32 %v11183_v12, %v2481_v25 }
 0x2dd   : > { %10127 = vst [vmem:[#allocation2 + $0x40] sm:$0xff] %v10087_v3   ;;  %v2944_v1 = vadd.f32 %v11400_v53, %v2871_v32  ;;  %v9659_v3 = vld [vmem:[%s10979_s24 + $0xa8] sm:$0xff] }
 0x2de   : > { %v2116_v58 = vpop.f32.mrf.mxu0  ;;  %10237 = vrcp.f32 %v3302_v62 }
 0x2df   : > { %v3016_v16 = vsub.f32 0.0, %v2944_v1  ;;  %v2655_v44 = vmax.f32 %v10655_v19, %v2116_v58  ;;  %v9530_v19 = vld [vmem:[%s12927_s0 + $0x168] sm:$0xff]  ;;  %v2486_v62 = vpop.f32.mrf.mxu2 }
 0x2e0   : > { %3864 = vmatpush.bf16.msra.mxu2 %v9659_v3 }
 0x2e1   : > { %v10236_v14 = vpop.eup %10235  ;;  %v2799_v56 = vmax.f32 %v2655_v44, %v2727_v18  ;;  %v3088_v39 = vmul.f32 1.442695, %v3016_v16 }
 0x2e2   : > { %v3303_v27 = vadd.f32 1.0, %v10236_v14  ;;  %v9643_v14 = vld [vmem:[%s10979_s24 + $0x40] sm:$0xff] }
 0x2e3   : > { %v2872_v51 = vmul.f32 %v11396_v41, %v2799_v56  ;;  %v9658_v56 = vld [vmem:[%s10979_s24 + $0xa0] sm:$0xff]  ;;  %3630 = vmatpush.bf16.msrb.mxu1 %v9643_v14  ;;  %3738 = vmatpush.bf16.msrb.mxu3 %v9643_v14  ;;  %v11608_v12 = vpop.f32.mrf.mxu1 }
 0x2e4   : > { %10239 = vrcp.f32 %v3303_v27  ;;  %v10238_v60 = vpop.eup %10237  ;;  %3865 = vmatpush.bf16.msra.mxu2 %v9658_v56 }
 0x2e5   : > { %v2945_v26 = vadd.f32 %v11400_v53, %v2872_v51  ;;  %10241 = vpow2.f32 %v3088_v39 }
 0x2e6   : > { %v2119_v31 = vpop.f32.mrf.mxu0 }
 0x2e7   : > { %v3017_v54 = vsub.f32 0.0, %v2945_v26  ;;  %v2656_v43 = vmax.f32 %v10668_v23, %v2119_v31  ;;  %v9531_v26 = vld [vmem:[%s12927_s0 + $0x170] sm:$0xff]  ;;  %3901 = vmatpush.bf16.msra.mxu3 %v9661_v4  ;;  %v2489_v4 = vpop.f32.mrf.mxu2 }
 0x2e9   : > { %v3090_v59 = vmul.f32 1.442695, %v3017_v54  ;;  %v2800_v37 = vmax.f32 %v2656_v43, %v2728_v47  ;;  %7863 = vmatmul.msk.bf16.gmra.mxu0 %vm1492_vm0, %v9530_v19  ;;  %v9657_v19 = vld [vmem:[%s10979_s24 + $0x98] sm:$0xff]  ;;  %v2730_v47 = vmax.f32 %v11198_v42, %v2484_v49 }
 0x2ea   : > { %v10240_v52 = vpop.eup %10239  ;;  %3866 = vmatpush.bf16.msra.mxu2 %v9657_v19 }
 0x2eb   : > { %v10092_v2 = vpack.c.bf16 %v10240_v52, %v10238_v60  ;;  %10243 = vpow2.f32 %v3090_v59  ;;  %v2873_v0 = vmul.f32 %v11396_v41, %v2800_v37  ;;  %v10242_v35 = vpop.eup %10241  ;;  %v9656_v52 = vld [vmem:[%s10979_s24 + $0x90] sm:$0xff]  ;;  %3902 = vmatpush.bf16.msra.mxu3 %v9660_v30  ;;  %v2731_v30 = vmax.f32 %v11222_v9, %v2486_v62  ;;  %v9532_v9 = vld [vmem:[%s12927_s0 + $0x178] sm:$0xff] }
 0x2ec   : > { %v3232_v1 = vadd.f32 1.0, %v10242_v35  ;;  %v2732_v62 = vmax.f32 %v11251_v36, %v2489_v4 }
 0x2ed   : > { %10128 = vst [vmem:[#allocation2 + $0xe8] sm:$0xff] %v10092_v2   ;;  %v2946_v23 = vadd.f32 %v11400_v53, %v2873_v0 }
 0x2ee   : > { %v2121_v32 = vpop.f32.mrf.mxu0  ;;  %10245 = vrcp.f32 %v3232_v1  ;;  %3867 = vmatpush.bf16.msra.mxu2 %v9656_v52 }
 0x2ef   : > { %v3018_v58 = vsub.f32 0.0, %v2946_v23  ;;  %v2657_v18 = vmax.f32 %v10671_v24, %v2121_v32  ;;  %v10481_v24 = vld [vmem:[%s10979_s24 + $0x38] sm:$0xff]  ;;  %3903 = vmatpush.bf16.msra.mxu3 %v9659_v3  ;;  %v11624_v23 = vpop.f32.mrf.mxu1 }
 0x2f0   : > { %3762 = vmatpush.bf16.msra.mxu1 %v10481_v24 }
 0x2f1   : > { %v10244_v16 = vpop.eup %10243  ;;  %v2801_v44 = vmax.f32 %v2657_v18, %v2729_v45  ;;  %v3092_v39 = vmul.f32 1.442695, %v3018_v58 }
 0x2f2   : > { %v3233_v27 = vadd.f32 1.0, %v10244_v16 }
 0x2f3   : > { %v2874_v51 = vmul.f32 %v11396_v41, %v2801_v44  ;;  %3904 = vmatpush.bf16.msra.mxu3 %v9658_v56  ;;  %v2491_v44 = vpop.f32.mrf.mxu2 }
 0x2f4   : > { %10247 = vrcp.f32 %v3233_v27  ;;  %3763 = vmatpush.bf16.msra.mxu1 %v11235_v20  ;;  %v10246_v60 = vpop.eup %10245  ;;  %v9655_v20 = vld [vmem:[%s10979_s24 + $0x88] sm:$0xff] }
 0x2f5   : > { %v2947_v25 = vadd.f32 %v11400_v53, %v2874_v51  ;;  %10249 = vpow2.f32 %v3092_v39  ;;  %3868 = vmatpush.bf16.msra.mxu2 %v9655_v20 }
 0x2f6   : > { %v2124_v31 = vpop.f32.mrf.mxu0 }
 0x2f7   : > { %v3019_v54 = vsub.f32 0.0, %v2947_v25  ;;  %v2658_v43 = vmax.f32 %v10684_v28, %v2124_v31  ;;  %3905 = vmatpush.bf16.msra.mxu3 %v9657_v19  ;;  %v11639_v51 = vpop.f32.mrf.mxu1 }
 0x2f8   : > { %3764 = vmatpush.bf16.msra.mxu1 %v11336_v17  ;;  %v9654_v17 = vld [vmem:[%s10979_s24 + $0x80] sm:$0xff] }
 0x2f9   : > { %v3094_v59 = vmul.f32 1.442695, %v3019_v54  ;;  %v2802_v37 = vmax.f32 %v2658_v43, %v2730_v47  ;;  %7864 = vmatmul.msk.bf16.gmra.mxu0 %vm1492_vm0, %v9531_v26  ;;  %3869 = vmatpush.bf16.msra.mxu2 %v9654_v17  ;;  %v2733_v47 = vmax.f32 %v11272_v15, %v2491_v44 }
 0x2fa   : > { %v10248_v2 = vpop.eup %10247 }
 0x2fb   : > { %v9917_v0 = vpack.c.bf16 %v10248_v2, %v10246_v60  ;;  %10251 = vpow2.f32 %v3094_v59  ;;  %v2875_v42 = vmul.f32 %v11396_v41, %v2802_v37  ;;  %v10250_v49 = vpop.eup %10249  ;;  %3906 = vmatpush.bf16.msra.mxu3 %v9656_v52  ;;  %v2494_v36 = vpop.f32.mrf.mxu2 }
 0x2fc   : > { %v3234_v8 = vadd.f32 1.0, %v10250_v49  ;;  %3765 = vmatpush.bf16.msra.mxu1 %v11430_v48 }
 0x2fd   : > { %9918 = vst [vmem:[#allocation2 + $0xb0] sm:$0xff] %v9917_v0   ;;  %v2948_v28 = vadd.f32 %v11400_v53, %v2875_v42  ;;  %v2734_v42 = vmax.f32 %v11293_v61, %v2494_v36 }
 0x2fe   : > { %v2126_v35 = vpop.f32.mrf.mxu0  ;;  %10253 = vrcp.f32 %v3234_v8 }
 0x2ff   : > { %v3020_v32 = vsub.f32 0.0, %v2948_v28  ;;  %v2659_v45 = vmax.f32 %v10687_v29, %v2126_v35  ;;  %3907 = vmatpush.bf16.msra.mxu3 %v9655_v20 }
 0x300   : > { %3766 = vmatpush.bf16.msra.mxu1 %v11487_v6 }
 0x301   : > { %v10252_v1 = vpop.eup %10251  ;;  %v2803_v58 = vmax.f32 %v2659_v45, %v2731_v30  ;;  %v3096_v16 = vmul.f32 1.442695, %v3020_v32 }
 0x302   : > { %v3235_v18 = vadd.f32 1.0, %v10252_v1 }
 0x303   : > { %v2876_v3 = vmul.f32 %v11396_v41, %v2803_v58  ;;  %3908 = vmatpush.bf16.msra.mxu3 %v9654_v17  ;;  %v2496_v20 = vpop.f32.mrf.mxu2 }
 0x304   : > { %10255 = vrcp.f32 %v3235_v18  ;;  %v9639_v14 = vld [vmem:[#allocation2 + $0xb0] sm:$0xff]  ;;  %3767 = vmatpush.bf16.msra.mxu1 %v11542_v11  ;;  %v10254_v39 = vpop.eup %10253 }
 0x305   : > { %v2949_v29 = vadd.f32 %v11400_v53, %v2876_v3  ;;  %10257 = vpow2.f32 %v3096_v16  ;;  %3704 = vmatmul.bf16.vlgmr.msrb.gmra.mxu2 %v9639_v14 }
 0x306   : > { %v2129_v48 = vpop.f32.mrf.mxu0 }
 0x307   : > { %v3021_v56 = vsub.f32 0.0, %v2949_v29  ;;  %v2660_v27 = vmax.f32 %v10700_v33, %v2129_v48 }
 0x308   : > { %3768 = vmatpush.bf16.msra.mxu1 %v11575_v5  ;;  %v11648_v5 = vpop.f32.mrf.mxu1 }
 0x309   : > { %v3098_v6 = vmul.f32 1.442695, %v3021_v56  ;;  %v2804_v24 = vmax.f32 %v2660_v27, %v2732_v62  ;;  %7865 = vmatmul.msk.bf16.gmra.mxu0 %vm1492_vm0, %v9532_v9 }
 0x30a   : > { %v10256_v25 = vpop.eup %10255 }
 0x30b   : > { %v9922_v26 = vpack.c.bf16 %v10256_v25, %v10254_v39  ;;  %10259 = vpow2.f32 %v3098_v6  ;;  %v2877_v19 = vmul.f32 %v11396_v41, %v2804_v24  ;;  %v10258_v31 = vpop.eup %10257  ;;  %v2499_v9 = vpop.f32.mrf.mxu2  ;;  %v13072_v25 = vld [vmem:[#allocation101_spill] sm:$0xff] }
 0x30c   : > { %v3236_v54 = vadd.f32 1.0, %v10258_v31  ;;  %3769 = vmatpush.bf16.msra.mxu1 %v11583_v46 }
 0x30d   : > { %10094 = vst [vmem:[#allocation2 + $0xd0] sm:$0xff] %v9922_v26   ;;  %v2950_v33 = vadd.f32 %v11400_v53, %v2877_v19  ;;  %v2736_v26 = vmax.f32 %v13072_v25, %v2499_v9  ;;  %v13073_v19 = vld [vmem:[#allocation5_spill] sm:$0xff] }
 0x30e   : > { %v2131_v11 = vpop.f32.mrf.mxu0  ;;  %10261 = vrcp.f32 %v3236_v54  ;;  %v11675_v54 = vld [vmem:[%s10587_s16] ss:$0 sm:$0xff] }
 0x30f   : > { %v3022_v43 = vsub.f32 0.0, %v2950_v33  ;;  %v2661_v60 = vmax.f32 %v10703_v34, %v2131_v11  ;;  %v9533_v34 = vld [vmem:[%s12927_s0 + $0x180] sm:$0xff] }
 0x310   : > { %v11659_v17 = vpop.f32.mrf.mxu1 }
 0x311   : > { %v10260_v59 = vpop.eup %10259  ;;  %v2805_v37 = vmax.f32 %v2661_v60, %v2733_v47  ;;  %v3100_v2 = vmul.f32 1.442695, %v3022_v43 }
 0x312   : > { %v3237_v52 = vadd.f32 1.0, %v10260_v59 }
 0x313   : > { %v2878_v4 = vmul.f32 %v11396_v41, %v2805_v37  ;;  %v2501_v59 = vpop.f32.mrf.mxu2  ;;  %v11679_v37 = vld [vmem:[%s10587_s16 + $0x1] ss:$0 sm:$0xff] }
 0x314   : > { %10263 = vrcp.f32 %v3237_v52  ;;  %v9640_v0 = vld [vmem:[#allocation2 + $0xd0] sm:$0xff]  ;;  %v10262_v35 = vpop.eup %10261 }
 0x315   : > { %v2951_v15 = vadd.f32 %v11400_v53, %v2878_v4  ;;  %10265 = vpow2.f32 %v3100_v2  ;;  %3631 = vmatmul.bf16.vlgmr.msrb.gmra.mxu1 %v9640_v0  ;;  %3709 = vmatmul.bf16.gmra.mxu2 %v9640_v0  ;;  %v13074_v4 = vld [vmem:[#allocation104_spill] sm:$0xff] }
 0x316   : > { %v2134_v46 = vpop.f32.mrf.mxu0  ;;  %v2737_v0 = vmax.f32 %v13074_v4, %v2501_v59  ;;  %v13080_v59 = vld [vmem:[#allocation6_spill] sm:$0xff]  ;;  %v13081_v4 = vld [vmem:[#allocation13_spill] sm:$0xff] }
 0x317   : > { %v3023_v49 = vsub.f32 0.0, %v2951_v15  ;;  %v2662_v28 = vmax.f32 %v10716_v38, %v2134_v46  ;;  %v2735_v38 = vmax.f32 %v11305_v22, %v2496_v20  ;;  %v9534_v22 = vld [vmem:[%s12927_s0 + $0x188] sm:$0xff]  ;;  %v13075_v46 = vld [vmem:[#allocation7_spill] sm:$0xff] }
 0x318   : > { %v11669_v24 = vpop.f32.mrf.mxu1 }
 0x319   : > { %v3102_v30 = vmul.f32 1.442695, %v3023_v49  ;;  %v2806_v8 = vmax.f32 %v2662_v28, %v2734_v42  ;;  %7866 = vmatmul.msk.bf16.gmra.mxu0 %vm1492_vm0, %v9533_v34 }
 0x31a   : > { %v10264_v32 = vpop.eup %10263 }
 0x31b   : > { %v9927_v45 = vpack.c.bf16 %v10264_v32, %v10262_v35  ;;  %10267 = vpow2.f32 %v3102_v30  ;;  %v2879_v1 = vmul.f32 %v11396_v41, %v2806_v8  ;;  %v10266_v58 = vpop.eup %10265 }
 0x31c   : > { %v3238_v16 = vadd.f32 1.0, %v10266_v58 }
 0x31d   : > { %10095 = vst [vmem:[#allocation2 + $0x10] sm:$0xff] %v9927_v45   ;;  %v2952_v61 = vadd.f32 %v11400_v53, %v2879_v1  ;;  %v9535_v1 = vld [vmem:[%s12927_s0 + $0x190] sm:$0xff] }
 0x31e   : > { %v2136_v18 = vpop.f32.mrf.mxu0  ;;  %10269 = vrcp.f32 %v3238_v16  ;;  %v13077_v16 = vld [vmem:[#allocation9_spill] sm:$0xff] }
 0x31f   : > { %v3024_v3 = vsub.f32 0.0, %v2952_v61  ;;  %v2663_v44 = vmax.f32 %v10721_v40, %v2136_v18  ;;  %v13076_v61 = vld [vmem:[#allocation3_spill] sm:$0xff] }
 0x320   : > { %v11684_v28 = vpop.f32.mrf.mxu1  ;;  %v2738_v18 = vmax.f32 %v11508_v21, %v13076_v61 }
 0x321   : > { %v10268_v14 = vpop.eup %10267  ;;  %v2807_v29 = vmax.f32 %v2663_v44, %v2735_v38  ;;  %v3104_v62 = vmul.f32 1.442695, %v3024_v3 }
 0x322   : > { %v3239_v48 = vadd.f32 1.0, %v10268_v14 }
 0x323   : > { %v2880_v56 = vmul.f32 %v11396_v41, %v2807_v29 }
 0x324   : > { %10271 = vrcp.f32 %v3239_v48  ;;  %v9651_v27 = vld [vmem:[#allocation2 + $0x10] sm:$0xff]  ;;  %v10270_v33 = vpop.eup %10269 }
 0x325   : > { %v9662_v39 = vld [vmem:[#allocation2 + $0x10] sm:$0xff]  ;;  %v2953_v6 = vadd.f32 %v11400_v53, %v2880_v56  ;;  %10273 = vpow2.f32 %v3104_v62  ;;  %3636 = vmatmul.bf16.gmra.mxu1 %v9651_v27 }
 0x326   : > { %v2139_v40 = vpop.f32.mrf.mxu0  ;;  %3870 = vmatmul.bf16.vlgmr.msra.gmra.mxu2 %v9662_v39 }
 0x327   : > { %v3025_v41 = vsub.f32 0.0, %v2953_v6  ;;  %v2664_v31 = vmax.f32 %v13073_v19, %v2139_v40  ;;  %v13078_v6 = vld [vmem:[#allocation4_spill] sm:$0xff] }
 0x328   : > { %v11695_v48 = vpop.f32.mrf.mxu1 }
 0x329   : > { %v3106_v36 = vmul.f32 1.442695, %v3025_v41  ;;  %v2808_v53 = vmax.f32 %v2664_v31, %v2736_v26  ;;  %7867 = vmatmul.msk.bf16.gmra.mxu0 %vm1492_vm0, %v9534_v22  ;;  %v2739_v22 = vmax.f32 %v11523_v7, %v13078_v6  ;;  %v13079_v26 = vld [vmem:[#allocation11_spill] sm:$0xff]  ;;  %v9536_v7 = vld [vmem:[%s12927_s0 + $0x198] sm:$0xff] }
 0x32a   : > { %v10272_v11 = vpop.eup %10271 }
 0x32b   : > { %v9932_v47 = vpack.c.bf16 %v10272_v11, %v10270_v33  ;;  %10275 = vpow2.f32 %v3106_v36  ;;  %v2881_v43 = vmul.f32 %v11675_v54, %v2808_v53  ;;  %v10274_v60 = vpop.eup %10273 }
 0x32c   : > { %v3240_v15 = vadd.f32 1.0, %v10274_v60 }
 0x32d   : > { %10096 = vst [vmem:[#allocation2 + $0x48] sm:$0xff] %v9932_v47   ;;  %v2954_v52 = vadd.f32 %v11679_v37, %v2881_v43  ;;  %v9673_v43 = vld [vmem:[%s10979_s24 + $0xf8] sm:$0xff] }
 0x32e   : > { %v2141_v2 = vpop.f32.mrf.mxu0  ;;  %10277 = vrcp.f32 %v3240_v15  ;;  %4005 = vmatpush.bf16.msrb.mxu1 %v9673_v43  ;;  %4044 = vmatpush.bf16.msrb.mxu2 %v9673_v43  ;;  %v9667_v43 = vld [vmem:[%s10979_s24 + $0xc8] sm:$0xff] }
 0x32f   : > { %v3026_v34 = vsub.f32 0.0, %v2954_v52  ;;  %v2665_v42 = vmax.f32 %v13075_v46, %v2141_v2  ;;  %v2740_v52 = vmax.f32 %v11535_v55, %v13080_v59  ;;  %v13086_v59 = vld [vmem:[#allocation12_spill] sm:$0xff] }
 0x330   : > { %v11703_v11 = vpop.f32.mrf.mxu1 }
 0x331   : > { %v10276_v49 = vpop.eup %10275  ;;  %v2809_v20 = vmax.f32 %v2665_v42, %v2737_v0  ;;  %v3108_v30 = vmul.f32 1.442695, %v3026_v34  ;;  %v9672_v42 = vld [vmem:[%s10979_s24 + $0xf0] sm:$0xff] }
 0x332   : > { %v3241_v35 = vadd.f32 1.0, %v10276_v49  ;;  %4006 = vmatpush.bf16.msrb.mxu1 %v9672_v42  ;;  %4045 = vmatpush.bf16.msrb.mxu2 %v9672_v42  ;;  %v9666_v42 = vld [vmem:[%s10979_s24 + $0xc0] sm:$0xff] }
 0x333   : > { %v2882_v8 = vmul.f32 %v11675_v54, %v2809_v20 }
 0x334   : > { %10279 = vrcp.f32 %v3241_v35  ;;  %v9663_v32 = vld [vmem:[#allocation2 + $0x48] sm:$0xff]  ;;  %v10278_v44 = vpop.eup %10277 }
 0x335   : > { %v2955_v45 = vadd.f32 %v11679_v37, %v2882_v8  ;;  %10281 = vpow2.f32 %v3108_v30  ;;  %v9671_v8 = vld [vmem:[%s10979_s24 + $0xe8] sm:$0xff] }
 0x336   : > { %v2144_v58 = vpop.f32.mrf.mxu0  ;;  %3875 = vmatmul.bf16.gmra.mxu2 %v9663_v32  ;;  %4007 = vmatpush.bf16.msrb.mxu1 %v9671_v8 }
 0x337   : > { %v3027_v38 = vsub.f32 0.0, %v2955_v45  ;;  %v2666_v3 = vmax.f32 %v13077_v16, %v2144_v58  ;;  %v13082_v45 = vld [vmem:[#allocation8_spill] sm:$0xff]  ;;  %4046 = vmatpush.bf16.msrb.mxu2 %v9671_v8 }
 0x338   : > { %v11720_v58 = vpop.f32.mrf.mxu1  ;;  %v9538_v8 = vld [vmem:[%s12927_s0 + $0x1a8] sm:$0xff] }
 0x339   : > { %v3110_v14 = vmul.f32 1.442695, %v3027_v38  ;;  %v2810_v29 = vmax.f32 %v2666_v3, %v2738_v18  ;;  %7868 = vmatmul.msk.bf16.gmra.mxu0 %vm1492_vm0, %v9535_v1  ;;  %v2741_v1 = vmax.f32 %v11546_v57, %v13082_v45  ;;  %v13083_v38 = vld [vmem:[#allocation15_spill] sm:$0xff] }
 0x33a   : > { %v10280_v9 = vpop.eup %10279 }
 0x33b   : > { %v9937_v62 = vpack.c.bf16 %v10280_v9, %v10278_v44  ;;  %10283 = vpow2.f32 %v3110_v14  ;;  %v2883_v56 = vmul.f32 %v11675_v54, %v2810_v29  ;;  %v10282_v27 = vpop.eup %10281  ;;  %v9670_v14 = vld [vmem:[%s10979_s24 + $0xe0] sm:$0xff] }
 0x33c   : > { %v3242_v40 = vadd.f32 1.0, %v10282_v27  ;;  %4008 = vmatpush.bf16.msrb.mxu1 %v9670_v14  ;;  %4047 = vmatpush.bf16.msrb.mxu2 %v9670_v14  ;;  %v9669_v27 = vld [vmem:[%s10979_s24 + $0xd8] sm:$0xff] }
 0x33d   : > { %10097 = vst [vmem:[#allocation2 + $0x108] sm:$0xff] %v9937_v62   ;;  %v2956_v39 = vadd.f32 %v11679_v37, %v2883_v56  ;;  %v9537_v56 = vld [vmem:[%s12927_s0 + $0x1a0] sm:$0xff] }
 0x33e   : > { %v2146_v21 = vpop.f32.mrf.mxu0  ;;  %10285 = vrcp.f32 %v3242_v40  ;;  %v13085_v40 = vld [vmem:[#allocation17_spill] sm:$0xff] }
 0x33f   : > { %v3028_v25 = vsub.f32 0.0, %v2956_v39  ;;  %v2667_v41 = vmax.f32 %v13079_v26, %v2146_v21  ;;  %v13084_v21 = vld [vmem:[#allocation10_spill] sm:$0xff] }
 0x340   : > { %v2742_v6 = vmax.f32 %v11557_v10, %v13084_v21  ;;  %4009 = vmatpush.bf16.msrb.mxu1 %v9669_v27  ;;  %4048 = vmatpush.bf16.msrb.mxu2 %v9669_v27 }
 0x341   : > { %v10284_v19 = vpop.eup %10283  ;;  %v2811_v31 = vmax.f32 %v2667_v41, %v2739_v22  ;;  %v3112_v36 = vmul.f32 1.442695, %v3028_v25  ;;  %v11733_v41 = vpop.f32.mrf.mxu1 }
 0x342   : > { %v3243_v33 = vadd.f32 1.0, %v10284_v19 }
 0x343   : > { %v2884_v53 = vmul.f32 %v11675_v54, %v2811_v31 }
 0x344   : > { %10287 = vrcp.f32 %v3243_v33  ;;  %v10286_v15 = vpop.eup %10285  ;;  %v9668_v33 = vld [vmem:[%s10979_s24 + $0xd0] sm:$0xff] }
 0x345   : > { %v2957_v47 = vadd.f32 %v11679_v37, %v2884_v53  ;;  %10289 = vpow2.f32 %v3112_v36  ;;  %4010 = vmatpush.bf16.msrb.mxu1 %v9668_v33  ;;  %4049 = vmatpush.bf16.msrb.mxu2 %v9668_v33 }
 0x346   : > { %v2149_v60 = vpop.f32.mrf.mxu0 }
 0x347   : > { %v3029_v2 = vsub.f32 0.0, %v2957_v47  ;;  %v2668_v0 = vmax.f32 %v13081_v4, %v2149_v60 }
 0x349   : > { %v3114_v34 = vmul.f32 1.442695, %v3029_v2  ;;  %v2812_v46 = vmax.f32 %v2668_v0, %v2740_v52  ;;  %7869 = vmatmul.msk.bf16.gmra.mxu0 %vm1492_vm0, %v9536_v7  ;;  %v2743_v52 = vmax.f32 %v11567_v63, %v13086_v59  ;;  %v13087_v0 = vld [vmem:[#allocation19_spill] sm:$0xff]  ;;  %4011 = vmatpush.bf16.msrb.mxu1 %v9667_v43 }
 0x34a   : > { %v10288_v49 = vpop.eup %10287  ;;  %4050 = vmatpush.bf16.msrb.mxu2 %v9667_v43 }
 0x34b   : > { %v9942_v20 = vpack.c.bf16 %v10288_v49, %v10286_v15  ;;  %10291 = vpow2.f32 %v3114_v34  ;;  %v2885_v35 = vmul.f32 %v11675_v54, %v2812_v46  ;;  %v10290_v55 = vpop.eup %10289 }
 0x34c   : > { %v3244_v61 = vadd.f32 1.0, %v10290_v55 }
 0x34d   : > { %10098 = vst [vmem:[#allocation2 + $0x68] sm:$0xff] %v9942_v20   ;;  %v2958_v30 = vadd.f32 %v11679_v37, %v2885_v35  ;;  %v11744_v35 = vpop.f32.mrf.mxu1  ;;  %4012 = vmatpush.bf16.msrb.mxu1 %v9666_v42 }
 0x34e   : > { %v2151_v32 = vpop.f32.mrf.mxu0  ;;  %10293 = vrcp.f32 %v3244_v61  ;;  %4051 = vmatpush.bf16.msrb.mxu2 %v9666_v42 }
 0x34f   : > { %v3030_v18 = vsub.f32 0.0, %v2958_v30  ;;  %v2669_v16 = vmax.f32 %v13083_v38, %v2151_v32  ;;  %v9685_v32 = vld [vmem:[%s10979_s24 + $0x138] sm:$0xff]  ;;  %v13089_v38 = vld [vmem:[#allocation21_spill] sm:$0xff] }
 0x351   : > { %v10292_v3 = vpop.eup %10291  ;;  %v2813_v44 = vmax.f32 %v2669_v16, %v2741_v1  ;;  %v3116_v9 = vmul.f32 1.442695, %v3030_v18  ;;  %v13088_v1 = vld [vmem:[#allocation14_spill] sm:$0xff] }
 0x352   : > { %v3245_v29 = vadd.f32 1.0, %v10292_v3  ;;  %v2744_v61 = vmax.f32 %v11580_v50, %v13088_v1 }
 0x353   : > { %v2886_v62 = vmul.f32 %v11675_v54, %v2813_v44 }
 0x354   : > { %10295 = vrcp.f32 %v3245_v29  ;;  %v10294_v26 = vpop.eup %10293  ;;  %v9684_v29 = vld [vmem:[%s10979_s24 + $0x130] sm:$0xff] }
 0x355   : > { %v2959_v57 = vadd.f32 %v11679_v37, %v2886_v62  ;;  %10297 = vpow2.f32 %v3116_v9  ;;  %v11761_v50 = vpop.f32.mrf.mxu1 }
 0x356   : > { %v2154_v39 = vpop.f32.mrf.mxu0 }
 0x357   : > { %v3031_v22 = vsub.f32 0.0, %v2959_v57  ;;  %v2670_v25 = vmax.f32 %v13085_v40, %v2154_v39  ;;  %v9683_v39 = vld [vmem:[%s10979_s24 + $0x128] sm:$0xff] }
 0x359   : > { %v3118_v19 = vmul.f32 1.442695, %v3031_v22  ;;  %v2814_v31 = vmax.f32 %v2670_v25, %v2742_v6  ;;  %7870 = vmatmul.msk.bf16.gmra.mxu0 %vm1492_vm0, %v9537_v56  ;;  %v13090_v6 = vld [vmem:[#allocation16_spill] sm:$0xff] }
 0x35a   : > { %v10296_v36 = vpop.eup %10295  ;;  %v2745_v22 = vmax.f32 %v11596_v13, %v13090_v6 }
 0x35b   : > { %v9947_v53 = vpack.c.bf16 %v10296_v36, %v10294_v26  ;;  %10299 = vpow2.f32 %v3118_v19  ;;  %v2887_v47 = vmul.f32 %v11675_v54, %v2814_v31  ;;  %v10298_v10 = vpop.eup %10297  ;;  %v13091_v26 = vld [vmem:[#allocation23_spill] sm:$0xff] }
 0x35c   : > { %v3246_v2 = vadd.f32 1.0, %v10298_v10  ;;  %v9682_v36 = vld [vmem:[%s10979_s24 + $0x120] sm:$0xff] }
 0x35d   : > { %10099 = vst [vmem:[#allocation2 + $0x30] sm:$0xff] %v9947_v53   ;;  %v2960_v7 = vadd.f32 %v11679_v37, %v2887_v47 }
 0x35e   : > { %v2156_v60 = vpop.f32.mrf.mxu0  ;;  %10301 = vrcp.f32 %v3246_v2  ;;  %v11782_v2 = vld [vmem:[%s10979_s24 + $0x178] sm:$0xff] }
 0x35f   : > { %v3032_v4 = vsub.f32 0.0, %v2960_v7  ;;  %v2671_v15 = vmax.f32 %v13087_v0, %v2156_v60  ;;  %v9539_v60 = vld [vmem:[%s12927_s0 + $0x1b0] sm:$0xff]  ;;  %4275 = vmatpush.bf16.msra.mxu2 %v11782_v2 }
 0x361   : > { %v10300_v34 = vpop.eup %10299  ;;  %v2815_v46 = vmax.f32 %v2671_v15, %v2743_v52  ;;  %v3120_v20 = vmul.f32 1.442695, %v3032_v4  ;;  %v9681_v52 = vld [vmem:[%s10979_s24 + $0x118] sm:$0xff]  ;;  %v11786_v15 = vpop.f32.mrf.mxu1 }
 0x362   : > { %v3247_v49 = vadd.f32 1.0, %v10300_v34  ;;  %v13092_v4 = vld [vmem:[#allocation18_spill] sm:$0xff] }
 0x363   : > { %v2888_v55 = vmul.f32 %v11675_v54, %v2815_v46  ;;  %v2746_v0 = vmax.f32 %v11608_v12, %v13092_v4  ;;  %v13093_v46 = vld [vmem:[#allocation25_spill] sm:$0xff] }
 0x364   : > { %10303 = vrcp.f32 %v3247_v49  ;;  %v11747_v63 = vld [vmem:[#allocation2 + $0x30] sm:$0xff]  ;;  %v10302_v3 = vpop.eup %10301 }
 0x365   : > { %v2961_v30 = vadd.f32 %v11679_v37, %v2888_v55  ;;  %10305 = vpow2.f32 %v3120_v20  ;;  %3770 = vmatmul.bf16.vlgmr.msra.gmra.mxu1 %v11747_v63 }
 0x366   : > { %v2159_v45 = vpop.f32.mrf.mxu0  ;;  %4187 = vmatpush.bf16.msra.mxu1 %v9685_v32 }
 0x367   : > { %v3033_v18 = vsub.f32 0.0, %v2961_v30  ;;  %v2672_v16 = vmax.f32 %v13089_v38, %v2159_v45  ;;  %v11793_v45 = vld [vmem:[%s10979_s24 + $0x170] sm:$0xff]  ;;  %v11799_v38 = vld [vmem:[%s10979_s24 + $0x108] sm:$0xff] }
 0x368   : > { %4276 = vmatpush.bf16.msra.mxu2 %v11793_v45 }
 0x369   : > { %v3122_v44 = vmul.f32 1.442695, %v3033_v18  ;;  %v2816_v14 = vmax.f32 %v2672_v16, %v2744_v61  ;;  %7871 = vmatmul.msk.bf16.gmra.mxu0 %vm1492_vm0, %v9538_v8  ;;  %v9680_v8 = vld [vmem:[%s10979_s24 + $0x110] sm:$0xff]  ;;  %v11802_v16 = vld [vmem:[%s10979_s24 + $0x168] sm:$0xff] }
 0x36a   : > { %v10304_v9 = vpop.eup %10303  ;;  %4188 = vmatpush.bf16.msra.mxu1 %v9684_v29 }
 0x36b   : > { %v9952_v62 = vpack.c.bf16 %v10304_v9, %v10302_v3  ;;  %10307 = vpow2.f32 %v3122_v44  ;;  %v2889_v57 = vmul.f32 %v11675_v54, %v2816_v14  ;;  %v10306_v56 = vpop.eup %10305  ;;  %v13094_v3 = vld [vmem:[#allocation20_spill] sm:$0xff] }
 0x36c   : > { %v3248_v40 = vadd.f32 1.0, %v10306_v56  ;;  %v2747_v44 = vmax.f32 %v11624_v23, %v13094_v3  ;;  %4277 = vmatpush.bf16.msra.mxu2 %v11802_v16  ;;  %v11809_v56 = vpop.f32.mrf.mxu1 }
 0x36d   : > { %10100 = vst [vmem:[#allocation2 + $0x18] sm:$0xff] %v9952_v62   ;;  %v2962_v27 = vadd.f32 %v11679_v37, %v2889_v57 }
 0x36e   : > { %v2161_v21 = vpop.f32.mrf.mxu0  ;;  %4189 = vmatpush.bf16.msra.mxu1 %v9683_v39  ;;  %10309 = vrcp.f32 %v3248_v40  ;;  %v11813_v40 = vld [vmem:[%s10979_s24 + $0x160] sm:$0xff] }
 0x36f   : > { %v3034_v25 = vsub.f32 0.0, %v2962_v27  ;;  %v2673_v19 = vmax.f32 %v13091_v26, %v2161_v21 }
 0x370   : > { %4278 = vmatpush.bf16.msra.mxu2 %v11813_v40 }
 0x371   : > { %v10308_v31 = vpop.eup %10307  ;;  %v2817_v33 = vmax.f32 %v2673_v19, %v2745_v22  ;;  %v3124_v47 = vmul.f32 1.442695, %v3034_v25  ;;  %v9678_v22 = vld [vmem:[%s10979_s24 + $0x100] sm:$0xff]  ;;  %v9674_v25 = vld [vmem:[#allocation2 + $0x48] sm:$0xff]  ;;  %v9540_v19 = vld [vmem:[%s12927_s0 + $0x1b8] sm:$0xff] }
 0x372   : > { %v3249_v53 = vadd.f32 1.0, %v10308_v31  ;;  %4190 = vmatpush.bf16.msra.mxu1 %v9682_v36 }
 0x373   : > { %v2890_v10 = vmul.f32 %v11675_v54, %v2817_v33  ;;  %v11825_v33 = vld [vmem:[%s10979_s24 + $0x158] sm:$0xff] }
 0x374   : > { %10311 = vrcp.f32 %v3249_v53  ;;  %v11770_v7 = vld [vmem:[#allocation2 + $0x18] sm:$0xff]  ;;  %v10310_v49 = vpop.eup %10309  ;;  %4279 = vmatpush.bf16.msra.mxu2 %v11825_v33 }
 0x375   : > { %v11772_v13 = vld [vmem:[#allocation2 + $0x18] sm:$0xff]  ;;  %v2963_v43 = vadd.f32 %v11679_v37, %v2890_v10  ;;  %10313 = vpow2.f32 %v3124_v47  ;;  %3739 = vmatmul.bf16.vlgmr.msrb.gmra.mxu3 %v11770_v7 }
 0x376   : > { %v2164_v59 = vpop.f32.mrf.mxu0  ;;  %3775 = vmatmul.bf16.gmra.mxu1 %v11772_v13  ;;  %4148 = vmatpush.bf16.msrb.mxu3 %v9685_v32  ;;  %v13096_v53 = vld [vmem:[#allocation22_spill] sm:$0xff] }
 0x377   : > { %v3035_v34 = vsub.f32 0.0, %v2963_v43  ;;  %v2674_v42 = vmax.f32 %v13093_v46, %v2164_v59  ;;  %4191 = vmatpush.bf16.msra.mxu1 %v9681_v52  ;;  %v2748_v47 = vmax.f32 %v11639_v51, %v13096_v53  ;;  %v13097_v43 = vld [vmem:[#allocation29_spill] sm:$0xff]  ;;  %v9541_v53 = vld [vmem:[%s12927_s0 + $0x1c0] sm:$0xff] }
 0x378   : > { %v11840_v51 = vld [vmem:[%s10979_s24 + $0x1b0] sm:$0xff] }
 0x379   : > { %v3126_v20 = vmul.f32 1.442695, %v3035_v34  ;;  %v2818_v55 = vmax.f32 %v2674_v42, %v2746_v0  ;;  %7872 = vmatmul.msk.bf16.gmra.mxu0 %vm1492_vm0, %v9539_v60  ;;  %v11837_v42 = vld [vmem:[%s10979_s24 + $0x150] sm:$0xff] }
 0x37a   : > { %v10312_v30 = vpop.eup %10311  ;;  %4149 = vmatpush.bf16.msrb.mxu3 %v9684_v29  ;;  %v13095_v29 = vld [vmem:[#allocation27_spill] sm:$0xff]  ;;  %4280 = vmatpush.bf16.msra.mxu2 %v11837_v42 }
 0x37b   : > { %v9957_v12 = vpack.c.bf16 %v10312_v30, %v10310_v49  ;;  %10315 = vpow2.f32 %v3126_v20  ;;  %v2891_v1 = vmul.f32 %v11675_v54, %v2818_v55  ;;  %v10314_v32 = vpop.eup %10313  ;;  %4192 = vmatpush.bf16.msra.mxu1 %v9680_v8  ;;  %v11842_v49 = vpop.f32.mrf.mxu1 }
 0x37c   : > { %v3250_v14 = vadd.f32 1.0, %v10314_v32  ;;  %v11852_v32 = vld [vmem:[%s10979_s24 + $0x1a8] sm:$0xff] }
 0x37d   : > { %10101 = vst [vmem:[#allocation2 + $0x80] sm:$0xff] %v9957_v12   ;;  %v2964_v61 = vadd.f32 %v11679_v37, %v2891_v1  ;;  %v11849_v1 = vld [vmem:[%s10979_s24 + $0x148] sm:$0xff] }
 0x37e   : > { %v2166_v18 = vpop.f32.mrf.mxu0  ;;  %4150 = vmatpush.bf16.msrb.mxu3 %v9683_v39  ;;  %10317 = vrcp.f32 %v3250_v14  ;;  %4281 = vmatpush.bf16.msra.mxu2 %v11849_v1 }
 0x37f   : > { %v3036_v9 = vsub.f32 0.0, %v2964_v61  ;;  %v2675_v62 = vmax.f32 %v13095_v29, %v2166_v18  ;;  %4193 = vmatpush.bf16.msra.mxu1 %v11799_v38  ;;  %v13098_v61 = vld [vmem:[#allocation24_spill] sm:$0xff] }
 0x380   : > { %v2749_v18 = vmax.f32 %v11648_v5, %v13098_v61 }
 0x381   : > { %v10316_v57 = vpop.eup %10315  ;;  %v2819_v27 = vmax.f32 %v2675_v62, %v2747_v44  ;;  %v3128_v6 = vmul.f32 1.442695, %v3036_v9  ;;  %v13099_v44 = vld [vmem:[#allocation31_spill] sm:$0xff] }
 0x382   : > { %v3251_v21 = vadd.f32 1.0, %v10316_v57  ;;  %4151 = vmatpush.bf16.msrb.mxu3 %v9682_v36  ;;  %v11828_v36 = vld [vmem:[%s10979_s24 + $0x1b8] sm:$0xff] }
 0x383   : > { %v2892_v23 = vmul.f32 %v11675_v54, %v2819_v27  ;;  %4194 = vmatpush.bf16.msra.mxu1 %v9678_v22 }
 0x384   : > { %10319 = vrcp.f32 %v3251_v21  ;;  %v11816_v39 = vld [vmem:[#allocation2 + $0x80] sm:$0xff]  ;;  %v10318_v59 = vpop.eup %10317 }
 0x385   : > { %v2965_v26 = vadd.f32 %v11679_v37, %v2892_v23  ;;  %10321 = vpow2.f32 %v3128_v6  ;;  %3744 = vmatmul.bf16.gmra.mxu3 %v11816_v39  ;;  %v11863_v21 = vld [vmem:[%s10979_s24 + $0x140] sm:$0xff] }
 0x386   : > { %v2169_v31 = vpop.f32.mrf.mxu0  ;;  %4013 = vmatmul.bf16.vlgmr.msrb.gmra.mxu1 %v9674_v25  ;;  %4152 = vmatpush.bf16.msrb.mxu3 %v9681_v52  ;;  %v11866_v6 = vld [vmem:[%s10979_s24 + $0x1a0] sm:$0xff] }
 0x387   : > { %v3037_v10 = vsub.f32 0.0, %v2965_v26  ;;  %v2676_v60 = vmax.f32 %v13097_v43, %v2169_v31  ;;  %4402 = vmatpush.bf16.msrb.mxu1 %v11828_v36  ;;  %v11871_v25 = vld [vmem:[#allocation2 + $0x80] sm:$0xff]  ;;  %v9675_v26 = vld [vmem:[#allocation2 + $0x108] sm:$0xff]  ;;  %4282 = vmatpush.bf16.msra.mxu2 %v11863_v21 }
 0x388   : > { %v3705_v34 = vpop.f32.mrf.mxu2 }
 0x389   : > { %v3130_v4 = vmul.f32 1.442695, %v3037_v10  ;;  %v2820_v0 = vmax.f32 %v2676_v60, %v2748_v47  ;;  %7873 = vmatmul.msk.bf16.gmra.mxu0 %vm1492_vm0, %v9540_v19  ;;  %v9703_v47 = vld [vmem:[%s10979_s24 + $0x198] sm:$0xff] }
 0x38a   : > { %v10320_v46 = vpop.eup %10319  ;;  %4153 = vmatpush.bf16.msrb.mxu3 %v9680_v8  ;;  %v13100_v10 = vld [vmem:[#allocation26_spill] sm:$0xff] }
 0x38b   : > { %v9962_v52 = vpack.c.bf16 %v10320_v46, %v10318_v59  ;;  %10323 = vpow2.f32 %v3130_v4  ;;  %v2893_v20 = vmul.f32 %v11675_v54, %v2820_v0  ;;  %v10322_v55 = vpop.eup %10321  ;;  %4403 = vmatpush.bf16.msrb.mxu1 %v11840_v51  ;;  %v2750_v43 = vmax.f32 %v11659_v17, %v13100_v10  ;;  %v13101_v59 = vld [vmem:[#allocation33_spill] sm:$0xff]  ;;  %v9542_v10 = vld [vmem:[%s12927_s0 + $0x1c8] sm:$0xff] }
 0x38c   : > { %v3252_v3 = vadd.f32 1.0, %v10322_v55  ;;  %v11891_v55 = vld [vmem:[%s10979_s24 + $0x190] sm:$0xff] }
 0x38d   : > { %10102 = vst [vmem:[#allocation2 + $0x110] sm:$0xff] %v9962_v52   ;;  %v2966_v30 = vadd.f32 %v11679_v37, %v2893_v20 }
 0x38e   : > { %v2171_v12 = vpop.f32.mrf.mxu0  ;;  %4154 = vmatpush.bf16.msrb.mxu3 %v11799_v38  ;;  %10325 = vrcp.f32 %v3252_v3  ;;  %v13102_v3 = vld [vmem:[#allocation28_spill] sm:$0xff] }
 0x38f   : > { %v3038_v8 = vsub.f32 0.0, %v2966_v30  ;;  %v2677_v14 = vmax.f32 %v13099_v44, %v2171_v12  ;;  %4404 = vmatpush.bf16.msrb.mxu1 %v11852_v32 }
 0x390   : > { %v11860_v62 = vpop.f32.mrf.mxu2 }
 0x391   : > { %v10324_v9 = vpop.eup %10323  ;;  %v2821_v29 = vmax.f32 %v2677_v14, %v2749_v18  ;;  %v3132_v27 = vmul.f32 1.442695, %v3038_v8  ;;  %v9701_v18 = vld [vmem:[%s10979_s24 + $0x188] sm:$0xff]  ;;  %v2751_v8 = vmax.f32 %v11669_v24, %v13102_v3 }
 0x392   : > { %v3253_v57 = vadd.f32 1.0, %v10324_v9  ;;  %v3632_v23 = vpop.f32.mrf.mxu1  ;;  %4155 = vmatpush.bf16.msrb.mxu3 %v9678_v22  ;;  %v13103_v9 = vld [vmem:[#allocation35_spill] sm:$0xff]  ;;  %v9715_v3 = vld [vmem:[%s10979_s24 + $0x1e8] sm:$0xff] }
 0x393   : > { %v2894_v5 = vmul.f32 %v11675_v54, %v2821_v29  ;;  %v11869_v38 = vadd.f32 %v3705_v34, %v3632_v23  ;;  %4405 = vmatpush.bf16.msrb.mxu1 %v11866_v6  ;;  %v11909_v23 = vld [vmem:[%s10979_s24 + $0x180] sm:$0xff] }
 0x394   : > { %10327 = vrcp.f32 %v3253_v57  ;;  %v11873_v19 = vld [vmem:[#allocation2 + $0x110] sm:$0xff]  ;;  %v10326_v0 = vpop.eup %10325 }
 0x395   : > { %v2967_v31 = vadd.f32 %v11679_v37, %v2894_v5  ;;  %10329 = vpow2.f32 %v3132_v27  ;;  %3909 = vmatmul.bf16.vlgmr.msra.gmra.mxu3 %v11871_v25  ;;  %4052 = vmatmul.bf16.vlgmr.msrb.gmra.mxu2 %v11873_v19 }
 0x396   : > { %v2174_v22 = vpop.f32.mrf.mxu0  ;;  %4018 = vmatmul.bf16.gmra.mxu1 %v9675_v26  ;;  %4314 = vmatpush.bf16.msra.mxu3 %v11782_v2 }
 0x397   : > { %v3039_v60 = vsub.f32 0.0, %v2967_v31  ;;  %v2678_v4 = vmax.f32 %v13101_v59, %v2174_v22  ;;  %4406 = vmatpush.bf16.msrb.mxu1 %v9703_v47  ;;  %4441 = vmatpush.bf16.msrb.mxu2 %v11828_v36  ;;  %v11915_v31 = vld [vmem:[#allocation2 + $0x110] sm:$0xff] }
 0x398   : > { %v3710_v52 = vpop.f32.mrf.mxu2 }
 0x399   : > { %v3134_v34 = vmul.f32 1.442695, %v3039_v60  ;;  %v2822_v46 = vmax.f32 %v2678_v4, %v2750_v43  ;;  %7874 = vmatmul.msk.bf16.gmra.mxu0 %vm1492_vm0, %v9541_v53  ;;  %v9717_v43 = vld [vmem:[%s10979_s24 + $0x1f8] sm:$0xff] }
 0x39a   : > { %v10328_v20 = vpop.eup %10327  ;;  %v11894_v12 = vpop.f32.mrf.mxu1  ;;  %4315 = vmatpush.bf16.msra.mxu3 %v11793_v45  ;;  %v13104_v60 = vld [vmem:[#allocation30_spill] sm:$0xff] }
 0x39b   : > { %v9967_v17 = vpack.c.bf16 %v10328_v20, %v10326_v0  ;;  %10331 = vpow2.f32 %v3134_v34  ;;  %v2895_v30 = vmul.f32 %v11675_v54, %v2822_v46  ;;  %v10330_v2 = vpop.eup %10329  ;;  %4407 = vmatpush.bf16.msrb.mxu1 %v11891_v55  ;;  %4442 = vmatpush.bf16.msrb.mxu2 %v11840_v51  ;;  %v2752_v59 = vmax.f32 %v11684_v28, %v13104_v60  ;;  %v13105_v0 = vld [vmem:[#allocation37_spill] sm:$0xff] }
 0x39c   : > { %v3254_v44 = vadd.f32 1.0, %v10330_v2  ;;  %v9716_v28 = vld [vmem:[%s10979_s24 + $0x1f0] sm:$0xff] }
 0x39d   : > { %10103 = vst [vmem:[#allocation2 + $0x118] sm:$0xff] %v9967_v17   ;;  %v2968_v36 = vadd.f32 %v11679_v37, %v2895_v30 }
 0x39e   : > { %v2176_v61 = vpop.f32.mrf.mxu0  ;;  %4316 = vmatpush.bf16.msra.mxu3 %v11802_v16  ;;  %10333 = vrcp.f32 %v3254_v44 }
 0x39f   : > { %v3040_v14 = vsub.f32 0.0, %v2968_v36  ;;  %v2679_v29 = vmax.f32 %v13103_v9, %v2176_v61  ;;  %4408 = vmatpush.bf16.msrb.mxu1 %v9701_v18  ;;  %4443 = vmatpush.bf16.msrb.mxu2 %v11852_v32  ;;  %v13107_v9 = vld [vmem:[#allocation39_spill] sm:$0xff] }
 0x3a0   : > { %v11906_v57 = vpop.f32.mrf.mxu2 }
 0x3a1   : > { %v10332_v45 = vpop.eup %10331  ;;  %v2823_v51 = vmax.f32 %v2679_v29, %v2751_v8  ;;  %v3136_v5 = vmul.f32 1.442695, %v3040_v14  ;;  %v13106_v8 = vld [vmem:[#allocation32_spill] sm:$0xff] }
 0x3a2   : > { %v3255_v27 = vadd.f32 1.0, %v10332_v45  ;;  %v3637_v26 = vpop.f32.mrf.mxu1  ;;  %4317 = vmatpush.bf16.msra.mxu3 %v11813_v40 }
 0x3a3   : > { %v2896_v24 = vmul.f32 %v11675_v54, %v2823_v51  ;;  %v11913_v16 = vadd.f32 %v3710_v52, %v3637_v26  ;;  %4409 = vmatpush.bf16.msrb.mxu1 %v11909_v23  ;;  %4444 = vmatpush.bf16.msrb.mxu2 %v11866_v6 }
 0x3a4   : > { %10335 = vrcp.f32 %v3255_v27  ;;  %v11917_v32 = vld [vmem:[#allocation2 + $0x118] sm:$0xff]  ;;  %v10334_v34 = vpop.eup %10333 }
 0x3a5   : > { %v11919_v53 = vld [vmem:[#allocation2 + $0x118] sm:$0xff]  ;;  %v2969_v22 = vadd.f32 %v11679_v37, %v2896_v24  ;;  %10337 = vpow2.f32 %v3136_v5  ;;  %3914 = vmatmul.bf16.gmra.mxu3 %v11915_v31  ;;  %4057 = vmatmul.bf16.gmra.mxu2 %v11917_v32  ;;  %v9714_v5 = vld [vmem:[%s10979_s24 + $0x1e0] sm:$0xff]  ;;  %v9686_v24 = vld [vmem:[#allocation2 + $0x108] sm:$0xff] }
 0x3a6   : > { %v2179_v40 = vpop.f32.mrf.mxu0  ;;  %4195 = vmatmul.bf16.vlgmr.msra.gmra.mxu1 %v11919_v53  ;;  %4318 = vmatpush.bf16.msra.mxu3 %v11825_v33 }
 0x3a7   : > { %v3041_v4 = vsub.f32 0.0, %v2969_v22  ;;  %v2680_v6 = vmax.f32 %v13105_v0, %v2179_v40  ;;  %4445 = vmatpush.bf16.msrb.mxu2 %v9703_v47  ;;  %4568 = vmatpush.bf16.msra.mxu1 %v9717_v43  ;;  %v13108_v40 = vld [vmem:[#allocation34_spill] sm:$0xff] }
 0x3a9   : > { %v3138_v46 = vmul.f32 1.442695, %v3041_v4  ;;  %v2824_v52 = vmax.f32 %v2680_v6, %v2752_v59  ;;  %7875 = vmatmul.msk.bf16.gmra.mxu0 %vm1492_vm0, %v9542_v10  ;;  %v3871_v20 = vpop.f32.mrf.mxu2  ;;  %v9713_v10 = vld [vmem:[%s10979_s24 + $0x1d8] sm:$0xff] }
 0x3aa   : > { %v10336_v17 = vpop.eup %10335  ;;  %v11937_v30 = vadd.f32 %v3871_v20, %v11869_v38  ;;  %4319 = vmatpush.bf16.msra.mxu3 %v11837_v42  ;;  %v2753_v38 = vmax.f32 %v11695_v48, %v13106_v8  ;;  %v13109_v59 = vld [vmem:[#allocation42_spill] sm:$0xff]  ;;  %v9712_v20 = vld [vmem:[%s10979_s24 + $0x1d0] sm:$0xff] }
 0x3ab   : > { %v9972_v2 = vpack.c.bf16 %v10336_v17, %v10334_v34  ;;  %10339 = vpow2.f32 %v3138_v46  ;;  %v2897_v36 = vmul.f32 %v11675_v54, %v2824_v52  ;;  %v10338_v33 = vpop.eup %10337  ;;  %4446 = vmatpush.bf16.msrb.mxu2 %v11891_v55  ;;  %4569 = vmatpush.bf16.msra.mxu1 %v9716_v28  ;;  %v11977_v17 = vld [vmem:[%s10979_s24 + $0x230] sm:$0xff] }
 0x3ac   : > { %v3256_v44 = vadd.f32 1.0, %v10338_v33 }
 0x3ad   : > { %10104 = vst [vmem:[#allocation2 + $0x98] sm:$0xff] %v9972_v2   ;;  %v2970_v47 = vadd.f32 %v11679_v37, %v2897_v36 }
 0x3ae   : > { %v2181_v61 = vpop.f32.mrf.mxu0  ;;  %4320 = vmatpush.bf16.msra.mxu3 %v11849_v1  ;;  %10341 = vrcp.f32 %v3256_v44 }
 0x3af   : > { %v3042_v14 = vsub.f32 0.0, %v2970_v47  ;;  %v2681_v29 = vmax.f32 %v13107_v9, %v2181_v61  ;;  %4447 = vmatpush.bf16.msrb.mxu2 %v9701_v18  ;;  %4570 = vmatpush.bf16.msra.mxu1 %v9715_v3  ;;  %v9543_v18 = vld [vmem:[%s12927_s0 + $0x1d0] sm:$0xff]  ;;  %v11984_v47 = vld [vmem:[%s10979_s24 + $0x228] sm:$0xff] }
 0x3b0   : > { %v13110_v61 = vld [vmem:[#allocation36_spill] sm:$0xff] }
 0x3b1   : > { %v10340_v42 = vpop.eup %10339  ;;  %v2825_v55 = vmax.f32 %v2681_v29, %v2753_v38  ;;  %v11949_v45 = vpop.f32.mrf.mxu2  ;;  %v3140_v27 = vmul.f32 1.442695, %v3042_v14  ;;  %v2755_v8 = vmax.f32 %v11720_v58, %v13110_v61  ;;  %v13111_v14 = vld [vmem:[#allocation45_spill] sm:$0xff] }
 0x3b2   : > { %v3257_v51 = vadd.f32 1.0, %v10340_v42  ;;  %4321 = vmatpush.bf16.msra.mxu3 %v11863_v21  ;;  %v11964_v21 = vld [vmem:[%s10979_s24 + $0x238] sm:$0xff] }
 0x3b3   : > { %v2898_v48 = vmul.f32 %v11675_v54, %v2825_v55  ;;  %4448 = vmatpush.bf16.msrb.mxu2 %v11909_v23  ;;  %4571 = vmatpush.bf16.msra.mxu1 %v9714_v5  ;;  %v2754_v23 = vmax.f32 %v11703_v11, %v13108_v40 }
 0x3b4   : > { %10343 = vrcp.f32 %v3257_v51  ;;  %v11954_v26 = vld [vmem:[#allocation2 + $0x98] sm:$0xff]  ;;  %v10342_v0 = vpop.eup %10341  ;;  %v9710_v51 = vld [vmem:[%s10979_s24 + $0x1c0] sm:$0xff] }
 0x3b5   : > { %v2971_v1 = vadd.f32 %v11679_v37, %v2898_v48  ;;  %10345 = vpow2.f32 %v3140_v27  ;;  %4156 = vmatmul.bf16.vlgmr.msrb.gmra.mxu3 %v9686_v24  ;;  %4283 = vmatmul.bf16.vlgmr.msra.gmra.mxu2 %v11747_v63  ;;  %v11992_v27 = vld [vmem:[%s10979_s24 + $0x220] sm:$0xff]  ;;  %v9687_v48 = vld [vmem:[#allocation2 + $0x68] sm:$0xff]  ;;  %v9544_v24 = vld [vmem:[%s12927_s0 + $0x1d8] sm:$0xff] }
 0x3b6   : > { %v2184_v22 = vpop.f32.mrf.mxu0  ;;  %4200 = vmatmul.bf16.gmra.mxu1 %v11954_v26  ;;  %4529 = vmatpush.bf16.msrb.mxu3 %v9717_v43 }
 0x3b7   : > { %v3043_v60 = vsub.f32 0.0, %v2971_v1  ;;  %v2682_v4 = vmax.f32 %v13109_v59, %v2184_v22  ;;  %4572 = vmatpush.bf16.msra.mxu1 %v9713_v10  ;;  %4656 = vmatpush.bf16.msra.mxu2 %v11964_v21  ;;  %v13112_v22 = vld [vmem:[#allocation38_spill] sm:$0xff] }
 0x3b8   : > { %v2756_v40 = vmax.f32 %v11733_v41, %v13112_v22  ;;  %v9736_v41 = vld [vmem:[%s10979_s24 + $0x270] sm:$0xff] }
 0x3b9   : > { %v3142_v6 = vmul.f32 1.442695, %v3043_v60  ;;  %v2826_v34 = vmax.f32 %v2682_v4, %v2754_v23  ;;  %7876 = vmatmul.msk.bf16.gmra.mxu0 %vm1492_vm0, %v9543_v18  ;;  %v3876_v46 = vpop.f32.mrf.mxu2  ;;  %v12002_v18 = vld [vmem:[%s10979_s24 + $0x218] sm:$0xff]  ;;  %v13113_v60 = vld [vmem:[#allocation48_spill] sm:$0xff] }
 0x3ba   : > { %v10344_v52 = vpop.eup %10343  ;;  %v11973_v11 = vadd.f32 %v3876_v46, %v11913_v16  ;;  %4530 = vmatpush.bf16.msrb.mxu3 %v9716_v28  ;;  %v9711_v16 = vld [vmem:[%s10979_s24 + $0x1c8] sm:$0xff] }
 0x3bb   : > { %v9977_v63 = vpack.c.bf16 %v10344_v52, %v10342_v0  ;;  %10347 = vpow2.f32 %v3142_v6  ;;  %v2899_v43 = vmul.f32 %v11675_v54, %v2826_v34  ;;  %v10346_v2 = vpop.eup %10345  ;;  %4573 = vmatpush.bf16.msra.mxu1 %v9712_v20  ;;  %4657 = vmatpush.bf16.msra.mxu2 %v11977_v17  ;;  %v12012_v34 = vld [vmem:[%s10979_s24 + $0x210] sm:$0xff] }
 0x3bc   : > { %v3258_v38 = vadd.f32 1.0, %v10346_v2  ;;  %v9735_v2 = vld [vmem:[%s10979_s24 + $0x268] sm:$0xff] }
 0x3bd   : > { %10105 = vst [vmem:[#allocation2 + $0xf8] sm:$0xff] %v9977_v63   ;;  %v2972_v36 = vadd.f32 %v11679_v37, %v2899_v43  ;;  %v12019_v43 = vld [vmem:[%s10979_s24 + $0x208] sm:$0xff] }
 0x3be   : > { %v2186_v33 = vpop.f32.mrf.mxu0  ;;  %4531 = vmatpush.bf16.msrb.mxu3 %v9715_v3  ;;  %10349 = vrcp.f32 %v3258_v38 }
 0x3bf   : > { %v3044_v44 = vsub.f32 0.0, %v2972_v36  ;;  %v2683_v28 = vmax.f32 %v13111_v14, %v2186_v33  ;;  %4574 = vmatpush.bf16.msra.mxu1 %v9711_v16  ;;  %4658 = vmatpush.bf16.msra.mxu2 %v11984_v47  ;;  %v13114_v36 = vld [vmem:[#allocation40_spill] sm:$0xff] }
 0x3c0   : > { %v2757_v33 = vmax.f32 %v11744_v35, %v13114_v36  ;;  %v12033_v35 = vld [vmem:[%s10587_s16] ss:$0 sm:$0xff] }
 0x3c1   : > { %v10348_v9 = vpop.eup %10347  ;;  %v2827_v29 = vmax.f32 %v2683_v28, %v2755_v8  ;;  %v3144_v55 = vmul.f32 1.442695, %v3044_v44  ;;  %v12027_v28 = vld [vmem:[%s10979_s24 + $0x200] sm:$0xff] }
 0x3c2   : > { %v3259_v42 = vadd.f32 1.0, %v10348_v9  ;;  %4532 = vmatpush.bf16.msrb.mxu3 %v9714_v5  ;;  %v9737_v5 = vld [vmem:[%s10979_s24 + $0x278] sm:$0xff]  ;;  %v12030_v9 = vld [vmem:[%s10979_s24 + $0x260] sm:$0xff] }
 0x3c3   : > { %v2900_v58 = vmul.f32 %v11675_v54, %v2827_v29  ;;  %4575 = vmatpush.bf16.msra.mxu1 %v9710_v51  ;;  %4659 = vmatpush.bf16.msra.mxu2 %v11992_v27 }
 0x3c4   : > { %10351 = vrcp.f32 %v3259_v42  ;;  %v10350_v4 = vpop.eup %10349 }
 0x3c5   : > { %v2973_v3 = vadd.f32 %v11679_v37, %v2900_v58  ;;  %10353 = vpow2.f32 %v3144_v55  ;;  %4161 = vmatmul.bf16.gmra.mxu3 %v9687_v48  ;;  %4288 = vmatmul.bf16.gmra.mxu2 %v11772_v13  ;;  %v12043_v55 = vld [vmem:[%s10587_s16 + $0x1] ss:$0 sm:$0xff] }
 0x3c6   : > { %v2189_v1 = vpop.f32.mrf.mxu0  ;;  %4410 = vmatmul.bf16.vlgmr.msrb.gmra.mxu1 %v11770_v7  ;;  %4533 = vmatpush.bf16.msrb.mxu3 %v9713_v10  ;;  %v9545_v48 = vld [vmem:[%s12927_s0 + $0x1e0] sm:$0xff] }
 0x3c7   : > { %v3045_v23 = vsub.f32 0.0, %v2973_v3  ;;  %v2684_v59 = vmax.f32 %v13113_v60, %v2189_v1  ;;  %4660 = vmatpush.bf16.msra.mxu2 %v12002_v18  ;;  %4783 = vmatpush.bf16.msrb.mxu1 %v9737_v5 }
 0x3c9   : > { %v3146_v0 = vmul.f32 1.442695, %v3045_v23  ;;  %v2828_v7 = vmax.f32 %v2684_v59, %v2756_v40  ;;  %7877 = vmatmul.msk.bf16.gmra.mxu0 %vm1492_vm0, %v9544_v24  ;;  %v13116_v24 = vld [vmem:[#allocation43_spill] sm:$0xff]  ;;  %v13117_v40 = vld [vmem:[#allocation54_spill] sm:$0xff] }
 0x3ca   : > { %v10352_v6 = vpop.eup %10351  ;;  %4534 = vmatpush.bf16.msrb.mxu3 %v9712_v20  ;;  %v13115_v20 = vld [vmem:[#allocation51_spill] sm:$0xff]  ;;  %v2758_v1 = vmax.f32 %v11761_v50, %v13116_v24  ;;  %v13121_v24 = vld [vmem:[#allocation60_spill] sm:$0xff] }
 0x3cb   : > { %v9982_v46 = vpack.c.bf16 %v10352_v6, %v10350_v4  ;;  %10355 = vpow2.f32 %v3146_v0  ;;  %v2901_v52 = vmul.f32 %v11675_v54, %v2828_v7  ;;  %v10354_v13 = vpop.eup %10353  ;;  %4661 = vmatpush.bf16.msra.mxu2 %v12012_v34  ;;  %4784 = vmatpush.bf16.msrb.mxu1 %v9736_v41  ;;  %v9732_v0 = vld [vmem:[%s10979_s24 + $0x250] sm:$0xff]  ;;  %v12059_v7 = vpop.f32.mrf.mxu1 }
 0x3cc   : > { %v3260_v61 = vadd.f32 1.0, %v10354_v13  ;;  %v13118_v13 = vld [vmem:[#allocation46_spill] sm:$0xff] }
 0x3cd   : > { %10106 = vst [vmem:[#allocation2 + $0x38] sm:$0xff] %v9982_v46   ;;  %v2974_v10 = vadd.f32 %v11679_v37, %v2901_v52  ;;  %v9731_v52 = vld [vmem:[%s10979_s24 + $0x248] sm:$0xff] }
 0x3ce   : > { %v2191_v63 = vpop.f32.mrf.mxu0  ;;  %4535 = vmatpush.bf16.msrb.mxu3 %v9711_v16  ;;  %10357 = vrcp.f32 %v3260_v61  ;;  %v12036_v16 = vld [vmem:[#allocation2 + $0xf8] sm:$0xff] }
 0x3cf   : > { %v3046_v54 = vsub.f32 0.0, %v2974_v10  ;;  %v2685_v8 = vmax.f32 %v13115_v20, %v2191_v63  ;;  %4662 = vmatpush.bf16.msra.mxu2 %v12019_v43  ;;  %4785 = vmatpush.bf16.msrb.mxu1 %v9735_v2  ;;  %v2759_v10 = vmax.f32 %v11786_v15, %v13118_v13  ;;  %v13123_v13 = vld [vmem:[#allocation63_spill] sm:$0xff] }
 0x3d1   : > { %v10356_v38 = vpop.eup %10355  ;;  %v2829_v37 = vmax.f32 %v2685_v8, %v2757_v33  ;;  %v3148_v14 = vmul.f32 1.442695, %v3046_v54  ;;  %v13119_v33 = vld [vmem:[#allocation57_spill] sm:$0xff]  ;;  %v9730_v8 = vld [vmem:[%s10979_s24 + $0x240] sm:$0xff] }
 0x3d2   : > { %v3261_v44 = vadd.f32 1.0, %v10356_v38  ;;  %4536 = vmatpush.bf16.msrb.mxu3 %v9710_v51  ;;  %v9733_v51 = vld [vmem:[%s10979_s24 + $0x258] sm:$0xff] }
 0x3d3   : > { %v2902_v29 = vmul.f32 %v12033_v35, %v2829_v37  ;;  %4663 = vmatpush.bf16.msra.mxu2 %v12027_v28  ;;  %4786 = vmatpush.bf16.msrb.mxu1 %v12030_v9 }
 0x3d4   : > { %10359 = vrcp.f32 %v3261_v44  ;;  %v12038_v42 = vld [vmem:[#allocation2 + $0x38] sm:$0xff]  ;;  %v10358_v60 = vpop.eup %10357 }
 0x3d5   : > { %v2975_v58 = vadd.f32 %v12043_v55, %v2902_v29  ;;  %10361 = vpow2.f32 %v3148_v14  ;;  %4322 = vmatmul.bf16.vlgmr.msra.gmra.mxu3 %v12036_v16  ;;  %4449 = vmatmul.bf16.vlgmr.msrb.gmra.mxu2 %v12038_v42  ;;  %v12074_v15 = vld [vmem:[#allocation2 + $0x38] sm:$0xff]  ;;  %v9546_v14 = vld [vmem:[%s12927_s0 + $0x1e8] sm:$0xff] }
 0x3d6   : > { %v2194_v3 = vpop.f32.mrf.mxu0  ;;  %4415 = vmatmul.bf16.gmra.mxu1 %v11816_v39  ;;  %4695 = vmatpush.bf16.msra.mxu3 %v11964_v21 }
 0x3d7   : > { %v3047_v22 = vsub.f32 0.0, %v2975_v58  ;;  %v2686_v23 = vmax.f32 %v13117_v40, %v2194_v3  ;;  %4787 = vmatpush.bf16.msrb.mxu1 %v9733_v51  ;;  %4822 = vmatpush.bf16.msrb.mxu2 %v9737_v5  ;;  %v13120_v58 = vld [vmem:[#allocation49_spill] sm:$0xff] }
 0x3d9   : > { %v3150_v59 = vmul.f32 1.442695, %v3047_v22  ;;  %v2830_v4 = vmax.f32 %v2686_v23, %v2758_v1  ;;  %7878 = vmatmul.msk.bf16.gmra.mxu0 %vm1492_vm0, %v9545_v48  ;;  %v2760_v48 = vmax.f32 %v11809_v56, %v13120_v58 }
 0x3da   : > { %v10360_v39 = vpop.eup %10359  ;;  %4696 = vmatpush.bf16.msra.mxu3 %v11977_v17 }
 0x3db   : > { %v9987_v50 = vpack.c.bf16 %v10360_v39, %v10358_v60  ;;  %10363 = vpow2.f32 %v3150_v59  ;;  %v2903_v6 = vmul.f32 %v12033_v35, %v2830_v4  ;;  %v10362_v46 = vpop.eup %10361  ;;  %4788 = vmatpush.bf16.msrb.mxu1 %v9732_v0  ;;  %4823 = vmatpush.bf16.msrb.mxu2 %v9736_v41  ;;  %v9746_v60 = vld [vmem:[%s10979_s24 + $0x2b0] sm:$0xff] }
 0x3dc   : > { %v3262_v63 = vadd.f32 1.0, %v10362_v46 }
 0x3dd   : > { %10107 = vst [vmem:[#allocation2 + $0x8] sm:$0xff] %v9987_v50   ;;  %v2976_v21 = vadd.f32 %v12043_v55, %v2903_v6  ;;  %v9745_v50 = vld [vmem:[%s10979_s24 + $0x2a8] sm:$0xff] }
 0x3de   : > { %v2196_v5 = vpop.f32.mrf.mxu0  ;;  %4697 = vmatpush.bf16.msra.mxu3 %v11984_v47  ;;  %10365 = vrcp.f32 %v3262_v63  ;;  %v13122_v6 = vld [vmem:[#allocation52_spill] sm:$0xff] }
 0x3df   : > { %v3048_v36 = vsub.f32 0.0, %v2976_v21  ;;  %v2687_v61 = vmax.f32 %v13119_v33, %v2196_v5  ;;  %4789 = vmatpush.bf16.msrb.mxu1 %v9731_v52  ;;  %4824 = vmatpush.bf16.msrb.mxu2 %v9735_v2  ;;  %v2761_v46 = vmax.f32 %v11842_v49, %v13122_v6  ;;  %v9744_v33 = vld [vmem:[%s10979_s24 + $0x2a0] sm:$0xff]  ;;  %v13128_v6 = vld [vmem:[#allocation69_spill] sm:$0xff] }
 0x3e1   : > { %v10364_v17 = vpop.eup %10363  ;;  %v2831_v54 = vmax.f32 %v2687_v61, %v2759_v10  ;;  %v3152_v20 = vmul.f32 1.442695, %v3048_v36 }
 0x3e2   : > { %v3263_v41 = vadd.f32 1.0, %v10364_v17  ;;  %v12071_v37 = vpop.f32.mrf.mxu1  ;;  %4698 = vmatpush.bf16.msra.mxu3 %v11992_v27  ;;  %v9747_v27 = vld [vmem:[%s10979_s24 + $0x2b8] sm:$0xff] }
 0x3e3   : > { %v2904_v38 = vmul.f32 %v12033_v35, %v2831_v54  ;;  %4790 = vmatpush.bf16.msrb.mxu1 %v9730_v8  ;;  %4825 = vmatpush.bf16.msrb.mxu2 %v12030_v9 }
 0x3e4   : > { %10367 = vrcp.f32 %v3263_v41  ;;  %v12076_v44 = vld [vmem:[#allocation2 + $0x8] sm:$0xff]  ;;  %v10366_v1 = vpop.eup %10365  ;;  %v9743_v41 = vld [vmem:[%s10979_s24 + $0x298] sm:$0xff] }
 0x3e5   : > { %v12078_v47 = vld [vmem:[#allocation2 + $0x8] sm:$0xff]  ;;  %v2977_v2 = vadd.f32 %v12043_v55, %v2904_v38  ;;  %10369 = vpow2.f32 %v3152_v20  ;;  %4327 = vmatmul.bf16.gmra.mxu3 %v12074_v15  ;;  %4454 = vmatmul.bf16.gmra.mxu2 %v12076_v44 }
 0x3e6   : > { %v2199_v29 = vpop.f32.mrf.mxu0  ;;  %4576 = vmatmul.bf16.vlgmr.msra.gmra.mxu1 %v12078_v47  ;;  %4699 = vmatpush.bf16.msra.mxu3 %v12002_v18 }
 0x3e7   : > { %v3049_v3 = vsub.f32 0.0, %v2977_v2  ;;  %v2688_v9 = vmax.f32 %v13121_v24, %v2199_v29  ;;  %4826 = vmatpush.bf16.msrb.mxu2 %v9733_v51  ;;  %4949 = vmatpush.bf16.msra.mxu1 %v9747_v27  ;;  %v13125_v29 = vld [vmem:[#allocation41_spill] sm:$0xff] }
 0x3e9   : > { %v3154_v22 = vmul.f32 1.442695, %v3049_v3  ;;  %v2832_v40 = vmax.f32 %v2688_v9, %v2760_v48  ;;  %7879 = vmatmul.msk.bf16.gmra.mxu0 %vm1492_vm0, %v9546_v14 }
 0x3ea   : > { %v10368_v23 = vpop.eup %10367  ;;  %v12096_v4 = vpop.f32.mrf.mxu1  ;;  %4700 = vmatpush.bf16.msra.mxu3 %v12012_v34 }
 0x3eb   : > { %v9992_v59 = vpack.c.bf16 %v10368_v23, %v10366_v1  ;;  %10371 = vpow2.f32 %v3154_v22  ;;  %v2905_v56 = vmul.f32 %v12033_v35, %v2832_v40  ;;  %v10370_v39 = vpop.eup %10369  ;;  %4827 = vmatpush.bf16.msrb.mxu2 %v9732_v0  ;;  %4950 = vmatpush.bf16.msra.mxu1 %v9746_v60 }
 0x3ec   : > { %v3264_v21 = vadd.f32 1.0, %v10370_v39  ;;  %v12143_v39 = vld [vmem:[%s10979_s24 + $0x2e8] sm:$0xff] }
 0x3ed   : > { %10108 = vst [vmem:[#allocation2 + $0x78] sm:$0xff] %v9992_v59   ;;  %v2978_v18 = vadd.f32 %v12043_v55, %v2905_v56  ;;  %v9741_v56 = vld [vmem:[%s10979_s24 + $0x288] sm:$0xff] }
 0x3ee   : > { %v2201_v51 = vpop.f32.mrf.mxu0  ;;  %4701 = vmatpush.bf16.msra.mxu3 %v12019_v43  ;;  %10373 = vrcp.f32 %v3264_v21  ;;  %v13129_v21 = vld [vmem:[#allocation44_spill] sm:$0xff] }
 0x3ef   : > { %v3050_v5 = vsub.f32 0.0, %v2978_v18  ;;  %v2689_v10 = vmax.f32 %v13123_v13, %v2201_v51  ;;  %4828 = vmatpush.bf16.msrb.mxu2 %v9731_v52  ;;  %4951 = vmatpush.bf16.msra.mxu1 %v9745_v50  ;;  %v9547_v52 = vld [vmem:[%s12927_s0 + $0x1f0] sm:$0xff] }
 0x3f1   : > { %v10372_v34 = vpop.eup %10371  ;;  %v2833_v0 = vmax.f32 %v2689_v10, %v2761_v46  ;;  %v3156_v36 = vmul.f32 1.442695, %v3050_v5  ;;  %v13130_v5 = vld [vmem:[#allocation58_spill] sm:$0xff] }
 0x3f2   : > { %v3265_v63 = vadd.f32 1.0, %v10372_v34  ;;  %4702 = vmatpush.bf16.msra.mxu3 %v12027_v28  ;;  %v12120_v28 = vld [vmem:[%s10979_s24 + $0x2f8] sm:$0xff]  ;;  %v13131_v13 = vmax.f32 %v13129_v21, %v13130_v5 }
 0x3f3   : > { %v2906_v61 = vmul.f32 %v12033_v35, %v2833_v0  ;;  %v12107_v17 = vpop.f32.mrf.mxu1  ;;  %4829 = vmatpush.bf16.msrb.mxu2 %v9730_v8  ;;  %4952 = vmatpush.bf16.msra.mxu1 %v9744_v33  ;;  %v13124_v8 = vld [vmem:[#allocation66_spill] sm:$0xff] }
 0x3f4   : > { %10375 = vrcp.f32 %v3265_v63  ;;  %v12110_v49 = vld [vmem:[#allocation2 + $0x78] sm:$0xff]  ;;  %v10374_v2 = vpop.eup %10373 }
 0x3f5   : > { %v2979_v43 = vadd.f32 %v12043_v55, %v2906_v61  ;;  %10377 = vpow2.f32 %v3156_v36  ;;  %4537 = vmatmul.bf16.vlgmr.msrb.gmra.mxu3 %v11871_v25  ;;  %4664 = vmatmul.bf16.vlgmr.msra.gmra.mxu2 %v11873_v19  ;;  %v13126_v25 = vld [vmem:[#allocation55_spill] sm:$0xff]  ;;  %v9742_v19 = vld [vmem:[%s10979_s24 + $0x290] sm:$0xff]  ;;  %v13137_v5 = vld [vmem:[#allocation50_spill] sm:$0xff] }
 0x3f6   : > { %v2204_v54 = vpop.f32.mrf.mxu0  ;;  %4581 = vmatmul.bf16.gmra.mxu1 %v12110_v49  ;;  %4910 = vmatpush.bf16.msrb.mxu3 %v9747_v27  ;;  %v13127_v58 = vmax.f32 %v13125_v29, %v13126_v25  ;;  %v12134_v27 = vld [vmem:[%s10979_s24 + $0x2f0] sm:$0xff]  ;;  %v9740_v61 = vld [vmem:[%s10979_s24 + $0x280] sm:$0xff] }
 0x3f7   : > { %v3051_v20 = vsub.f32 0.0, %v2979_v43  ;;  %v2690_v38 = vmax.f32 %v13124_v8, %v2204_v54  ;;  %4953 = vmatpush.bf16.msra.mxu1 %v9743_v41  ;;  %5037 = vmatpush.bf16.msra.mxu2 %v12120_v28  ;;  %v12155_v43 = vld [vmem:[%s10979_s24 + $0x2e0] sm:$0xff]  ;;  %v12166_v8 = vld [vmem:[%s10979_s24 + $0x2d8] sm:$0xff]  ;;  %v13134_v25 = vld [vmem:[#allocation61_spill] sm:$0xff] }
 0x3f8   : > { %v3740_v3 = vpop.f32.mrf.mxu3  ;;  %v13133_v29 = vld [vmem:[#allocation47_spill] sm:$0xff] }
 0x3f9   : > { %v3158_v14 = vmul.f32 1.442695, %v3051_v20  ;;  %v2834_v48 = vmax.f32 %v2690_v38, %v13127_v58  ;;  %7880 = vmatmul.msk.bf16.gmra.mxu0 %vm1492_vm0, %v9547_v52  ;;  %v12130_v9 = vadd.f32 %v12071_v37, %v3740_v3 }
 0x3fa   : > { %v10376_v24 = vpop.eup %10375  ;;  %4911 = vmatpush.bf16.msrb.mxu3 %v9746_v60 }
 0x3fb   : > { %v9997_v1 = vpack.c.bf16 %v10376_v24, %v10374_v2  ;;  %10379 = vpow2.f32 %v3158_v14  ;;  %v2907_v22 = vmul.f32 %v12033_v35, %v2834_v48  ;;  %v12137_v40 = vpop.f32.mrf.mxu1  ;;  %v10378_v23 = vpop.eup %10377  ;;  %4954 = vmatpush.bf16.msra.mxu1 %v9742_v19  ;;  %5038 = vmatpush.bf16.msra.mxu2 %v12134_v27 }
 0x3fc   : > { %v3266_v18 = vadd.f32 1.0, %v10378_v23 }
 0x3fd   : > { %10109 = vst [vmem:[#allocation2 + $0x20] sm:$0xff] %v9997_v1   ;;  %v2980_v59 = vadd.f32 %v12043_v55, %v2907_v22  ;;  %v12182_v1 = vld [vmem:[%s10979_s24 + $0x2d0] sm:$0xff] }
 0x3fe   : > { %v2206_v37 = vpop.f32.mrf.mxu0  ;;  %4912 = vmatpush.bf16.msrb.mxu3 %v9745_v50  ;;  %10381 = vrcp.f32 %v3266_v18  ;;  %v12194_v18 = vld [vmem:[%s10979_s24 + $0x2c8] sm:$0xff] }
 0x3ff   : > { %v3052_v51 = vsub.f32 0.0, %v2980_v59  ;;  %v2691_v46 = vmax.f32 %v13128_v6, %v2206_v37  ;;  %4955 = vmatpush.bf16.msra.mxu1 %v9741_v56  ;;  %5039 = vmatpush.bf16.msra.mxu2 %v12143_v39 }
 0x400   : > { %v3742_v34 = vpop.f32.mrf.mxu3 }
 0x401   : > { %v10380_v60 = vpop.eup %10379  ;;  %v2835_v10 = vmax.f32 %v2691_v46, %v13131_v13  ;;  %v3160_v63 = vmul.f32 1.442695, %v3052_v51  ;;  %v12151_v36 = vadd.f32 %v12096_v4, %v3742_v34  ;;  %v12197_v51 = vld [vmem:[%s10979_s24 + $0x328] sm:$0xff] }
 0x402   : > { %v3267_v0 = vadd.f32 1.0, %v10380_v60  ;;  %4913 = vmatpush.bf16.msrb.mxu3 %v9744_v33  ;;  %v12169_v33 = vld [vmem:[%s10979_s24 + $0x338] sm:$0xff]  ;;  %v13136_v60 = vld [vmem:[#allocation75_spill] sm:$0xff]  ;;  %v13138_v13 = vld [vmem:[#allocation64_spill] sm:$0xff] }
 0x403   : > { %v2908_v50 = vmul.f32 %v12033_v35, %v2835_v10  ;;  %v4014_v52 = vpop.f32.mrf.mxu1  ;;  %4956 = vmatpush.bf16.msra.mxu1 %v9740_v61  ;;  %5040 = vmatpush.bf16.msra.mxu2 %v12155_v43  ;;  %v13139_v10 = vmax.f32 %v13137_v5, %v13138_v13  ;;  %v12252_v13 = vld [vmem:[%s10979_s24 + $0x308] sm:$0xff] }
 0x404   : > { %10383 = vrcp.f32 %v3267_v0  ;;  %v12159_v54 = vadd.f32 %v4014_v52, %v11937_v30  ;;  %v13132_v30 = vld [vmem:[#allocation72_spill] sm:$0xff]  ;;  %v10382_v14 = vpop.eup %10381 }
 0x405   : > { %v2981_v4 = vadd.f32 %v12043_v55, %v2908_v50  ;;  %10385 = vpow2.f32 %v3160_v63  ;;  %4542 = vmatmul.bf16.gmra.mxu3 %v11915_v31  ;;  %4669 = vmatmul.bf16.gmra.mxu2 %v11917_v32  ;;  %v12185_v32 = vld [vmem:[%s10979_s24 + $0x330] sm:$0xff]  ;;  %v12205_v63 = vpop.f32.mrf.mxu2 }
 0x406   : > { %v2209_v20 = vpop.f32.mrf.mxu0  ;;  %4791 = vmatmul.bf16.vlgmr.msrb.gmra.mxu1 %v11919_v53  ;;  %4914 = vmatpush.bf16.msrb.mxu3 %v9743_v41  ;;  %v13135_v53 = vmax.f32 %v13133_v29, %v13134_v25  ;;  %v13140_v25 = vld [vmem:[#allocation78_spill] sm:$0xff] }
 0x407   : > { %v3053_v38 = vsub.f32 0.0, %v2981_v4  ;;  %v2692_v2 = vmax.f32 %v13132_v30, %v2209_v20  ;;  %5041 = vmatpush.bf16.msra.mxu2 %v12166_v8  ;;  %5164 = vmatpush.bf16.msrb.mxu1 %v12169_v33  ;;  %v12211_v20 = vld [vmem:[%s10979_s24 + $0x2c0] sm:$0xff] }
 0x408   : > { %v3745_v48 = vpop.f32.mrf.mxu3 }
 0x409   : > { %v3162_v31 = vmul.f32 1.442695, %v3053_v38  ;;  %v2836_v58 = vmax.f32 %v2692_v2, %v13135_v53  ;;  %v12179_v24 = vadd.f32 %v12107_v17, %v3745_v48 }
 0x40a   : > { %v10384_v3 = vpop.eup %10383  ;;  %4915 = vmatpush.bf16.msrb.mxu3 %v9742_v19 }
 0x40b   : > { %v10002_v41 = vpack.c.bf16 %v10384_v3, %v10382_v14  ;;  %10387 = vpow2.f32 %v3162_v31  ;;  %v2909_v22 = vmul.f32 %v12033_v35, %v2836_v58  ;;  %v12188_v23 = vpop.f32.mrf.mxu1  ;;  %v10386_v59 = vpop.eup %10385  ;;  %5042 = vmatpush.bf16.msra.mxu2 %v12182_v1  ;;  %5165 = vmatpush.bf16.msrb.mxu1 %v12185_v32  ;;  %v12220_v14 = vld [vmem:[#allocation2 + $0x78] sm:$0xff]  ;;  %v12225_v31 = vld [vmem:[#allocation2 + $0x20] sm:$0xff]  ;;  %v13141_v3 = vld [vmem:[#allocation53_spill] sm:$0xff] }
 0x40c   : > { %v3268_v6 = vadd.f32 1.0, %v10386_v59 }
 0x40d   : > { %10110 = vst [vmem:[#allocation2 + $0xc8] sm:$0xff] %v10002_v41   ;;  %v2982_v17 = vadd.f32 %v12043_v55, %v2909_v22  ;;  %v13142_v41 = vld [vmem:[#allocation67_spill] sm:$0xff] }
 0x40e   : > { %v2211_v37 = vpop.f32.mrf.mxu0  ;;  %4916 = vmatpush.bf16.msrb.mxu3 %v9741_v56  ;;  %v12214_v56 = vld [vmem:[%s10979_s24 + $0x320] sm:$0xff]  ;;  %10389 = vrcp.f32 %v3268_v6  ;;  %v13143_v22 = vmax.f32 %v13141_v3, %v13142_v41 }
 0x40f   : > { %v3054_v46 = vsub.f32 0.0, %v2982_v17  ;;  %v2693_v21 = vmax.f32 %v13136_v60, %v2211_v37  ;;  %5043 = vmatpush.bf16.msra.mxu2 %v12194_v18  ;;  %5166 = vmatpush.bf16.msrb.mxu1 %v12197_v51  ;;  %v12269_v41 = vld [vmem:[#allocation2 + $0x20] sm:$0xff] }
 0x410   : > { %v3747_v0 = vpop.f32.mrf.mxu3 }
 0x411   : > { %v10388_v19 = vpop.eup %10387  ;;  %v2837_v34 = vmax.f32 %v2693_v21, %v13139_v10  ;;  %v3164_v52 = vmul.f32 1.442695, %v3054_v46  ;;  %v12208_v4 = vadd.f32 %v12137_v40, %v3747_v0  ;;  %v12242_v46 = vld [vmem:[%s10979_s24 + $0x310] sm:$0xff] }
 0x412   : > { %v3269_v50 = vadd.f32 1.0, %v10388_v19  ;;  %4917 = vmatpush.bf16.msrb.mxu3 %v9740_v61  ;;  %v12230_v61 = vld [vmem:[%s10979_s24 + $0x318] sm:$0xff]  ;;  %v13144_v0 = vld [vmem:[#allocation81_spill] sm:$0xff] }
 0x413   : > { %v2910_v38 = vmul.f32 %v12033_v35, %v2837_v34  ;;  %v4019_v30 = vpop.f32.mrf.mxu1  ;;  %5044 = vmatpush.bf16.msra.mxu2 %v12211_v20  ;;  %5167 = vmatpush.bf16.msrb.mxu1 %v12214_v56 }
 0x414   : > { %10391 = vrcp.f32 %v3269_v50  ;;  %v12218_v2 = vadd.f32 %v4019_v30, %v11973_v11  ;;  %v10390_v58 = vpop.eup %10389 }
 0x415   : > { %v2983_v40 = vadd.f32 %v12043_v55, %v2910_v38  ;;  %10393 = vpow2.f32 %v3164_v52  ;;  %4703 = vmatmul.bf16.vlgmr.msra.gmra.mxu3 %v12220_v14  ;;  %4830 = vmatmul.bf16.vlgmr.msrb.gmra.mxu2 %v12225_v31  ;;  %v13145_v52 = vld [vmem:[#allocation56_spill] sm:$0xff] }
 0x416   : > { %v2214_v29 = vpop.f32.mrf.mxu0  ;;  %4796 = vmatmul.bf16.gmra.mxu1 %v11954_v26  ;;  %5076 = vmatpush.bf16.msra.mxu3 %v12120_v28 }
 0x417   : > { %v3055_v11 = vsub.f32 0.0, %v2983_v40  ;;  %v2694_v53 = vmax.f32 %v13140_v25, %v2214_v29  ;;  %5168 = vmatpush.bf16.msrb.mxu1 %v12230_v61  ;;  %5203 = vmatpush.bf16.msrb.mxu2 %v12169_v33 }
 0x418   : > { %v3910_v26 = vpop.f32.mrf.mxu3  ;;  %v4053_v6 = vpop.f32.mrf.mxu2 }
 0x419   : > { %v3166_v48 = vmul.f32 1.442695, %v3055_v11  ;;  %v2838_v59 = vmax.f32 %v2694_v53, %v13143_v22  ;;  %v3920_v37 = vadd.f32 %v3910_v26, %v12130_v9 }
 0x41a   : > { %v10392_v17 = vpop.eup %10391  ;;  %5077 = vmatpush.bf16.msra.mxu3 %v12134_v27 }
 0x41b   : > { %v10007_v60 = vpack.c.bf16 %v10392_v17, %v10390_v58  ;;  %10395 = vpow2.f32 %v3166_v48  ;;  %v2911_v28 = vmul.f32 %v12033_v35, %v2838_v59  ;;  %v12245_v21 = vpop.f32.mrf.mxu1  ;;  %v10394_v33 = vpop.eup %10393  ;;  %v4063_v19 = vadd.f32 %v4053_v6, %v3920_v37  ;;  %5169 = vmatpush.bf16.msrb.mxu1 %v12242_v46  ;;  %5204 = vmatpush.bf16.msrb.mxu2 %v12185_v32  ;;  %v13146_v32 = vld [vmem:[#allocation70_spill] sm:$0xff]  ;;  %v12263_v58 = vld [vmem:[%s10979_s24 + $0x300] sm:$0xff]  ;;  %v12276_v59 = vld [vmem:[#allocation2 + $0xc8] sm:$0xff] }
 0x41c   : > { %v3270_v10 = vadd.f32 1.0, %v10394_v33  ;;  %v13147_v38 = vmax.f32 %v13145_v52, %v13146_v32  ;;  %v13148_v37 = vld [vmem:[#allocation84_spill] sm:$0xff]  ;;  %v13150_v33 = vld [vmem:[#allocation73_spill] sm:$0xff] }
 0x41d   : > { %10111 = vst [vmem:[#allocation2 + $0x90] sm:$0xff] %v10007_v60   ;;  %v2984_v9 = vadd.f32 %v12043_v55, %v2911_v28  ;;  %v13149_v28 = vld [vmem:[#allocation59_spill] sm:$0xff] }
 0x41e   : > { %v2216_v5 = vpop.f32.mrf.mxu0  ;;  %5078 = vmatpush.bf16.msra.mxu3 %v12143_v39  ;;  %10397 = vrcp.f32 %v3270_v10 }
 0x41f   : > { %v3056_v34 = vsub.f32 0.0, %v2984_v9  ;;  %v2695_v50 = vmax.f32 %v13144_v0, %v2216_v5  ;;  %5170 = vmatpush.bf16.msrb.mxu1 %v12252_v13  ;;  %5205 = vmatpush.bf16.msrb.mxu2 %v12197_v51 }
 0x420   : > { %v3912_v40 = vpop.f32.mrf.mxu3  ;;  %v4055_v53 = vpop.f32.mrf.mxu2 }
 0x421   : > { %v10396_v27 = vpop.eup %10395  ;;  %v2839_v30 = vmax.f32 %v2695_v50, %v13147_v38  ;;  %v3168_v11 = vmul.f32 1.442695, %v3056_v34  ;;  %v3921_v25 = vadd.f32 %v3912_v40, %v12151_v36  ;;  %v12290_v50 = vld [vmem:[%s10979_s24 + $0x370] sm:$0xff]  ;;  %v12300_v40 = vld [vmem:[%s10979_s24 + $0x368] sm:$0xff] }
 0x422   : > { %v3271_v29 = vadd.f32 1.0, %v10396_v27  ;;  %5079 = vmatpush.bf16.msra.mxu3 %v12155_v43  ;;  %v9777_v43 = vld [vmem:[%s10979_s24 + $0x378] sm:$0xff] }
 0x423   : > { %v2912_v39 = vmul.f32 %v12033_v35, %v2839_v30  ;;  %v4196_v48 = vpop.f32.mrf.mxu1  ;;  %v4064_v51 = vadd.f32 %v4055_v53, %v3921_v25  ;;  %5171 = vmatpush.bf16.msrb.mxu1 %v12263_v58  ;;  %5206 = vmatpush.bf16.msrb.mxu2 %v12214_v56  ;;  %v13152_v25 = vld [vmem:[#allocation87_spill] sm:$0xff] }
 0x424   : > { %10399 = vrcp.f32 %v3271_v29  ;;  %v12267_v3 = vadd.f32 %v4196_v48, %v4063_v19  ;;  %v12271_v22 = vld [vmem:[#allocation2 + $0x90] sm:$0xff]  ;;  %v10398_v56 = vpop.eup %10397  ;;  %v13151_v19 = vmax.f32 %v13149_v28, %v13150_v33 }
 0x425   : > { %v2985_v36 = vadd.f32 %v12043_v55, %v2912_v39  ;;  %10401 = vpow2.f32 %v3168_v11  ;;  %4708 = vmatmul.bf16.gmra.mxu3 %v12269_v41  ;;  %4835 = vmatmul.bf16.gmra.mxu2 %v12276_v59  ;;  %v13154_v39 = vld [vmem:[#allocation76_spill] sm:$0xff] }
 0x426   : > { %v2219_v26 = vpop.f32.mrf.mxu0  ;;  %4957 = vmatmul.bf16.vlgmr.msra.gmra.mxu1 %v12271_v22  ;;  %5080 = vmatpush.bf16.msra.mxu3 %v12166_v8 }
 0x427   : > { %v3057_v17 = vsub.f32 0.0, %v2985_v36  ;;  %v2696_v6 = vmax.f32 %v13148_v37, %v2219_v26  ;;  %5207 = vmatpush.bf16.msrb.mxu2 %v12230_v61  ;;  %5330 = vmatpush.bf16.msra.mxu1 %v9777_v43 }
 0x428   : > { %v3915_v5 = vpop.f32.mrf.mxu3  ;;  %v4058_v0 = vpop.f32.mrf.mxu2 }
 0x429   : > { %v3170_v60 = vmul.f32 1.442695, %v3057_v17  ;;  %v2840_v9 = vmax.f32 %v2696_v6, %v13151_v19  ;;  %v3922_v34 = vadd.f32 %v3915_v5, %v12179_v24 }
 0x42a   : > { %v10400_v10 = vpop.eup %10399  ;;  %5081 = vmatpush.bf16.msra.mxu3 %v12182_v1 }
 0x42b   : > { %v10012_v27 = vpack.c.bf16 %v10400_v10, %v10398_v56  ;;  %10403 = vpow2.f32 %v3170_v60  ;;  %v2913_v8 = vmul.f32 %v12033_v35, %v2840_v9  ;;  %v4198_v61 = vpop.f32.mrf.mxu1  ;;  %v10402_v52 = vpop.eup %10401  ;;  %v4065_v32 = vadd.f32 %v4058_v0, %v3922_v34  ;;  %5208 = vmatpush.bf16.msrb.mxu2 %v12242_v46  ;;  %5331 = vmatpush.bf16.msra.mxu1 %v12290_v50  ;;  %v13153_v46 = vld [vmem:[#allocation62_spill] sm:$0xff]  ;;  %v12311_v56 = vld [vmem:[%s10979_s24 + $0x360] sm:$0xff]  ;;  %v13157_v0 = vld [vmem:[#allocation65_spill] sm:$0xff] }
 0x42c   : > { %v12294_v38 = vadd.f32 %v4198_v61, %v4064_v51  ;;  %v3272_v29 = vadd.f32 1.0, %v10402_v52  ;;  %v13155_v48 = vmax.f32 %v13153_v46, %v13154_v39  ;;  %v12328_v9 = vld [vmem:[%s10979_s24 + $0x3b8] sm:$0xff] }
 0x42d   : > { %10112 = vst [vmem:[#allocation2 + $0xa0] sm:$0xff] %v10012_v27   ;;  %v2986_v24 = vadd.f32 %v12043_v55, %v2913_v8  ;;  %v13156_v10 = vld [vmem:[#allocation90_spill] sm:$0xff]  ;;  %v13158_v27 = vld [vmem:[#allocation79_spill] sm:$0xff] }
 0x42e   : > { %v2221_v30 = vpop.f32.mrf.mxu0  ;;  %5082 = vmatpush.bf16.msra.mxu3 %v12194_v18  ;;  %10405 = vrcp.f32 %v3272_v29  ;;  %v13159_v8 = vmax.f32 %v13157_v0, %v13158_v27  ;;  %v12339_v29 = vld [vmem:[%s10979_s24 + $0x350] sm:$0xff] }
 0x42f   : > { %v3058_v11 = vsub.f32 0.0, %v2986_v24  ;;  %v2697_v53 = vmax.f32 %v13152_v25, %v2221_v30  ;;  %5209 = vmatpush.bf16.msrb.mxu2 %v12252_v13  ;;  %5332 = vmatpush.bf16.msra.mxu1 %v12300_v40 }
 0x430   : > { %v3917_v36 = vpop.f32.mrf.mxu3  ;;  %v4060_v6 = vpop.f32.mrf.mxu2 }
 0x431   : > { %v10404_v1 = vpop.eup %10403  ;;  %v2841_v51 = vmax.f32 %v2697_v53, %v13155_v48  ;;  %v3172_v17 = vmul.f32 1.442695, %v3058_v11  ;;  %v3923_v37 = vadd.f32 %v3917_v36, %v12208_v4  ;;  %v12342_v11 = vld [vmem:[%s10979_s24 + $0x3b0] sm:$0xff]  ;;  %v12355_v36 = vld [vmem:[%s10979_s24 + $0x348] sm:$0xff] }
 0x432   : > { %v3273_v26 = vadd.f32 1.0, %v10404_v1  ;;  %5083 = vmatpush.bf16.msra.mxu3 %v12211_v20  ;;  %v12325_v20 = vld [vmem:[%s10979_s24 + $0x358] sm:$0xff]  ;;  %v3708_v1 = vadd.f32 %v11860_v62, %v11894_v12 }
 0x433   : > { %v2914_v18 = vmul.f32 %v12033_v35, %v2841_v51  ;;  %v4201_v13 = vpop.f32.mrf.mxu1  ;;  %v4066_v60 = vadd.f32 %v4060_v6, %v3923_v37  ;;  %5210 = vmatpush.bf16.msrb.mxu2 %v12263_v58  ;;  %5333 = vmatpush.bf16.msra.mxu1 %v12311_v56  ;;  %v13161_v6 = vld [vmem:[#allocation68_spill] sm:$0xff] }
 0x434   : > { %10407 = vrcp.f32 %v3273_v26  ;;  %v12315_v28 = vadd.f32 %v4201_v13, %v4065_v32  ;;  %v12317_v33 = vld [vmem:[#allocation2 + $0xa0] sm:$0xff]  ;;  %v10406_v58 = vpop.eup %10405  ;;  %v3882_v48 = vadd.f32 %v11949_v45, %v3708_v1  ;;  %v13160_v26 = vld [vmem:[#allocation92_spill] sm:$0xff] }
 0x435   : > { %v2987_v4 = vadd.f32 %v12043_v55, %v2914_v18  ;;  %10409 = vpow2.f32 %v3172_v17  ;;  %4918 = vmatmul.bf16.vlgmr.msrb.gmra.mxu3 %v12036_v16  ;;  %5045 = vmatmul.bf16.vlgmr.msra.gmra.mxu2 %v12038_v42  ;;  %v13162_v18 = vld [vmem:[#allocation82_spill] sm:$0xff] }
 0x436   : > { %v2224_v19 = vpop.f32.mrf.mxu0  ;;  %4962 = vmatmul.bf16.gmra.mxu1 %v12317_v33  ;;  %5291 = vmatpush.bf16.msrb.mxu3 %v9777_v43  ;;  %v4025_v37 = vadd.f32 %v12188_v23, %v3882_v48  ;;  %v13163_v13 = vmax.f32 %v13161_v6, %v13162_v18 }
 0x437   : > { %v3059_v5 = vsub.f32 0.0, %v2987_v4  ;;  %v2698_v34 = vmax.f32 %v13156_v10, %v2224_v19  ;;  %5334 = vmatpush.bf16.msra.mxu1 %v12325_v20  ;;  %5418 = vmatpush.bf16.msra.mxu2 %v12328_v9 }
 0x438   : > { %v4157_v52 = vpop.f32.mrf.mxu3  ;;  %v4284_v30 = vpop.f32.mrf.mxu2 }
 0x439   : > { %v3174_v16 = vmul.f32 1.442695, %v3059_v5  ;;  %v2842_v61 = vmax.f32 %v2698_v34, %v13159_v8  ;;  %v4167_v24 = vadd.f32 %v4157_v52, %v12159_v54  ;;  %v12384_v52 = vld [vmem:[%s10979_s24 + $0x398] sm:$0xff] }
 0x43a   : > { %v10408_v32 = vpop.eup %10407  ;;  %5292 = vmatpush.bf16.msrb.mxu3 %v12290_v50  ;;  %v12358_v50 = vld [vmem:[%s10979_s24 + $0x3a8] sm:$0xff] }
 0x43b   : > { %v10017_v42 = vpack.c.bf16 %v10408_v32, %v10406_v58  ;;  %10411 = vpow2.f32 %v3174_v16  ;;  %v2915_v43 = vmul.f32 %v12033_v35, %v2842_v61  ;;  %v4203_v25 = vpop.f32.mrf.mxu1  ;;  %v10410_v53 = vpop.eup %10409  ;;  %v4294_v46 = vadd.f32 %v4284_v30, %v4167_v24  ;;  %5335 = vmatpush.bf16.msra.mxu1 %v12339_v29  ;;  %5419 = vmatpush.bf16.msra.mxu2 %v12342_v11  ;;  %v12369_v58 = vld [vmem:[%s10979_s24 + $0x340] sm:$0xff] }
 0x43c   : > { %v12348_v54 = vadd.f32 %v4203_v25, %v4066_v60  ;;  %v3274_v62 = vadd.f32 1.0, %v10410_v53  ;;  %v13164_v24 = vld [vmem:[#allocation95_spill] sm:$0xff] }
 0x43d   : > { %10113 = vst [vmem:[#allocation2 + $0x70] sm:$0xff] %v10017_v42   ;;  %v2988_v39 = vadd.f32 %v12043_v55, %v2915_v43  ;;  %v13166_v43 = vld [vmem:[#allocation85_spill] sm:$0xff] }
 0x43e   : > { %v2226_v51 = vpop.f32.mrf.mxu0  ;;  %5293 = vmatpush.bf16.msrb.mxu3 %v12300_v40  ;;  %v12372_v40 = vld [vmem:[%s10979_s24 + $0x3a0] sm:$0xff]  ;;  %10413 = vrcp.f32 %v3274_v62 }
 0x43f   : > { %v3060_v12 = vsub.f32 0.0, %v2988_v39  ;;  %v2699_v17 = vmax.f32 %v13160_v26, %v2226_v51  ;;  %5336 = vmatpush.bf16.msra.mxu1 %v12355_v36  ;;  %5420 = vmatpush.bf16.msra.mxu2 %v12358_v50  ;;  %v12399_v51 = vld [vmem:[%s10979_s24 + $0x390] sm:$0xff] }
 0x440   : > { %v4159_v4 = vpop.f32.mrf.mxu3  ;;  %v4286_v34 = vpop.f32.mrf.mxu2 }
 0x441   : > { %v10412_v45 = vpop.eup %10411  ;;  %v2843_v60 = vmax.f32 %v2699_v17, %v13163_v13  ;;  %v3176_v5 = vmul.f32 1.442695, %v3060_v12  ;;  %v4168_v10 = vadd.f32 %v4159_v4, %v4025_v37  ;;  %v3713_v17 = vadd.f32 %v11906_v57, %v12059_v7  ;;  %v12415_v13 = vld [vmem:[%s10979_s24 + $0x388] sm:$0xff] }
 0x442   : > { %v3275_v19 = vadd.f32 1.0, %v10412_v45  ;;  %5294 = vmatpush.bf16.msrb.mxu3 %v12311_v56  ;;  %v12387_v56 = vld [vmem:[%s10979_s24 + $0x3f8] sm:$0xff] }
 0x443   : > { %v2916_v23 = vmul.f32 %v12033_v35, %v2843_v60  ;;  %v4411_v16 = vpop.f32.mrf.mxu1  ;;  %v4295_v0 = vadd.f32 %v4286_v34, %v4168_v10  ;;  %5337 = vmatpush.bf16.msra.mxu1 %v12369_v58  ;;  %5421 = vmatpush.bf16.msra.mxu2 %v12372_v40  ;;  %v3884_v6 = vadd.f32 %v12205_v63, %v3713_v17  ;;  %v13168_v60 = vld [vmem:[#allocation97_spill] sm:$0xff]  ;;  %v13170_v10 = vld [vmem:[#allocation88_spill] sm:$0xff] }
 0x444   : > { %10415 = vrcp.f32 %v3275_v19  ;;  %v12376_v27 = vadd.f32 %v4411_v16, %v4294_v46 }
 0x445   : > { %v2989_v8 = vadd.f32 %v12043_v55, %v2916_v23  ;;  %10417 = vpow2.f32 %v3176_v5  ;;  %4923 = vmatmul.bf16.gmra.mxu3 %v12074_v15  ;;  %5050 = vmatmul.bf16.gmra.mxu2 %v12076_v44  ;;  %v10414_v15 = vpop.eup %10413  ;;  %v12402_v44 = vld [vmem:[%s10979_s24 + $0x3f0] sm:$0xff]  ;;  %v4027_v19 = vadd.f32 %v12245_v21, %v3884_v6  ;;  %v13169_v5 = vld [vmem:[#allocation74_spill] sm:$0xff] }
 0x446   : > { %v2229_v61 = vpop.f32.mrf.mxu0  ;;  %5172 = vmatmul.bf16.vlgmr.msrb.gmra.mxu1 %v12078_v47  ;;  %5295 = vmatpush.bf16.msrb.mxu3 %v12325_v20  ;;  %v13165_v47 = vld [vmem:[#allocation71_spill] sm:$0xff]  ;;  %v13171_v34 = vmax.f32 %v13169_v5, %v13170_v10  ;;  %v13176_v5 = vld [vmem:[#allocation93_spill] sm:$0xff] }
 0x447   : > { %v3061_v32 = vsub.f32 0.0, %v2989_v8  ;;  %v2700_v30 = vmax.f32 %v13164_v24, %v2229_v61  ;;  %5422 = vmatpush.bf16.msra.mxu2 %v12384_v52  ;;  %5545 = vmatpush.bf16.msrb.mxu1 %v12387_v56  ;;  %v13167_v25 = vmax.f32 %v13165_v47, %v13166_v43  ;;  %v12429_v24 = vld [vmem:[%s10979_s24 + $0x380] sm:$0xff] }
 0x448   : > { %v4162_v1 = vpop.f32.mrf.mxu3  ;;  %v4289_v48 = vpop.f32.mrf.mxu2  ;;  %v12438_v47 = vld [vmem:[#allocation2 + $0xa0] sm:$0xff] }
 0x449   : > { %v3178_v42 = vmul.f32 1.442695, %v3061_v32  ;;  %v2844_v53 = vmax.f32 %v2700_v30, %v13167_v25  ;;  %v4169_v39 = vadd.f32 %v4162_v1, %v12218_v2  ;;  %v12432_v30 = vld [vmem:[%s10979_s24 + $0x3e0] sm:$0xff]  ;;  %v12443_v25 = vld [vmem:[#allocation2 + $0x70] sm:$0xff] }
 0x44a   : > { %v10416_v46 = vpop.eup %10415  ;;  %5296 = vmatpush.bf16.msrb.mxu3 %v12339_v29  ;;  %v12418_v29 = vld [vmem:[%s10979_s24 + $0x3e8] sm:$0xff] }
 0x44b   : > { %v10022_v20 = vpack.c.bf16 %v10416_v46, %v10414_v15  ;;  %10419 = vpow2.f32 %v3178_v42  ;;  %v2917_v62 = vmul.f32 %v12033_v35, %v2844_v53  ;;  %v4413_v12 = vpop.f32.mrf.mxu1  ;;  %v10418_v26 = vpop.eup %10417  ;;  %v4296_v37 = vadd.f32 %v4289_v48, %v4169_v39  ;;  %5423 = vmatpush.bf16.msra.mxu2 %v12399_v51  ;;  %5546 = vmatpush.bf16.msrb.mxu1 %v12402_v44  ;;  %v13172_v46 = vld [vmem:[#allocation99_spill] sm:$0xff] }
 0x44c   : > { %v12408_v2 = vadd.f32 %v4413_v12, %v4295_v0  ;;  %v3276_v57 = vadd.f32 1.0, %v10418_v26  ;;  %v13174_v12 = vld [vmem:[#allocation91_spill] sm:$0xff] }
 0x44d   : > { %10114 = vst [vmem:[#allocation2 + $0x58] sm:$0xff] %v10022_v20   ;;  %v2990_v45 = vadd.f32 %v12043_v55, %v2917_v62  ;;  %v13173_v62 = vld [vmem:[#allocation77_spill] sm:$0xff] }
 0x44e   : > { %v2231_v18 = vpop.f32.mrf.mxu0  ;;  %5297 = vmatpush.bf16.msrb.mxu3 %v12355_v36  ;;  %10421 = vrcp.f32 %v3276_v57  ;;  %v13175_v26 = vmax.f32 %v13173_v62, %v13174_v12  ;;  %v13179_v12 = vld [vmem:[#allocation105_spill] sm:$0xff] }
 0x44f   : > { %v3062_v7 = vsub.f32 0.0, %v2990_v45  ;;  %v2701_v4 = vmax.f32 %v13168_v60, %v2231_v18  ;;  %5424 = vmatpush.bf16.msra.mxu2 %v12415_v13  ;;  %5547 = vmatpush.bf16.msrb.mxu1 %v12418_v29  ;;  %v12460_v18 = vld [vmem:[%s10979_s24 + $0x3d0] sm:$0xff] }
 0x450   : > { %v4164_v16 = vpop.f32.mrf.mxu3  ;;  %v4291_v32 = vpop.f32.mrf.mxu2 }
 0x451   : > { %v10420_v63 = vpop.eup %10419  ;;  %v2845_v23 = vmax.f32 %v2701_v4, %v13171_v34  ;;  %v3180_v8 = vmul.f32 1.442695, %v3062_v7  ;;  %v4170_v61 = vadd.f32 %v4164_v16, %v4027_v19 }
 0x452   : > { %v3277_v0 = vadd.f32 1.0, %v10420_v63  ;;  %5298 = vmatpush.bf16.msrb.mxu3 %v12369_v58  ;;  %v12448_v58 = vld [vmem:[%s10979_s24 + $0x3d8] sm:$0xff]  ;;  %v12470_v63 = vld [vmem:[%s10979_s24 + $0x3c8] sm:$0xff] }
 0x453   : > { %v2918_v21 = vmul.f32 %v12033_v35, %v2845_v23  ;;  %v4416_v36 = vpop.f32.mrf.mxu1  ;;  %v4297_v15 = vadd.f32 %v4291_v32, %v4170_v61  ;;  %5425 = vmatpush.bf16.msra.mxu2 %v12429_v24  ;;  %5548 = vmatpush.bf16.msrb.mxu1 %v12432_v30  ;;  %v13178_v23 = vld [vmem:[#allocation102_spill] sm:$0xff] }
 0x454   : > { %10423 = vrcp.f32 %v3277_v0  ;;  %v12436_v42 = vadd.f32 %v4416_v36, %v4296_v37  ;;  %v10422_v48 = vpop.eup %10421  ;;  %v12480_v36 = vld [vmem:[%s10979_s24 + $0x3c0] sm:$0xff] }
 0x455   : > { %v2991_v43 = vadd.f32 %v12043_v55, %v2918_v21  ;;  %10425 = vpow2.f32 %v3180_v8  ;;  %5084 = vmatmul.bf16.vlgmr.msra.gmra.mxu3 %v12438_v47  ;;  %5211 = vmatmul.bf16.vlgmr.msrb.gmra.mxu2 %v12443_v25 }
 0x456   : > { %v2234_v53 = vpop.f32.mrf.mxu0  ;;  %5177 = vmatmul.bf16.gmra.mxu1 %v12110_v49  ;;  %5457 = vmatpush.bf16.msra.mxu3 %v12328_v9 }
 0x457   : > { %v3063_v1 = vsub.f32 0.0, %v2991_v43  ;;  %v2702_v39 = vmax.f32 %v13172_v46, %v2234_v53  ;;  %5549 = vmatpush.bf16.msrb.mxu1 %v12448_v58  ;;  %5584 = vmatpush.bf16.msrb.mxu2 %v12387_v56  ;;  %v12491_v46 = vld [vmem:[#allocation2 + $0x58] sm:$0xff] }
 0x458   : > { %v4323_v49 = vpop.f32.mrf.mxu3  ;;  %v4450_v6 = vpop.f32.mrf.mxu2 }
 0x459   : > { %v3182_v20 = vmul.f32 1.442695, %v3063_v1  ;;  %v2846_v17 = vmax.f32 %v2702_v39, %v13175_v26  ;;  %v4333_v45 = vadd.f32 %v4323_v49, %v12267_v3  ;;  %v12489_v1 = vld [vmem:[#allocation2 + $0x70] sm:$0xff]  ;;  %v13180_v49 = vld [vmem:[#allocation83_spill] sm:$0xff] }
 0x45a   : > { %v10424_v37 = vpop.eup %10423  ;;  %5458 = vmatpush.bf16.msra.mxu3 %v12342_v11 }
 0x45b   : > { %v10027_v57 = vpack.c.bf16 %v10424_v37, %v10422_v48  ;;  %10427 = vpow2.f32 %v3182_v20  ;;  %v2919_v9 = vmul.f32 %v12033_v35, %v2846_v17  ;;  %v4418_v7 = vpop.f32.mrf.mxu1  ;;  %v10426_v56 = vpop.eup %10425  ;;  %v4460_v60 = vadd.f32 %v4450_v6, %v4333_v45  ;;  %5550 = vmatpush.bf16.msrb.mxu1 %v12460_v18  ;;  %5585 = vmatpush.bf16.msrb.mxu2 %v12402_v44  ;;  %v13177_v35 = vld [vmem:[#allocation80_spill] sm:$0xff]  ;;  %v12499_v48 = vld [vmem:[#allocation2 + $0x58] sm:$0xff] }
 0x45c   : > { %v12464_v4 = vadd.f32 %v4418_v7, %v4297_v15  ;;  %v2775_v10 = vmax.f32 %v13177_v35, %v13176_v5  ;;  %v3278_v11 = vadd.f32 1.0, %v10426_v56  ;;  %v12483_v15 = vld [vmem:[%s10587_s16] ss:$0 sm:$0xff]  ;;  %v12504_v20 = vld [vmem:[%s10979_s24 + $0x438] sm:$0xff]  ;;  %v13181_v37 = vld [vmem:[#allocation96_spill] sm:$0xff] }
 0x45d   : > { %10115 = vst [vmem:[#allocation2 + $0xe0] sm:$0xff] %v10027_v57   ;;  %v2992_v3 = vadd.f32 %v12043_v55, %v2919_v9  ;;  %v13182_v45 = vmax.f32 %v13180_v49, %v13181_v37  ;;  %v13187_v37 = vld [vmem:[#allocation89_spill] sm:$0xff] }
 0x45e   : > { %v2236_v19 = vpop.f32.mrf.mxu0  ;;  %5459 = vmatpush.bf16.msra.mxu3 %v12358_v50  ;;  %10429 = vrcp.f32 %v3278_v11  ;;  %v12526_v11 = vld [vmem:[%s10979_s24 + $0x428] sm:$0xff] }
 0x45f   : > { %v3064_v34 = vsub.f32 0.0, %v2992_v3  ;;  %v2703_v16 = vmax.f32 %v13178_v23, %v2236_v19  ;;  %5551 = vmatpush.bf16.msrb.mxu1 %v12470_v63  ;;  %5586 = vmatpush.bf16.msrb.mxu2 %v12418_v29  ;;  %v13184_v23 = vld [vmem:[#allocation86_spill] sm:$0xff] }
 0x460   : > { %v4325_v0 = vpop.f32.mrf.mxu3  ;;  %v4452_v21 = vpop.f32.mrf.mxu2 }
 0x461   : > { %v10428_v44 = vpop.eup %10427  ;;  %v2847_v55 = vmax.f32 %v2703_v16, %v2775_v10  ;;  %v3184_v61 = vmul.f32 1.442695, %v3064_v34  ;;  %v4334_v32 = vadd.f32 %v4325_v0, %v12294_v38  ;;  %v12496_v38 = vld [vmem:[%s10587_s16 + $0x1] ss:$0 sm:$0xff]  ;;  %v13183_v34 = vld [vmem:[#allocation98_spill] sm:$0xff] }
 0x462   : > { %v3279_v8 = vadd.f32 1.0, %v10428_v44  ;;  %5460 = vmatpush.bf16.msra.mxu3 %v12372_v40  ;;  %v2777_v16 = vmax.f32 %v13184_v23, %v13183_v34  ;;  %v9801_v34 = vld [vmem:[%s10979_s24 + $0x408] sm:$0xff] }
 0x463   : > { %v2920_v50 = vmul.f32 %v12483_v15, %v2847_v55  ;;  %v4577_v43 = vpop.f32.mrf.mxu1  ;;  %v4461_v29 = vadd.f32 %v4452_v21, %v4334_v32  ;;  %5552 = vmatpush.bf16.msrb.mxu1 %v12480_v36  ;;  %5587 = vmatpush.bf16.msrb.mxu2 %v12432_v30  ;;  %v13185_v55 = vld [vmem:[#allocation106_spill] sm:$0xff]  ;;  %v12579_v23 = vld [vmem:[%s10979_s24 + $0x468] sm:$0xff] }
 0x464   : > { %10431 = vrcp.f32 %v3279_v8  ;;  %v12487_v53 = vadd.f32 %v4577_v43, %v4460_v60  ;;  %v10430_v30 = vpop.eup %10429  ;;  %v12516_v60 = vld [vmem:[%s10979_s24 + $0x430] sm:$0xff] }
 0x465   : > { %v2993_v39 = vadd.f32 %v12496_v38, %v2920_v50  ;;  %10433 = vpow2.f32 %v3184_v61  ;;  %5089 = vmatmul.bf16.gmra.mxu3 %v12489_v1  ;;  %5216 = vmatmul.bf16.gmra.mxu2 %v12499_v48 }
 0x466   : > { %v2239_v40 = vpop.f32.mrf.mxu0  ;;  %5338 = vmatmul.bf16.vlgmr.msra.gmra.mxu1 %v12491_v46  ;;  %5461 = vmatpush.bf16.msra.mxu3 %v12384_v52 }
 0x467   : > { %v3065_v62 = vsub.f32 0.0, %v2993_v39  ;;  %v2704_v26 = vmax.f32 %v13179_v12, %v2239_v40  ;;  %5588 = vmatpush.bf16.msrb.mxu2 %v12448_v58  ;;  %5711 = vmatpush.bf16.msra.mxu1 %v12504_v20 }
 0x468   : > { %v4328_v57 = vpop.f32.mrf.mxu3  ;;  %v4455_v56 = vpop.f32.mrf.mxu2 }
 0x469   : > { %v3186_v17 = vmul.f32 1.442695, %v3065_v62  ;;  %v2848_v6 = vmax.f32 %v2704_v26, %v13182_v45  ;;  %v4335_v7 = vadd.f32 %v4328_v57, %v12315_v28  ;;  %v12542_v62 = vld [vmem:[#allocation2 + $0xe0] sm:$0xff]  ;;  %v12553_v26 = vld [vmem:[%s10979_s24 + $0x478] sm:$0xff]  ;;  %v13188_v45 = vld [vmem:[#allocation100_spill] sm:$0xff] }
 0x46a   : > { %v10432_v9 = vpop.eup %10431  ;;  %5462 = vmatpush.bf16.msra.mxu3 %v12399_v51 }
 0x46b   : > { %v10032_v3 = vpack.c.bf16 %v10432_v9, %v10430_v30  ;;  %10435 = vpow2.f32 %v3186_v17  ;;  %v2921_v52 = vmul.f32 %v12483_v15, %v2848_v6  ;;  %v4579_v58 = vpop.f32.mrf.mxu1  ;;  %v10434_v19 = vpop.eup %10433  ;;  %v4462_v5 = vadd.f32 %v4455_v56, %v4335_v7  ;;  %5589 = vmatpush.bf16.msrb.mxu2 %v12460_v18  ;;  %5712 = vmatpush.bf16.msra.mxu1 %v12516_v60  ;;  %v13186_v17 = vld [vmem:[#allocation107_spill] sm:$0xff] }
 0x46c   : > { %v12520_v35 = vadd.f32 %v4579_v58, %v4461_v29  ;;  %v3280_v44 = vadd.f32 1.0, %v10434_v19  ;;  %v12536_v29 = vld [vmem:[%s10979_s24 + $0x420] sm:$0xff]  ;;  %v13189_v6 = vmax.f32 %v13187_v37, %v13188_v45  ;;  %v12608_v45 = vld [vmem:[%s10979_s24 + $0x450] sm:$0xff] }
 0x46d   : > { %10116 = vst [vmem:[#allocation2 + $0x60] sm:$0xff] %v10032_v3   ;;  %v2994_v28 = vadd.f32 %v12496_v38, %v2921_v52 }
 0x46e   : > { %v2241_v10 = vpop.f32.mrf.mxu0  ;;  %5463 = vmatpush.bf16.msra.mxu3 %v12415_v13  ;;  %10437 = vrcp.f32 %v3280_v44  ;;  %v13190_v44 = vld [vmem:[#allocation103_spill] sm:$0xff] }
 0x46f   : > { %v3066_v51 = vsub.f32 0.0, %v2994_v28  ;;  %v2705_v0 = vmax.f32 %v13185_v55, %v2241_v10  ;;  %5590 = vmatpush.bf16.msrb.mxu2 %v12470_v63  ;;  %5713 = vmatpush.bf16.msra.mxu1 %v12526_v11 }
 0x470   : > { %v4330_v61 = vpop.f32.mrf.mxu3  ;;  %v4457_v43 = vpop.f32.mrf.mxu2 }
 0x471   : > { %v10436_v18 = vpop.eup %10435  ;;  %v2849_v8 = vmax.f32 %v2705_v0, %v2777_v16  ;;  %v3188_v21 = vmul.f32 1.442695, %v3066_v51  ;;  %v4336_v50 = vadd.f32 %v4330_v61, %v12348_v54  ;;  %v13191_v51 = vld [vmem:[#allocation94_spill] sm:$0xff] }
 0x472   : > { %v3281_v32 = vadd.f32 1.0, %v10436_v18  ;;  %5464 = vmatpush.bf16.msra.mxu3 %v12429_v24  ;;  %v12550_v24 = vld [vmem:[%s10979_s24 + $0x418] sm:$0xff]  ;;  %v13192_v18 = vld [vmem:[#allocation108_spill] sm:$0xff] }
 0x473   : > { %v2922_v39 = vmul.f32 %v12483_v15, %v2849_v8  ;;  %v4582_v13 = vpop.f32.mrf.mxu1  ;;  %v4463_v63 = vadd.f32 %v4457_v43, %v4336_v50  ;;  %5591 = vmatpush.bf16.msrb.mxu2 %v12480_v36  ;;  %5714 = vmatpush.bf16.msra.mxu1 %v12536_v29 }
 0x474   : > { %10439 = vrcp.f32 %v3281_v32  ;;  %v12540_v40 = vadd.f32 %v4582_v13, %v4462_v5 }
 0x475   : > { %v2995_v54 = vadd.f32 %v12496_v38, %v2922_v39  ;;  %10441 = vpow2.f32 %v3188_v21  ;;  %5299 = vmatmul.bf16.vlgmr.msrb.gmra.mxu3 %v12220_v14  ;;  %5426 = vmatmul.bf16.vlgmr.msra.gmra.mxu2 %v12225_v31  ;;  %v10438_v14 = vpop.eup %10437  ;;  %v12565_v31 = vld [vmem:[%s10979_s24 + $0x410] sm:$0xff] }
 0x476   : > { %v2244_v12 = vpop.f32.mrf.mxu0  ;;  %5343 = vmatmul.bf16.gmra.mxu1 %v12542_v62  ;;  %5672 = vmatpush.bf16.msrb.mxu3 %v12504_v20  ;;  %v12568_v20 = vld [vmem:[%s10979_s24 + $0x470] sm:$0xff] }
 0x477   : > { %v3067_v30 = vsub.f32 0.0, %v2995_v54  ;;  %v2706_v49 = vmax.f32 %v13186_v17, %v2244_v12  ;;  %5715 = vmatpush.bf16.msra.mxu1 %v12550_v24  ;;  %5799 = vmatpush.bf16.msra.mxu2 %v12553_v26  ;;  %v12589_v54 = vld [vmem:[%s10979_s24 + $0x460] sm:$0xff] }
 0x478   : > { %v4538_v9 = vpop.f32.mrf.mxu3  ;;  %v4665_v3 = vpop.f32.mrf.mxu2 }
 0x479   : > { %v3190_v36 = vmul.f32 1.442695, %v3067_v30  ;;  %v2850_v57 = vmax.f32 %v2706_v49, %v13189_v6  ;;  %v4548_v56 = vadd.f32 %v4538_v9, %v12376_v27  ;;  %v9827_v49 = vld [vmem:[%s10979_s24 + $0x4b8] sm:$0xff]  ;;  %v9826_v6 = vld [vmem:[%s10979_s24 + $0x4b0] sm:$0xff] }
 0x47a   : > { %v10440_v7 = vpop.eup %10439  ;;  %5673 = vmatpush.bf16.msrb.mxu3 %v12516_v60  ;;  %v2779_v60 = vmax.f32 %v13191_v51, %v13190_v44 }
 0x47b   : > { %v10037_v52 = vpack.c.bf16 %v10440_v7, %v10438_v14  ;;  %10443 = vpow2.f32 %v3190_v36  ;;  %v2923_v58 = vmul.f32 %v12483_v15, %v2850_v57  ;;  %v4584_v19 = vpop.f32.mrf.mxu1  ;;  %v10442_v5 = vpop.eup %10441  ;;  %v4675_v28 = vadd.f32 %v4665_v3, %v4548_v56  ;;  %5716 = vmatpush.bf16.msra.mxu1 %v12565_v31  ;;  %5800 = vmatpush.bf16.msra.mxu2 %v12568_v20  ;;  %v12616_v56 = vld [vmem:[%s10979_s24 + $0x448] sm:$0xff] }
 0x47c   : > { %v12572_v10 = vadd.f32 %v4584_v19, %v4463_v63  ;;  %v3282_v55 = vadd.f32 1.0, %v10442_v5  ;;  %v9800_v63 = vld [vmem:[%s10979_s24 + $0x400] sm:$0xff] }
 0x47d   : > { %10117 = vst [vmem:[#allocation2 + $0xa8] sm:$0xff] %v10037_v52   ;;  %v2996_v27 = vadd.f32 %v12496_v38, %v2923_v58 }
 0x47e   : > { %v2246_v16 = vpop.f32.mrf.mxu0  ;;  %5674 = vmatpush.bf16.msrb.mxu3 %v12526_v11  ;;  %10445 = vrcp.f32 %v3282_v55 }
 0x47f   : > { %v3068_v0 = vsub.f32 0.0, %v2996_v27  ;;  %v2707_v8 = vmax.f32 %v13192_v18, %v2246_v16  ;;  %5717 = vmatpush.bf16.msra.mxu1 %v9801_v34  ;;  %5801 = vmatpush.bf16.msra.mxu2 %v12579_v23  ;;  %v9824_v27 = vld [vmem:[%s10979_s24 + $0x4a0] sm:$0xff] }
 0x480   : > { %v4540_v21 = vpop.f32.mrf.mxu3  ;;  %v4667_v13 = vpop.f32.mrf.mxu2 }
 0x481   : > { %v10444_v61 = vpop.eup %10443  ;;  %v2851_v32 = vmax.f32 %v2707_v8, %v2779_v60  ;;  %v3192_v43 = vmul.f32 1.442695, %v3068_v0  ;;  %v4549_v39 = vadd.f32 %v4540_v21, %v12408_v2 }
 0x482   : > { %v3283_v50 = vadd.f32 1.0, %v10444_v61  ;;  %5675 = vmatpush.bf16.msrb.mxu3 %v12536_v29 }
 0x483   : > { %v2924_v12 = vmul.f32 %v12483_v15, %v2851_v32  ;;  %v4792_v11 = vpop.f32.mrf.mxu1  ;;  %v4676_v30 = vadd.f32 %v4667_v13, %v4549_v39  ;;  %5718 = vmatpush.bf16.msra.mxu1 %v9800_v63  ;;  %5802 = vmatpush.bf16.msra.mxu2 %v12589_v54  ;;  %v12600_v15 = vld [vmem:[%s10979_s24 + $0x458] sm:$0xff]  ;;  %v9822_v32 = vld [vmem:[%s10979_s24 + $0x490] sm:$0xff] }
 0x484   : > { %10447 = vrcp.f32 %v3283_v50  ;;  %v12593_v17 = vadd.f32 %v4792_v11, %v4675_v28  ;;  %v10446_v14 = vpop.eup %10445  ;;  %v12622_v28 = vld [vmem:[%s10979_s24 + $0x440] sm:$0xff]  ;;  %v12630_v60 = vld [vmem:[#allocation2 + $0xa8] sm:$0xff] }
 0x485   : > { %v2997_v2 = vadd.f32 %v12496_v38, %v2924_v12  ;;  %10449 = vpow2.f32 %v3192_v43  ;;  %5304 = vmatmul.bf16.gmra.mxu3 %v12269_v41  ;;  %5431 = vmatmul.bf16.gmra.mxu2 %v12276_v59 }
 0x486   : > { %5553 = vmatmul.bf16.vlgmr.msrb.gmra.mxu1 %v12271_v22  ;;  %5676 = vmatpush.bf16.msrb.mxu3 %v12550_v24 }
 0x487   : > { %v3069_v29 = vsub.f32 0.0, %v2997_v2  ;;  %5803 = vmatpush.bf16.msra.mxu2 %v12600_v15  ;;  %5926 = vmatpush.bf16.msrb.mxu1 %v9827_v49 }
 0x488   : > { %v4543_v36 = vpop.f32.mrf.mxu3  ;;  %v4670_v22 = vpop.f32.mrf.mxu2 }
 0x489   : > { %v3194_v38 = vmul.f32 1.442695, %v3069_v29  ;;  %v4550_v37 = vadd.f32 %v4543_v36, %v12436_v42  ;;  %v9825_v42 = vld [vmem:[%s10979_s24 + $0x4a8] sm:$0xff] }
 0x48a   : > { %v10448_v41 = vpop.eup %10447  ;;  %5677 = vmatpush.bf16.msrb.mxu3 %v12565_v31 }
 0x48b   : > { %v10042_v57 = vpack.c.bf16 %v10448_v41, %v10446_v14  ;;  %10451 = vpow2.f32 %v3194_v38  ;;  %v4794_v59 = vpop.f32.mrf.mxu1  ;;  %v10450_v24 = vpop.eup %10449  ;;  %v4677_v9 = vadd.f32 %v4670_v22, %v4550_v37  ;;  %5804 = vmatpush.bf16.msra.mxu2 %v12608_v45  ;;  %5927 = vmatpush.bf16.msrb.mxu1 %v9826_v6  ;;  %v9836_v14 = vld [vmem:[%s10979_s24 + $0x4f0] sm:$0xff]  ;;  %v9835_v37 = vld [vmem:[%s10979_s24 + $0x4e8] sm:$0xff] }
 0x48c   : > { %v12612_v7 = vadd.f32 %v4794_v59, %v4676_v30  ;;  %v3284_v3 = vadd.f32 1.0, %v10450_v24  ;;  %v12649_v30 = vld [vmem:[#allocation2 + $0x60] sm:$0xff] }
 0x48d   : > { %10118 = vst [vmem:[#allocation2 + $0x88] sm:$0xff] %v10042_v57  }
 0x48e   : > { %5678 = vmatpush.bf16.msrb.mxu3 %v9801_v34  ;;  %10453 = vrcp.f32 %v3284_v3  ;;  %v12627_v34 = vld [vmem:[#allocation2 + $0xe0] sm:$0xff] }
 0x48f   : > { %5805 = vmatpush.bf16.msra.mxu2 %v12616_v56  ;;  %5928 = vmatpush.bf16.msrb.mxu1 %v9825_v42 }
 0x490   : > { %v4545_v31 = vpop.f32.mrf.mxu3  ;;  %v4672_v5 = vpop.f32.mrf.mxu2 }
 0x491   : > { %v10452_v52 = vpop.eup %10451  ;;  %v4551_v19 = vadd.f32 %v4545_v31, %v12464_v4  ;;  %v9823_v4 = vld [vmem:[%s10979_s24 + $0x498] sm:$0xff] }
 0x492   : > { %v3285_v58 = vadd.f32 1.0, %v10452_v52  ;;  %5679 = vmatpush.bf16.msrb.mxu3 %v9800_v63  ;;  %v9820_v63 = vld [vmem:[%s10979_s24 + $0x480] sm:$0xff]  ;;  %v9832_v52 = vld [vmem:[%s10979_s24 + $0x4d0] sm:$0xff] }
 0x493   : > { %v4797_v16 = vpop.f32.mrf.mxu1  ;;  %v4678_v44 = vadd.f32 %v4672_v5, %v4551_v19  ;;  %5806 = vmatpush.bf16.msra.mxu2 %v12622_v28  ;;  %5929 = vmatpush.bf16.msrb.mxu1 %v9824_v27  ;;  %v12692_v5 = vld [vmem:[%s10979_s24 + $0x528] sm:$0xff] }
 0x494   : > { %10455 = vrcp.f32 %v3285_v58  ;;  %v12625_v51 = vadd.f32 %v4797_v16, %v4677_v9  ;;  %v10454_v55 = vpop.eup %10453  ;;  %v12651_v2 = vld [vmem:[#allocation2 + $0x88] sm:$0xff]  ;;  %v9833_v9 = vld [vmem:[%s10979_s24 + $0x4d8] sm:$0xff]  ;;  %v9830_v16 = vld [vmem:[%s10979_s24 + $0x4c0] sm:$0xff] }
 0x495   : > { %5465 = vmatmul.bf16.vlgmr.msra.gmra.mxu3 %v12627_v34  ;;  %5592 = vmatmul.bf16.vlgmr.msrb.gmra.mxu2 %v12630_v60 }
 0x496   : > { %5558 = vmatmul.bf16.gmra.mxu1 %v12317_v33  ;;  %5838 = vmatpush.bf16.msra.mxu3 %v12553_v26  ;;  %v9821_v26 = vld [vmem:[%s10979_s24 + $0x488] sm:$0xff] }
 0x497   : > { %5930 = vmatpush.bf16.msrb.mxu1 %v9823_v4  ;;  %5965 = vmatpush.bf16.msrb.mxu2 %v9827_v49 }
 0x498   : > { %v4704_v0 = vpop.f32.mrf.mxu3  ;;  %v4831_v61 = vpop.f32.mrf.mxu2 }
 0x499   : > { %v4714_v8 = vadd.f32 %v4704_v0, %v12487_v53 }
 0x49a   : > { %v10456_v18 = vpop.eup %10455  ;;  %5839 = vmatpush.bf16.msra.mxu3 %v12568_v20 }
 0x49b   : > { %v10047_v21 = vpack.c.bf16 %v10456_v18, %v10454_v55  ;;  %v4799_v50 = vpop.f32.mrf.mxu1  ;;  %v4841_v33 = vadd.f32 %v4831_v61, %v4714_v8  ;;  %5931 = vmatpush.bf16.msrb.mxu1 %v9822_v32  ;;  %5966 = vmatpush.bf16.msrb.mxu2 %v9826_v6  ;;  %v9834_v6 = vld [vmem:[%s10979_s24 + $0x4e0] sm:$0xff]  ;;  %v12706_v18 = vld [vmem:[%s10979_s24 + $0x518] sm:$0xff] }
 0x49c   : > { %v12640_v43 = vadd.f32 %v4799_v50, %v4678_v44  ;;  %v12698_v44 = vld [vmem:[%s10979_s24 + $0x520] sm:$0xff] }
 0x49d   : > { %10119 = vst [vmem:[#allocation2 + $0xd8] sm:$0xff] %v10047_v21   ;;  %v12713_v21 = vld [vmem:[%s10979_s24 + $0x510] sm:$0xff] }
 0x49e   : > { %5840 = vmatpush.bf16.msra.mxu3 %v12579_v23  ;;  %v12653_v23 = vld [vmem:[#allocation2 + $0x88] sm:$0xff] }
 0x49f   : > { %5932 = vmatpush.bf16.msrb.mxu1 %v9821_v26  ;;  %5967 = vmatpush.bf16.msrb.mxu2 %v9825_v42 }
 0x4a0   : > { %v4706_v53 = vpop.f32.mrf.mxu3  ;;  %v4833_v13 = vpop.f32.mrf.mxu2 }
 0x4a1   : > { %v4715_v39 = vadd.f32 %v4706_v53, %v12520_v35  ;;  %v9837_v35 = vld [vmem:[%s10979_s24 + $0x4f8] sm:$0xff] }
 0x4a2   : > { %5841 = vmatpush.bf16.msra.mxu3 %v12589_v54 }
 0x4a3   : > { %v4958_v12 = vpop.f32.mrf.mxu1  ;;  %v4842_v20 = vadd.f32 %v4833_v13, %v4715_v39  ;;  %5933 = vmatpush.bf16.msrb.mxu1 %v9820_v63  ;;  %5968 = vmatpush.bf16.msrb.mxu2 %v9824_v27  ;;  %v12726_v13 = vld [vmem:[%s10979_s24 + $0x500] sm:$0xff] }
 0x4a4   : > { %v12647_v11 = vadd.f32 %v4958_v12, %v4841_v33  ;;  %v12672_v24 = vld [vmem:[#allocation2 + $0xd8] sm:$0xff] }
 0x4a5   : > { %5470 = vmatmul.bf16.gmra.mxu3 %v12649_v30  ;;  %5597 = vmatmul.bf16.gmra.mxu2 %v12653_v23 }
 0x4a6   : > { %5719 = vmatmul.bf16.vlgmr.msra.gmra.mxu1 %v12651_v2  ;;  %5842 = vmatpush.bf16.msra.mxu3 %v12600_v15 }
 0x4a7   : > { %5969 = vmatpush.bf16.msrb.mxu2 %v9823_v4  ;;  %6092 = vmatpush.bf16.msra.mxu1 %v9837_v35 }
 0x4a8   : > { %v4709_v54 = vpop.f32.mrf.mxu3  ;;  %v4836_v29 = vpop.f32.mrf.mxu2 }
 0x4a9   : > { %v4716_v49 = vadd.f32 %v4709_v54, %v12540_v40  ;;  %v12731_v54 = vld [vmem:[#allocation2 + $0xd8] sm:$0xff] }
 0x4aa   : > { %5843 = vmatpush.bf16.msra.mxu3 %v12608_v45 }
 0x4ab   : > { %v4960_v38 = vpop.f32.mrf.mxu1  ;;  %v4843_v36 = vadd.f32 %v4836_v29, %v4716_v49  ;;  %5970 = vmatpush.bf16.msrb.mxu2 %v9822_v32  ;;  %6093 = vmatpush.bf16.msra.mxu1 %v9836_v14  ;;  %v12734_v49 = vld [vmem:[#allocation2 + $0xc0] sm:$0xff] }
 0x4ac   : > { %v12663_v41 = vadd.f32 %v4960_v38, %v4842_v20 }
 0x4ae   : > { %5844 = vmatpush.bf16.msra.mxu3 %v12616_v56 }
 0x4af   : > { %5971 = vmatpush.bf16.msrb.mxu2 %v9821_v26  ;;  %6094 = vmatpush.bf16.msra.mxu1 %v9835_v37  ;;  %v9855_v26 = vld [vmem:[%s10979_s24 + $0x568] sm:$0xff] }
 0x4b0   : > { %v4711_v15 = vpop.f32.mrf.mxu3  ;;  %v4838_v22 = vpop.f32.mrf.mxu2 }
 0x4b1   : > { %v4717_v40 = vadd.f32 %v4711_v15, %v12572_v10  ;;  %v12678_v10 = vld [vmem:[%s10979_s24 + $0x538] sm:$0xff] }
 0x4b2   : > { %5845 = vmatpush.bf16.msra.mxu3 %v12622_v28 }
 0x4b3   : > { %v4963_v57 = vpop.f32.mrf.mxu1  ;;  %v4844_v45 = vadd.f32 %v4838_v22, %v4717_v40  ;;  %5972 = vmatpush.bf16.msrb.mxu2 %v9820_v63  ;;  %6095 = vmatpush.bf16.msra.mxu1 %v9834_v6  ;;  %v9854_v63 = vld [vmem:[%s10979_s24 + $0x560] sm:$0xff] }
 0x4b4   : > { %v12670_v59 = vadd.f32 %v4963_v57, %v4843_v36  ;;  %v9852_v36 = vld [vmem:[%s10979_s24 + $0x550] sm:$0xff]  ;;  %v9850_v57 = vld [vmem:[%s10979_s24 + $0x540] sm:$0xff] }
 0x4b5   : > { %5680 = vmatmul.bf16.vlgmr.msrb.gmra.mxu3 %v12438_v47  ;;  %5807 = vmatmul.bf16.vlgmr.msra.gmra.mxu2 %v12443_v25  ;;  %v12685_v47 = vld [vmem:[%s10979_s24 + $0x530] sm:$0xff]  ;;  %v9831_v25 = vld [vmem:[%s10979_s24 + $0x4c8] sm:$0xff] }
 0x4b6   : > { %5724 = vmatmul.bf16.gmra.mxu1 %v12672_v24  ;;  %6053 = vmatpush.bf16.msrb.mxu3 %v9837_v35 }
 0x4b7   : > { %6096 = vmatpush.bf16.msra.mxu1 %v9833_v9  ;;  %6180 = vmatpush.bf16.msra.mxu2 %v12678_v10 }
 0x4b8   : > { %v4919_v56 = vpop.f32.mrf.mxu3  ;;  %v5046_v3 = vpop.f32.mrf.mxu2 }
 0x4b9   : > { %v4929_v42 = vadd.f32 %v4919_v56, %v12593_v17  ;;  %v12753_v56 = vld [vmem:[#allocation2 + $0xc0] sm:$0xff] }
 0x4ba   : > { %6054 = vmatpush.bf16.msrb.mxu3 %v9836_v14 }
 0x4bb   : > { %v4965_v31 = vpop.f32.mrf.mxu1  ;;  %v5056_v58 = vadd.f32 %v5046_v3, %v4929_v42  ;;  %6097 = vmatpush.bf16.msra.mxu1 %v9832_v52  ;;  %6181 = vmatpush.bf16.msra.mxu2 %v12685_v47  ;;  %v12755_v42 = vld [vmem:[#allocation2 + $0x50] sm:$0xff] }
 0x4bc   : > { %v12687_v19 = vadd.f32 %v4965_v31, %v4844_v45  ;;  %v12757_v3 = vld [vmem:[#allocation2 + $0x50] sm:$0xff] }
 0x4be   : > { %6055 = vmatpush.bf16.msrb.mxu3 %v9835_v37 }
 0x4bf   : > { %6098 = vmatpush.bf16.msra.mxu1 %v9831_v25  ;;  %6182 = vmatpush.bf16.msra.mxu2 %v12692_v5 }
 0x4c0   : > { %v4921_v17 = vpop.f32.mrf.mxu3  ;;  %v5048_v27 = vpop.f32.mrf.mxu2 }
 0x4c1   : > { %v4930_v28 = vadd.f32 %v4921_v17, %v12612_v7  ;;  %v9857_v7 = vld [vmem:[%s10979_s24 + $0x578] sm:$0xff] }
 0x4c2   : > { %6056 = vmatpush.bf16.msrb.mxu3 %v9834_v6 }
 0x4c3   : > { %v5173_v4 = vpop.f32.mrf.mxu1  ;;  %v5057_v55 = vadd.f32 %v5048_v27, %v4930_v28  ;;  %6099 = vmatpush.bf16.msra.mxu1 %v9830_v16  ;;  %6183 = vmatpush.bf16.msra.mxu2 %v12698_v44  ;;  %v9865_v28 = vld [vmem:[%s10979_s24 + $0x5a8] sm:$0xff] }
 0x4c4   : > { %v12700_v0 = vadd.f32 %v5173_v4, %v5056_v58  ;;  %v9866_v58 = vld [vmem:[%s10979_s24 + $0x5b0] sm:$0xff] }
 0x4c5   : > { %5685 = vmatmul.bf16.gmra.mxu3 %v12489_v1  ;;  %5812 = vmatmul.bf16.gmra.mxu2 %v12499_v48  ;;  %v9856_v1 = vld [vmem:[%s10979_s24 + $0x570] sm:$0xff]  ;;  %v12720_v48 = vld [vmem:[%s10979_s24 + $0x508] sm:$0xff] }
 0x4c6   : > { %5934 = vmatmul.bf16.vlgmr.msrb.gmra.mxu1 %v12491_v46  ;;  %6057 = vmatpush.bf16.msrb.mxu3 %v9833_v9 }
 0x4c7   : > { %6184 = vmatpush.bf16.msra.mxu2 %v12706_v18  ;;  %6307 = vmatpush.bf16.msrb.mxu1 %v9857_v7 }
 0x4c8   : > { %v4924_v8 = vpop.f32.mrf.mxu3  ;;  %v5051_v32 = vpop.f32.mrf.mxu2 }
 0x4c9   : > { %v4931_v61 = vadd.f32 %v4924_v8, %v12625_v51  ;;  %v9863_v8 = vld [vmem:[%s10979_s24 + $0x598] sm:$0xff] }
 0x4ca   : > { %6058 = vmatpush.bf16.msrb.mxu3 %v9832_v52 }
 0x4cb   : > { %v5175_v46 = vpop.f32.mrf.mxu1  ;;  %v5058_v50 = vadd.f32 %v5051_v32, %v4931_v61  ;;  %6185 = vmatpush.bf16.msra.mxu2 %v12713_v21  ;;  %6308 = vmatpush.bf16.msrb.mxu1 %v9856_v1 }
 0x4cc   : > { %v12716_v33 = vadd.f32 %v5175_v46, %v5057_v55 }
 0x4ce   : > { %6059 = vmatpush.bf16.msrb.mxu3 %v9831_v25 }
 0x4cf   : > { %6186 = vmatpush.bf16.msra.mxu2 %v12720_v48  ;;  %6309 = vmatpush.bf16.msrb.mxu1 %v9855_v26 }
 0x4d0   : > { %v4926_v51 = vpop.f32.mrf.mxu3  ;;  %v5053_v39 = vpop.f32.mrf.mxu2 }
 0x4d1   : > { %v4932_v53 = vadd.f32 %v4926_v51, %v12640_v43  ;;  %v9853_v43 = vld [vmem:[%s10979_s24 + $0x558] sm:$0xff] }
 0x4d2   : > { %6060 = vmatpush.bf16.msrb.mxu3 %v9830_v16 }
 0x4d3   : > { %v5178_v12 = vpop.f32.mrf.mxu1  ;;  %v5059_v20 = vadd.f32 %v5053_v39, %v4932_v53  ;;  %6187 = vmatpush.bf16.msra.mxu2 %v12726_v13  ;;  %6310 = vmatpush.bf16.msrb.mxu1 %v9854_v63  ;;  %v9860_v39 = vld [vmem:[%s10979_s24 + $0x580] sm:$0xff] }
 0x4d4   : > { %v12729_v35 = vadd.f32 %v5178_v12, %v5058_v50 }
 0x4d5   : > { %5846 = vmatmul.bf16.vlgmr.msra.gmra.mxu3 %v12731_v54  ;;  %5973 = vmatmul.bf16.vlgmr.msrb.gmra.mxu2 %v12734_v49 }
 0x4d6   : > { %5939 = vmatmul.bf16.gmra.mxu1 %v12542_v62  ;;  %6219 = vmatpush.bf16.msra.mxu3 %v12678_v10  ;;  %v9851_v62 = vld [vmem:[%s10979_s24 + $0x548] sm:$0xff] }
 0x4d7   : > { %6311 = vmatpush.bf16.msrb.mxu1 %v9853_v43  ;;  %6346 = vmatpush.bf16.msrb.mxu2 %v9857_v7  ;;  %v12776_v7 = vld [vmem:[#allocation2 + $0xf0] sm:$0xff] }
 0x4d8   : > { %v5085_v29 = vpop.f32.mrf.mxu3  ;;  %v5212_v38 = vpop.f32.mrf.mxu2 }
 0x4d9   : > { %v5095_v14 = vadd.f32 %v5085_v29, %v12647_v11 }
 0x4da   : > { %6220 = vmatpush.bf16.msra.mxu3 %v12685_v47 }
 0x4db   : > { %v5180_v37 = vpop.f32.mrf.mxu1  ;;  %v5222_v15 = vadd.f32 %v5212_v38, %v5095_v14  ;;  %6312 = vmatpush.bf16.msrb.mxu1 %v9852_v36  ;;  %6347 = vmatpush.bf16.msrb.mxu2 %v9856_v1  ;;  %v9862_v1 = vld [vmem:[%s10979_s24 + $0x590] sm:$0xff] }
 0x4dc   : > { %v12744_v40 = vadd.f32 %v5180_v37, %v5059_v20 }
 0x4de   : > { %6221 = vmatpush.bf16.msra.mxu3 %v12692_v5 }
 0x4df   : > { %6313 = vmatpush.bf16.msrb.mxu1 %v9851_v62  ;;  %6348 = vmatpush.bf16.msrb.mxu2 %v9855_v26  ;;  %v12796_v26 = vld [vmem:[%s10979_s24 + $0x5e8] sm:$0xff] }
 0x4e0   : > { %v5087_v22 = vpop.f32.mrf.mxu3  ;;  %v5214_v6 = vpop.f32.mrf.mxu2 }
 0x4e1   : > { %v5096_v11 = vadd.f32 %v5087_v22, %v12663_v41  ;;  %v9867_v41 = vld [vmem:[%s10979_s24 + $0x5b8] sm:$0xff] }
 0x4e2   : > { %6222 = vmatpush.bf16.msra.mxu3 %v12698_v44  ;;  %v9864_v44 = vld [vmem:[%s10979_s24 + $0x5a0] sm:$0xff] }
 0x4e3   : > { %v5339_v45 = vpop.f32.mrf.mxu1  ;;  %v5223_v9 = vadd.f32 %v5214_v6, %v5096_v11  ;;  %6314 = vmatpush.bf16.msrb.mxu1 %v9850_v57  ;;  %6349 = vmatpush.bf16.msrb.mxu2 %v9854_v63  ;;  %v9870_v6 = vld [vmem:[%s10979_s24 + $0x5c0] sm:$0xff] }
 0x4e4   : > { %v12751_v10 = vadd.f32 %v5339_v45, %v5222_v15 }
 0x4e5   : > { %5851 = vmatmul.bf16.gmra.mxu3 %v12753_v56  ;;  %5978 = vmatmul.bf16.gmra.mxu2 %v12757_v3 }
 0x4e6   : > { %6100 = vmatmul.bf16.vlgmr.msra.gmra.mxu1 %v12755_v42  ;;  %6223 = vmatpush.bf16.msra.mxu3 %v12706_v18 }
 0x4e7   : > { %6350 = vmatpush.bf16.msrb.mxu2 %v9853_v43  ;;  %6473 = vmatpush.bf16.msra.mxu1 %v9867_v41  ;;  %v12810_v43 = vld [vmem:[%s10979_s24 + $0x5d8] sm:$0xff] }
 0x4e8   : > { %v5090_v52 = vpop.f32.mrf.mxu3  ;;  %v5217_v31 = vpop.f32.mrf.mxu2 }
 0x4e9   : > { %v5097_v47 = vadd.f32 %v5090_v52, %v12670_v59  ;;  %v9848_v52 = vld [vmem:[#allocation2 + $0xb8] sm:$0xff] }
 0x4ea   : > { %6224 = vmatpush.bf16.msra.mxu3 %v12713_v21 }
 0x4eb   : > { %v5341_v25 = vpop.f32.mrf.mxu1  ;;  %v5224_v5 = vadd.f32 %v5217_v31, %v5097_v47  ;;  %6351 = vmatpush.bf16.msrb.mxu2 %v9852_v36  ;;  %6474 = vmatpush.bf16.msra.mxu1 %v9866_v58  ;;  %v12817_v36 = vld [vmem:[%s10979_s24 + $0x5d0] sm:$0xff]  ;;  %v9858_v47 = vld [vmem:[#allocation2 + $0x28] sm:$0xff]  ;;  %v9883_v31 = vld [vmem:[%s10979_s24 + $0x618] sm:$0xff] }
 0x4ec   : > { %v12767_v17 = vadd.f32 %v5341_v25, %v5223_v9 }
 0x4ee   : > { %6225 = vmatpush.bf16.msra.mxu3 %v12720_v48 }
 0x4ef   : > { %6352 = vmatpush.bf16.msrb.mxu2 %v9851_v62  ;;  %6475 = vmatpush.bf16.msra.mxu1 %v9865_v28  ;;  %v9885_v62 = vld [vmem:[%s10979_s24 + $0x628] sm:$0xff] }
 0x4f0   : > { %v5092_v27 = vpop.f32.mrf.mxu3  ;;  %v5219_v16 = vpop.f32.mrf.mxu2 }
 0x4f1   : > { %v5098_v59 = vadd.f32 %v5092_v27, %v12687_v19  ;;  %v12782_v19 = vld [vmem:[%s10979_s24 + $0x5f8] sm:$0xff] }
 0x4f2   : > { %6226 = vmatpush.bf16.msra.mxu3 %v12726_v13  ;;  %v12802_v13 = vld [vmem:[%s10979_s24 + $0x5e0] sm:$0xff] }
 0x4f3   : > { %v5344_v4 = vpop.f32.mrf.mxu1  ;;  %v5225_v55 = vadd.f32 %v5219_v16, %v5098_v59  ;;  %6353 = vmatpush.bf16.msrb.mxu2 %v9850_v57  ;;  %6476 = vmatpush.bf16.msra.mxu1 %v9864_v44  ;;  %v9884_v57 = vld [vmem:[%s10979_s24 + $0x620] sm:$0xff] }
 0x4f4   : > { %v12774_v18 = vadd.f32 %v5344_v4, %v5224_v5  ;;  %v9882_v5 = vld [vmem:[%s10979_s24 + $0x610] sm:$0xff]  ;;  %v9880_v4 = vld [vmem:[%s10979_s24 + $0x600] sm:$0xff] }
 0x4f5   : > { %6061 = vmatmul.bf16.vlgmr.msrb.gmra.mxu3 %v12627_v34  ;;  %6188 = vmatmul.bf16.vlgmr.msra.gmra.mxu2 %v12630_v60  ;;  %v12789_v34 = vld [vmem:[%s10979_s24 + $0x5f0] sm:$0xff]  ;;  %v9861_v60 = vld [vmem:[%s10979_s24 + $0x588] sm:$0xff] }
 0x4f6   : > { %6105 = vmatmul.bf16.gmra.mxu1 %v12776_v7  ;;  %6434 = vmatpush.bf16.msrb.mxu3 %v9867_v41 }
 0x4f7   : > { %6477 = vmatpush.bf16.msra.mxu1 %v9863_v8  ;;  %6561 = vmatpush.bf16.msra.mxu2 %v12782_v19 }
 0x4f8   : > { %v5300_v61 = vpop.f32.mrf.mxu3  ;;  %v5427_v21 = vpop.f32.mrf.mxu2 }
 0x4f9   : > { %v5310_v32 = vadd.f32 %v5300_v61, %v12700_v0  ;;  %v9849_v61 = vld [vmem:[#allocation2 + $0x28] sm:$0xff] }
 0x4fa   : > { %6435 = vmatpush.bf16.msrb.mxu3 %v9866_v58 }
 0x4fb   : > { %v5346_v46 = vpop.f32.mrf.mxu1  ;;  %v5437_v50 = vadd.f32 %v5427_v21, %v5310_v32  ;;  %6478 = vmatpush.bf16.msra.mxu1 %v9862_v1  ;;  %6562 = vmatpush.bf16.msra.mxu2 %v12789_v34  ;;  %v9868_v32 = vld [vmem:[#allocation2 + $0x100] sm:$0xff] }
 0x4fc   : > { %v12791_v48 = vadd.f32 %v5346_v46, %v5225_v55  ;;  %v9859_v21 = vld [vmem:[#allocation2 + $0x100] sm:$0xff] }
 0x4fe   : > { %6436 = vmatpush.bf16.msrb.mxu3 %v9865_v28 }
 0x4ff   : > { %6479 = vmatpush.bf16.msra.mxu1 %v9861_v60  ;;  %6563 = vmatpush.bf16.msra.mxu2 %v12796_v26 }
 0x500   : > { %v5302_v0 = vpop.f32.mrf.mxu3  ;;  %v5429_v53 = vpop.f32.mrf.mxu2 }
 0x501   : > { %v5311_v51 = vadd.f32 %v5302_v0, %v12716_v33  ;;  %v9887_v33 = vld [vmem:[%s10979_s24 + $0x638] sm:$0xff] }
 0x502   : > { %6437 = vmatpush.bf16.msrb.mxu3 %v9864_v44 }
 0x503   : > { %v5554_v63 = vpop.f32.mrf.mxu1  ;;  %v5438_v12 = vadd.f32 %v5429_v53, %v5311_v51  ;;  %6480 = vmatpush.bf16.msra.mxu1 %v9860_v39  ;;  %6564 = vmatpush.bf16.msra.mxu2 %v12802_v13 }
 0x504   : > { %v12804_v20 = vadd.f32 %v5554_v63, %v5437_v50 }
 0x505   : > { %6066 = vmatmul.bf16.gmra.mxu3 %v12649_v30  ;;  %6193 = vmatmul.bf16.gmra.mxu2 %v12653_v23  ;;  %v9886_v30 = vld [vmem:[%s10979_s24 + $0x630] sm:$0xff]  ;;  %v12824_v23 = vld [vmem:[%s10979_s24 + $0x5c8] sm:$0xff] }
 0x506   : > { %6315 = vmatmul.bf16.vlgmr.msrb.gmra.mxu1 %v12651_v2  ;;  %6438 = vmatpush.bf16.msrb.mxu3 %v9863_v8 }
 0x507   : > { %6565 = vmatpush.bf16.msra.mxu2 %v12810_v43  ;;  %6688 = vmatpush.bf16.msrb.mxu1 %v9887_v33 }
 0x508   : > { %v5305_v29 = vpop.f32.mrf.mxu3  ;;  %v5432_v38 = vpop.f32.mrf.mxu2 }
 0x509   : > { %v5312_v14 = vadd.f32 %v5305_v29, %v12729_v35 }
 0x50a   : > { %6439 = vmatpush.bf16.msrb.mxu3 %v9862_v1 }
 0x50b   : > { %v5556_v2 = vpop.f32.mrf.mxu1  ;;  %v5439_v37 = vadd.f32 %v5432_v38, %v5312_v14  ;;  %6566 = vmatpush.bf16.msra.mxu2 %v12817_v36  ;;  %6689 = vmatpush.bf16.msrb.mxu1 %v9886_v30 }
 0x50c   : > { %v12820_v15 = vadd.f32 %v5556_v2, %v5438_v12 }
 0x50e   : > { %6440 = vmatpush.bf16.msrb.mxu3 %v9861_v60 }
 0x50f   : > { %6567 = vmatpush.bf16.msra.mxu2 %v12824_v23  ;;  %6690 = vmatpush.bf16.msrb.mxu1 %v9885_v62 }
 0x510   : > { %v5307_v35 = vpop.f32.mrf.mxu3  ;;  %v5434_v11 = vpop.f32.mrf.mxu2 }
 0x511   : > { %v5313_v22 = vadd.f32 %v5307_v35, %v12744_v40 }
 0x512   : > { %6441 = vmatpush.bf16.msrb.mxu3 %v9860_v39 }
 0x513   : > { %v5559_v45 = vpop.f32.mrf.mxu1  ;;  %v5440_v9 = vadd.f32 %v5434_v11, %v5313_v22  ;;  %6568 = vmatpush.bf16.msra.mxu2 %v9870_v6  ;;  %6691 = vmatpush.bf16.msrb.mxu1 %v9884_v57 }
 0x514   : > { %v12831_v41 = vadd.f32 %v5559_v45, %v5439_v37  ;;  %v9888_v45 = vld [vmem:[#allocation2 + $0x40] sm:$0xff] }
 0x515   : > { %6227 = vmatmul.bf16.vlgmr.msra.gmra.mxu3 %v9848_v52  ;;  %6354 = vmatmul.bf16.vlgmr.msrb.gmra.mxu2 %v9858_v47 }
 0x516   : > { %6320 = vmatmul.bf16.gmra.mxu1 %v12672_v24  ;;  %6600 = vmatpush.bf16.msra.mxu3 %v12782_v19  ;;  %v9881_v24 = vld [vmem:[%s10979_s24 + $0x608] sm:$0xff]  ;;  %s12872_s24 = sshll.u32 %s13198_s27, 6 }
 0x517   : > { %6692 = vmatpush.bf16.msrb.mxu1 %v9883_v31  ;;  %6727 = vmatpush.bf16.msrb.mxu2 %v9887_v33  ;;  %s12878_s17 = scalar_lea.vmem %s12930_s3, %s12872_s24  ;;  %s437_s20 = scalar_lea.vmem %s12931_s4, %s12872_s24 }
 0x518   : > { %v5466_v40 = vpop.f32.mrf.mxu3  ;;  %v5593_v25 = vpop.f32.mrf.mxu2  ;;  %s442_s10 = scalar_lea.vmem %s12932_s5, %s12872_s24  ;;  %s458_s24 = scalar_lea.vmem %s12935_s8, %s9480_s9 }
 0x519   : > { %v5476_v58 = vadd.f32 %v5466_v40, %v12751_v10 }
 0x51a   : > { %6601 = vmatpush.bf16.msra.mxu3 %v12789_v34 }
 0x51b   : > { %v5561_v28 = vpop.f32.mrf.mxu1  ;;  %v5603_v27 = vadd.f32 %v5593_v25, %v5476_v58  ;;  %6693 = vmatpush.bf16.msrb.mxu1 %v9882_v5  ;;  %6728 = vmatpush.bf16.msrb.mxu2 %v9886_v30 }
 0x51c   : > { %v12839_v59 = vadd.f32 %v5561_v28, %v5440_v9 }
 0x51e   : > { %6602 = vmatpush.bf16.msra.mxu3 %v12796_v26 }
 0x51f   : > { %6694 = vmatpush.bf16.msrb.mxu1 %v9881_v24  ;;  %6729 = vmatpush.bf16.msrb.mxu2 %v9885_v62 }
 0x520   : > { %v5468_v16 = vpop.f32.mrf.mxu3  ;;  %v5595_v10 = vpop.f32.mrf.mxu2 }
 0x521   : > { %v5477_v44 = vadd.f32 %v5468_v16, %v12767_v17 }
 0x522   : > { %6603 = vmatpush.bf16.msra.mxu3 %v12802_v13  ;;  %v9869_v13 = vld [vmem:[#allocation2] sm:$0xff] }
 0x523   : > { %v5720_v55 = vpop.f32.mrf.mxu1  ;;  %v12846_v8 = vadd.f32 %v5595_v10, %v5477_v44  ;;  %6695 = vmatpush.bf16.msrb.mxu1 %v9880_v4  ;;  %6730 = vmatpush.bf16.msrb.mxu2 %v9884_v57 }
 0x524   : > { %v12848_v19 = vadd.f32 %v5720_v55, %v5603_v27 }
 0x525   : > { %6232 = vmatmul.bf16.gmra.mxu3 %v9849_v61  ;;  %6359 = vmatmul.bf16.gmra.mxu2 %v9859_v21 }
 0x526   : > { %6481 = vmatmul.bf16.vlgmr.msra.gmra.mxu1 %v9868_v32  ;;  %6604 = vmatpush.bf16.msra.mxu3 %v12810_v43 }
 0x527   : > { %6731 = vmatpush.bf16.msrb.mxu2 %v9883_v31 }
 0x528   : > { %v5471_v17 = vpop.f32.mrf.mxu3  ;;  %v5598_v34 = vpop.f32.mrf.mxu2 }
 0x529   : > { %v5478_v1 = vadd.f32 %v5471_v17, %v12774_v18 }
 0x52a   : > { %6605 = vmatpush.bf16.msra.mxu3 %v12817_v36 }
 0x52b   : > { %v5722_v46 = vpop.f32.mrf.mxu1  ;;  %v5605_v50 = vadd.f32 %v5598_v34, %v5478_v1  ;;  %6732 = vmatpush.bf16.msrb.mxu2 %v9882_v5 }
 0x52c   : > { %v5731_v31 = vadd.f32 %v5722_v46, %v12846_v8 }
 0x52e   : > { %6606 = vmatpush.bf16.msra.mxu3 %v12824_v23 }
 0x52f   : > { %6733 = vmatpush.bf16.msrb.mxu2 %v9881_v24  ;;  %v9889_v24 = vld [vmem:[#allocation2 + $0xe8] sm:$0xff] }
 0x530   : > { %v5473_v60 = vpop.f32.mrf.mxu3  ;;  %v5600_v0 = vpop.f32.mrf.mxu2 }
 0x531   : > { %v5479_v26 = vadd.f32 %v5473_v60, %v12791_v48 }
 0x532   : > { %6607 = vmatpush.bf16.msra.mxu3 %v9870_v6 }
 0x533   : > { %v5725_v51 = vpop.f32.mrf.mxu1  ;;  %v5606_v53 = vadd.f32 %v5600_v0, %v5479_v26  ;;  %6734 = vmatpush.bf16.msrb.mxu2 %v9880_v4 }
 0x534   : > { %v5732_v39 = vadd.f32 %v5725_v51, %v5605_v50 }
 0x535   : > { %6442 = vmatmul.bf16.vlgmr.msrb.gmra.mxu3 %v12731_v54  ;;  %6569 = vmatmul.bf16.vlgmr.msra.gmra.mxu2 %v12734_v49 }
 0x536   : > { %6486 = vmatmul.bf16.gmra.mxu1 %v9869_v13 }
 0x538   : > { %v5681_v18 = vpop.f32.mrf.mxu3  ;;  %v5808_v12 = vpop.f32.mrf.mxu2 }
 0x539   : > { %v5691_v63 = vadd.f32 %v5681_v18, %v12804_v20 }
 0x53b   : > { %v5727_v43 = vpop.f32.mrf.mxu1  ;;  %v5818_v33 = vadd.f32 %v5808_v12, %v5691_v63 }
 0x53c   : > { %v5733_v29 = vadd.f32 %v5727_v43, %v5606_v53 }
 0x540   : > { %v5683_v48 = vpop.f32.mrf.mxu3  ;;  %v5810_v14 = vpop.f32.mrf.mxu2 }
 0x541   : > { %v5692_v30 = vadd.f32 %v5683_v48, %v12820_v15 }
 0x543   : > { %v5935_v38 = vpop.f32.mrf.mxu1  ;;  %v5819_v49 = vadd.f32 %v5810_v14, %v5692_v30 }
 0x544   : > { %v5945_v36 = vadd.f32 %v5935_v38, %v5818_v33 }
 0x545   : > { %6447 = vmatmul.bf16.gmra.mxu3 %v12753_v56  ;;  %6574 = vmatmul.bf16.gmra.mxu2 %v12757_v3  ;;  %v9878_v56 = vld [vmem:[#allocation2] sm:$0xff] }
 0x546   : > { %6696 = vmatmul.bf16.vlgmr.msrb.gmra.mxu1 %v12755_v42 }
 0x548   : > { %v5686_v54 = vpop.f32.mrf.mxu3  ;;  %v5813_v2 = vpop.f32.mrf.mxu2 }
 0x549   : > { %v5693_v20 = vadd.f32 %v5686_v54, %v12831_v41 }
 0x54b   : > { %v5937_v37 = vpop.f32.mrf.mxu1  ;;  %v5820_v23 = vadd.f32 %v5813_v2, %v5693_v20 }
 0x54c   : > { %v5946_v62 = vadd.f32 %v5937_v37, %v5819_v49 }
 0x550   : > { %v5688_v35 = vpop.f32.mrf.mxu3  ;;  %v5815_v11 = vpop.f32.mrf.mxu2 }
 0x551   : > { %v5694_v22 = vadd.f32 %v5688_v35, %v12839_v59  ;;  %v9879_v59 = vld [vmem:[#allocation2 + $0x40] sm:$0xff] }
 0x553   : > { %v5940_v6 = vpop.f32.mrf.mxu1  ;;  %v5821_v15 = vadd.f32 %v5815_v11, %v5694_v22 }
 0x554   : > { %v5947_v57 = vadd.f32 %v5940_v6, %v5820_v23 }
 0x555   : > { %6608 = vmatmul.bf16.vlgmr.msra.gmra.mxu3 %v9878_v56  ;;  %6735 = vmatmul.bf16.vlgmr.msrb.gmra.mxu2 %v9888_v45 }
 0x556   : > { %6701 = vmatmul.bf16.gmra.mxu1 %v12776_v7 }
 0x558   : > { %v5847_v42 = vpop.f32.mrf.mxu3  ;;  %v5974_v9 = vpop.f32.mrf.mxu2 }
 0x559   : > { %v5857_v3 = vadd.f32 %v5847_v42, %v12848_v19 }
 0x55b   : > { %v5942_v41 = vpop.f32.mrf.mxu1  ;;  %v5984_v52 = vadd.f32 %v5974_v9, %v5857_v3 }
 0x55c   : > { %v5948_v47 = vadd.f32 %v5942_v41, %v5821_v15 }
 0x560   : > { %v5849_v40 = vpop.f32.mrf.mxu3  ;;  %v5976_v25 = vpop.f32.mrf.mxu2 }
 0x561   : > { %v5858_v58 = vadd.f32 %v5849_v40, %v5731_v31 }
 0x563   : > { %v6101_v5 = vpop.f32.mrf.mxu1  ;;  %v5985_v28 = vadd.f32 %v5976_v25, %v5858_v58 }
 0x564   : > { %v6111_v27 = vadd.f32 %v6101_v5, %v5984_v52 }
 0x565   : > { %6613 = vmatmul.bf16.gmra.mxu3 %v9879_v59  ;;  %6740 = vmatmul.bf16.gmra.mxu2 %v9889_v24 }
 0x568   : > { %v5852_v7 = vpop.f32.mrf.mxu3  ;;  %v5979_v44 = vpop.f32.mrf.mxu2 }
 0x569   : > { %v5859_v16 = vadd.f32 %v5852_v7, %v5732_v39 }
 0x56b   : > { %v6103_v10 = vpop.f32.mrf.mxu1  ;;  %v5986_v4 = vadd.f32 %v5979_v44, %v5859_v16 }
 0x56c   : > { %v6112_v55 = vadd.f32 %v6103_v10, %v5985_v28 }
 0x570   : > { %v5854_v19 = vpop.f32.mrf.mxu3  ;;  %v5981_v32 = vpop.f32.mrf.mxu2 }
 0x571   : > { %v5860_v61 = vadd.f32 %v5854_v19, %v5733_v29 }
 0x573   : > { %v6106_v8 = vpop.f32.mrf.mxu1  ;;  %v5987_v21 = vadd.f32 %v5981_v32, %v5860_v61 }
 0x574   : > { %v6113_v17 = vadd.f32 %v6106_v8, %v5986_v4  ;;  %v9897_v8 = vld [vmem:[%s12878_s17 + $0x38] sm:$0xff] }
 0x575   : > { %6837 = vmatpush.bf16.msrb.mxu3 %v9897_v8  ;;  %v9901_v8 = vld [vmem:[%s437_s20 + $0x18] sm:$0xff] }
 0x578   : > { %v6062_v1 = vpop.f32.mrf.mxu3  ;;  %v6189_v46 = vpop.f32.mrf.mxu2 }
 0x579   : > { %v6072_v34 = vadd.f32 %v6062_v1, %v5945_v36 }
 0x57b   : > { %v6108_v50 = vpop.f32.mrf.mxu1  ;;  %v6199_v60 = vadd.f32 %v6189_v46, %v6072_v34  ;;  %v9896_v34 = vld [vmem:[%s12878_s17 + $0x30] sm:$0xff] }
 0x57c   : > { %v12867_v26 = vadd.f32 %v6108_v50, %v5987_v21  ;;  %6838 = vmatpush.bf16.msrb.mxu3 %v9896_v34  ;;  %v9898_v34 = vld [vmem:[%s437_s20] sm:$0xff] }
 0x580   : > { %v6064_v0 = vpop.f32.mrf.mxu3  ;;  %v6191_v53 = vpop.f32.mrf.mxu2 }
 0x581   : > { %v6073_v51 = vadd.f32 %v6064_v0, %v5946_v62 }
 0x583   : > { %v6316_v39 = vpop.f32.mrf.mxu1  ;;  %v6200_v13 = vadd.f32 %v6191_v53, %v6073_v51 }
 0x584   : > { %v6326_v18 = vadd.f32 %v6316_v39, %v6199_v60 }
 0x588   : > { %v6067_v63 = vpop.f32.mrf.mxu3  ;;  %v6194_v43 = vpop.f32.mrf.mxu2 }
 0x589   : > { %v6074_v12 = vadd.f32 %v6067_v63, %v5947_v57  ;;  %v9894_v63 = vld [vmem:[%s12878_s17 + $0x20] sm:$0xff] }
 0x58b   : > { %v6318_v33 = vpop.f32.mrf.mxu1  ;;  %v6201_v29 = vadd.f32 %v6194_v43, %v6074_v12 }
 0x58c   : > { %v6327_v48 = vadd.f32 %v6318_v33, %v6200_v13  ;;  %v9895_v13 = vld [vmem:[%s12878_s17 + $0x28] sm:$0xff]  ;;  %v9893_v33 = vld [vmem:[%s12878_s17 + $0x18] sm:$0xff] }
 0x58d   : > { %6839 = vmatpush.bf16.msrb.mxu3 %v9895_v13 }
 0x590   : > { %v6069_v14 = vpop.f32.mrf.mxu3  ;;  %v6196_v36 = vpop.f32.mrf.mxu2 }
 0x591   : > { %v6075_v38 = vadd.f32 %v6069_v14, %v5948_v47  ;;  %6840 = vmatpush.bf16.msrb.mxu3 %v9894_v63 }
 0x593   : > { %v6321_v30 = vpop.f32.mrf.mxu1  ;;  %v6202_v54 = vadd.f32 %v6196_v36, %v6075_v38  ;;  %v9892_v38 = vld [vmem:[%s12878_s17 + $0x10] sm:$0xff] }
 0x594   : > { %v6328_v49 = vadd.f32 %v6321_v30, %v6201_v29 }
 0x595   : > { %6841 = vmatpush.bf16.msrb.mxu3 %v9893_v33 }
 0x598   : > { %v6228_v20 = vpop.f32.mrf.mxu3  ;;  %v6355_v37 = vpop.f32.mrf.mxu2 }
 0x599   : > { %v6238_v2 = vadd.f32 %v6228_v20, %v6111_v27  ;;  %6842 = vmatpush.bf16.msrb.mxu3 %v9892_v38  ;;  %v9891_v20 = vld [vmem:[%s12878_s17 + $0x8] sm:$0xff] }
 0x59b   : > { %v6323_v23 = vpop.f32.mrf.mxu1  ;;  %v6365_v62 = vadd.f32 %v6355_v37, %v6238_v2 }
 0x59c   : > { %v6329_v19 = vadd.f32 %v6323_v23, %v6202_v54 }
 0x59d   : > { %6843 = vmatpush.bf16.msrb.mxu3 %v9891_v20  ;;  %v9910_v20 = vld [vmem:[%s442_s10 + $0x20] sm:$0xff] }
 0x5a0   : > { %v6230_v35 = vpop.f32.mrf.mxu3  ;;  %v6357_v11 = vpop.f32.mrf.mxu2 }
 0x5a1   : > { %v6239_v22 = vadd.f32 %v6230_v35, %v6112_v55 }
 0x5a3   : > { %v6482_v6 = vpop.f32.mrf.mxu1  ;;  %v12869_v15 = vadd.f32 %v6357_v11, %v6239_v22  ;;  %v10162_v22 = vld [vmem:[%s10587_s16 + $0x2] ss:$0 sm:$0xff] }
 0x5a4   : > { %v6492_v29 = vadd.f32 %v6482_v6, %v6365_v62  ;;  %v9890_v11 = vld [vmem:[%s12878_s17] sm:$0xff] }
 0x5a5   : > { %6844 = vmatpush.bf16.msrb.mxu3 %v9890_v11 }
 0x5a8   : > { %v6233_v57 = vpop.f32.mrf.mxu3  ;;  %v6360_v45 = vpop.f32.mrf.mxu2 }
 0x5a9   : > { %v6240_v56 = vadd.f32 %v6233_v57, %v6113_v17 }
 0x5ab   : > { %v6484_v42 = vpop.f32.mrf.mxu1  ;;  %v6367_v3 = vadd.f32 %v6360_v45, %v6240_v56  ;;  %v10163_v45 = vld [vmem:[%s10587_s16 + $0x3] ss:$0 sm:$0xff] }
 0x5ac   : > { %v6493_v23 = vadd.f32 %v6484_v42, %v12869_v15 }
 0x5b0   : > { %v6235_v9 = vpop.f32.mrf.mxu3  ;;  %v6362_v41 = vpop.f32.mrf.mxu2 }
 0x5b1   : > { %v6241_v30 = vadd.f32 %v6235_v9, %v12867_v26 }
 0x5b3   : > { %v6487_v52 = vpop.f32.mrf.mxu1  ;;  %v6368_v35 = vadd.f32 %v6362_v41, %v6241_v30  ;;  %v9913_v30 = vld [vmem:[%s442_s10 + $0x38] sm:$0xff] }
 0x5b4   : > { %7031 = vmatpush.bf16.msra.mxu2 %v9913_v30 }
 0x5b8   : > { %v6443_v47 = vpop.f32.mrf.mxu3  ;;  %v6570_v31 = vpop.f32.mrf.mxu2 }
 0x5b9   : > { %v6453_v24 = vadd.f32 %v6443_v47, %v6326_v18 }
 0x5bb   : > { %v6489_v40 = vpop.f32.mrf.mxu1  ;;  %v6580_v44 = vadd.f32 %v6570_v31, %v6453_v24 }
 0x5bc   : > { %v6495_v6 = vadd.f32 %v6489_v40, %v6368_v35  ;;  %v10166_v35 = vld [vmem:[%s10587_s16 + $0x6] ss:$0 sm:$0xff] }
 0x5c0   : > { %v6445_v58 = vpop.f32.mrf.mxu3  ;;  %v6572_v25 = vpop.f32.mrf.mxu2 }
 0x5c1   : > { %v6454_v21 = vadd.f32 %v6445_v58, %v6327_v48  ;;  %v6494_v48 = vadd.f32 %v6487_v52, %v6367_v3 }
 0x5c3   : > { %v6697_v5 = vpop.f32.mrf.mxu1  ;;  %v6581_v50 = vadd.f32 %v6572_v25, %v6454_v21  ;;  %v9900_v21 = vld [vmem:[%s437_s20 + $0x10] sm:$0xff] }
 0x5c4   : > { %v6707_v61 = vadd.f32 %v6697_v5, %v6580_v44 }
 0x5c8   : > { %v6448_v28 = vpop.f32.mrf.mxu3  ;;  %v6575_v27 = vpop.f32.mrf.mxu2 }
 0x5c9   : > { %v6455_v7 = vadd.f32 %v6448_v28, %v6328_v49 }
 0x5cb   : > { %v6699_v59 = vpop.f32.mrf.mxu1  ;;  %v6582_v10 = vadd.f32 %v6575_v27, %v6455_v7 }
 0x5cc   : > { %v6708_v53 = vadd.f32 %v6699_v59, %v6581_v50 }
 0x5d0   : > { %v6450_v16 = vpop.f32.mrf.mxu3  ;;  %v6577_v4 = vpop.f32.mrf.mxu2 }
 0x5d1   : > { %v6456_v17 = vadd.f32 %v6450_v16, %v6329_v19  ;;  %v9904_v19 = vld [vmem:[%s437_s20 + $0x30] sm:$0xff] }
 0x5d3   : > { %v6702_v55 = vpop.f32.mrf.mxu1  ;;  %v6583_v60 = vadd.f32 %v6577_v4, %v6456_v17  ;;  %v9899_v17 = vld [vmem:[%s437_s20 + $0x8] sm:$0xff] }
 0x5d4   : > { %v6709_v32 = vadd.f32 %v6702_v55, %v6582_v10  ;;  %v9905_v55 = vld [vmem:[%s437_s20 + $0x38] sm:$0xff] }
 0x5d5   : > { %6932 = vmatpush.bf16.msra.mxu1 %v9905_v55 }
 0x5d6   : > { %v6750_v1 = vmax.f32 %v6707_v61, %v6709_v32  ;;  %v9903_v61 = vld [vmem:[%s437_s20 + $0x28] sm:$0xff]  ;;  %v9902_v32 = vld [vmem:[%s437_s20 + $0x20] sm:$0xff] }
 0x5d8   : > { %v6609_v46 = vpop.f32.mrf.mxu3  ;;  %v6736_v0 = vpop.f32.mrf.mxu2 }
 0x5d9   : > { %v6619_v14 = vadd.f32 %v6609_v46, %v6492_v29  ;;  %6933 = vmatpush.bf16.msra.mxu1 %v9904_v19  ;;  %v10165_v46 = vld [vmem:[%s10587_s16 + $0x5] ss:$0 sm:$0xff] }
 0x5db   : > { %v6704_v51 = vpop.f32.mrf.mxu1  ;;  %v6746_v2 = vadd.f32 %v6736_v0, %v6619_v14 }
 0x5dc   : > { %v6710_v39 = vadd.f32 %v6704_v51, %v6583_v60 }
 0x5dd   : > { %6934 = vmatpush.bf16.msra.mxu1 %v9903_v61 }
 0x5de   : > { %v6751_v18 = vmax.f32 %v6708_v53, %v6710_v39 }
 0x5e0   : > { %v6611_v12 = vpop.f32.mrf.mxu3  ;;  %v6738_v43 = vpop.f32.mrf.mxu2 }
 0x5e1   : > { %v6620_v57 = vadd.f32 %v6611_v12, %v6493_v23  ;;  %6935 = vmatpush.bf16.msra.mxu1 %v9902_v32  ;;  %v9907_v23 = vld [vmem:[%s442_s10 + $0x8] sm:$0xff] }
 0x5e3   : > { %v6747_v47 = vadd.f32 %v6738_v43, %v6620_v57 }
 0x5e5   : > { %6936 = vmatpush.bf16.msra.mxu1 %v9901_v8 }
 0x5e8   : > { %v6614_v36 = vpop.f32.mrf.mxu3  ;;  %v6741_v49 = vpop.f32.mrf.mxu2 }
 0x5e9   : > { %v6621_v54 = vadd.f32 %v6614_v36, %v6494_v48  ;;  %6937 = vmatpush.bf16.msra.mxu1 %v9900_v21 }
 0x5eb   : > { %v6748_v37 = vadd.f32 %v6741_v49, %v6621_v54  ;;  %v9912_v54 = vld [vmem:[%s442_s10 + $0x30] sm:$0xff]  ;;  %v9911_v49 = vld [vmem:[%s442_s10 + $0x28] sm:$0xff] }
 0x5ec   : > { %7032 = vmatpush.bf16.msra.mxu2 %v9912_v54 }
 0x5ed   : > { %v6752_v62 = vmax.f32 %v6746_v2, %v6748_v37  ;;  %6938 = vmatpush.bf16.msra.mxu1 %v9899_v17  ;;  %v9909_v2 = vld [vmem:[%s442_s10 + $0x18] sm:$0xff]  ;;  %v9908_v37 = vld [vmem:[%s442_s10 + $0x10] sm:$0xff] }
 0x5ef   : > { %v6754_v56 = vmax.f32 %v6750_v1, %v6752_v62  ;;  %v10164_v1 = vld [vmem:[%s10587_s16 + $0x4] ss:$0 sm:$0xff] }
 0x5f0   : > { %v6616_v3 = vpop.f32.mrf.mxu3  ;;  %v6743_v52 = vpop.f32.mrf.mxu2  ;;  %7033 = vmatpush.bf16.msra.mxu2 %v9911_v49  ;;  %v9906_v62 = vld [vmem:[%s442_s10] sm:$0xff] }
 0x5f1   : > { %v6757_v26 = vmul.f32 %v10162_v22, %v6754_v56  ;;  %v6622_v9 = vadd.f32 %v6616_v3, %v6495_v6  ;;  %6939 = vmatpush.bf16.msra.mxu1 %v9898_v34 }
 0x5f3   : > { %v6760_v31 = vadd.f32 %v10163_v45, %v6757_v26  ;;  %v6749_v58 = vadd.f32 %v6743_v52, %v6622_v9 }
 0x5f4   : > { %7034 = vmatpush.bf16.msra.mxu2 %v9910_v20 }
 0x5f5   : > { %v6762_v25 = vsub.f32 0.0, %v6760_v31  ;;  %v6753_v5 = vmax.f32 %v6747_v47, %v6749_v58 }
 0x5f7   : > { %v6755_v15 = vmax.f32 %v6751_v18, %v6753_v5  ;;  %v6764_v42 = vmul.f32 1.442695, %v6762_v25 }
 0x5f8   : > { %7035 = vmatpush.bf16.msra.mxu2 %v9909_v2 }
 0x5f9   : > { %v6758_v41 = vmul.f32 %v10162_v22, %v6755_v15  ;;  %10457 = vpow2.f32 %v6764_v42  ;;  %v10167_v22 = vld [vmem:[%s10587_s16 + $0x7] ss:$0 sm:$0xff] }
 0x5fb   : > { %v6761_v28 = vadd.f32 %v10163_v45, %v6758_v41 }
 0x5fc   : > { %7036 = vmatpush.bf16.msra.mxu2 %v9908_v37 }
 0x5fd   : > { %v6763_v40 = vsub.f32 0.0, %v6761_v28  ;;  %v10168_v28 = vld [vmem:[%s449_s23] ss:$0 sm:$0xff] }
 0x5ff   : > { %v6766_v27 = vmul.f32 1.442695, %v6763_v40  ;;  %v10458_v59 = vpop.eup %10457 }
 0x600   : > { %v6768_v24 = vadd.f32 1.0, %v10458_v59  ;;  %7037 = vmatpush.bf16.msra.mxu2 %v9907_v23 }
 0x601   : > { %10459 = vpow2.f32 %v6766_v27 }
 0x602   : > { %10461 = vrcp.f32 %v6768_v24 }
 0x604   : > { %7038 = vmatpush.bf16.msra.mxu2 %v9906_v62 }
 0x607   : > { %v10460_v7 = vpop.eup %10459 }
 0x608   : > { %v6769_v16 = vadd.f32 1.0, %v10460_v7  ;;  %v10462_v44 = vpop.eup %10461 }
 0x60a   : > { %10463 = vrcp.f32 %v6769_v16 }
 0x610   : > { %v10464_v10 = vpop.eup %10463 }
 0x611   : > { %v6772_v4 = vpack.c.bf16 %v10464_v10, %v10462_v44 }
 0x613   : > { %6845 = vmatmul.bf16.vlgmr.msrb.gmra.mxu3 %v6772_v4 }
 0x696   : > { %v6846_v50 = vpop.f32.mrf.mxu3 }
 0x697   : > { %v6852_v60 = vmul.f32 %v10164_v1, %v6846_v50 }
 0x699   : > { %v6855_v0 = vadd.f32 %v10165_v46, %v6852_v60 }
 0x69b   : > { %v6857_v51 = vsub.f32 0.0, %v6855_v0 }
 0x69d   : > { %v6859_v53 = vmul.f32 1.442695, %v6857_v51 }
 0x69e   : > { %v6848_v39 = vpop.f32.mrf.mxu3 }
 0x69f   : > { %v6853_v13 = vmul.f32 %v10164_v1, %v6848_v39  ;;  %10465 = vpow2.f32 %v6859_v53 }
 0x6a1   : > { %v6856_v18 = vadd.f32 %v10165_v46, %v6853_v13 }
 0x6a3   : > { %v6858_v63 = vsub.f32 0.0, %v6856_v18 }
 0x6a5   : > { %v6861_v12 = vmul.f32 1.442695, %v6858_v63  ;;  %v10466_v43 = vpop.eup %10465 }
 0x6a6   : > { %v6863_v33 = vadd.f32 1.0, %v10466_v43 }
 0x6a7   : > { %10467 = vpow2.f32 %v6861_v12 }
 0x6a8   : > { %10469 = vrcp.f32 %v6863_v33 }
 0x6ad   : > { %v10468_v29 = vpop.eup %10467 }
 0x6ae   : > { %v6864_v48 = vadd.f32 1.0, %v10468_v29  ;;  %v10470_v14 = vpop.eup %10469 }
 0x6b0   : > { %10471 = vrcp.f32 %v6864_v48 }
 0x6b6   : > { %v10472_v38 = vpop.eup %10471 }
 0x6b7   : > { %v6867_v36 = vpack.c.bf16 %v10472_v38, %v10470_v14 }
 0x6b9   : > { %6940 = vmatmul.bf16.vlgmr.msra.gmra.mxu1 %v6867_v36 }
 0x736   : > { %v6941_v11 = vpop.f32.mrf.mxu1 }
 0x737   : > { %v6947_v6 = vmul.f32 %v10166_v35, %v6941_v11 }
 0x739   : > { %v6950_v57 = vadd.f32 %v10167_v22, %v6947_v6 }
 0x73b   : > { %v6952_v56 = vsub.f32 0.0, %v6950_v57 }
 0x73d   : > { %v6954_v45 = vmul.f32 1.442695, %v6952_v56 }
 0x73e   : > { %v6943_v3 = vpop.f32.mrf.mxu1 }
 0x73f   : > { %v6948_v26 = vmul.f32 %v10166_v35, %v6943_v3  ;;  %10473 = vpow2.f32 %v6954_v45 }
 0x741   : > { %v6951_v9 = vadd.f32 %v10167_v22, %v6948_v26 }
 0x743   : > { %v6953_v52 = vsub.f32 0.0, %v6951_v9 }
 0x745   : > { %v6956_v47 = vmul.f32 1.442695, %v6953_v52  ;;  %v10474_v31 = vpop.eup %10473 }
 0x746   : > { %v6958_v58 = vadd.f32 1.0, %v10474_v31 }
 0x747   : > { %10475 = vpow2.f32 %v6956_v47 }
 0x748   : > { %10477 = vrcp.f32 %v6958_v58 }
 0x74d   : > { %v10476_v25 = vpop.eup %10475 }
 0x74e   : > { %v6959_v5 = vadd.f32 1.0, %v10476_v25  ;;  %v10478_v15 = vpop.eup %10477 }
 0x750   : > { %10479 = vrcp.f32 %v6959_v5 }
 0x756   : > { %v10480_v42 = vpop.eup %10479 }
 0x757   : > { %v6962_v41 = vpack.c.bf16 %v10480_v42, %v10478_v15 }
 0x759   : > { %7039 = vmatmul.bf16.vlgmr.msra.gmra.mxu2 %v6962_v41 }
 0x7dc   : > { %v7040_v40 = vpop.f32.mrf.mxu2 }
 0x7dd   : > { %v7041_v27 = vadd.f32 %v10168_v28, %v7040_v40 }
 0x7df   : > { %7046 = vst.msk [vmem:[%s458_s24] sm:$0xff] %vm7045_vm1, %v7041_v27 }
 0x7e4   : > { %v7042_v59 = vpop.f32.mrf.mxu2 }
 0x7e5   : > { %v7043_v24 = vadd.f32 %v10168_v28, %v7042_v59 }
 0x7e7   : > { %7047 = vst.msk [vmem:[%s458_s24 + $0x8] sm:$0xff] %vm7045_vm1, %v7043_v24 }
 0x7e8 PF: > { %s18_s29 = sadd.s32 1, %s10510_s29   ;;  %s13193_s27 = smov %s10506_s28 }
 0x7e9   : > { %p15_p5 = scmp.ge.s32.totalorder %s18_s29, 4   ;;  %s13194_s28 = smov %s13196_s30 }
 0x7eb   :  { %17 = sbr.rel (!%p15_p5) target bundleno = 2 (0x2), region = 127 }

</bundles_post_ra>
